<compile_context>
chip_gen: v5e
topology: v5e:2x2
jax: 0.10.0
libtpu: 0.0.40
codegen_flags: <defaults>
</compile_context>

<pallas_src>
import jax
import jax.numpy as jnp
from jax.experimental import pallas as pl
from jax.experimental.pallas import tpu as pltpu

IN_FEATURES = 1536
OUT_FEATURES = 1000


def _linear_kernel(x_ref, w_ref, b_ref, o_ref):
    # x_ref: (B, K); w_ref: (TN, K) native (out, in) layout; b_ref: (1, TN); o_ref: (B, TN)
    acc = jax.lax.dot_general(
        x_ref[...],
        w_ref[...],
        dimension_numbers=(((1,), (1,)), ((), ())),   # contract K with K -> (B, TN)
        preferred_element_type=jnp.float32,
    )
    o_ref[...] = (acc + b_ref[...]).astype(o_ref.dtype)


def prepare_linear_params(weight, bias, n_align=128):
    """One-time parameter prep (hoisted out of the per-call hot path).

    weight: (N, K) in PyTorch nn.Linear layout, bias: (N,).
    Returns (w_padded (n_pad, K), b_padded (1, n_pad), N).
    """
    N, K = weight.shape
    n_pad = pl.cdiv(N, n_align) * n_align
    w_p = jnp.zeros((n_pad, K), weight.dtype).at[:N, :].set(weight)
    b_p = jnp.zeros((1, n_pad), bias.dtype).at[0, :N].set(bias)
    return w_p, b_p, N


def _pick_tile_n(n_pad):
    """Single tile on v5e/v6e (grid=(1,)); two parallel tiles on v7x (2 TCs)."""
    try:
        kind = jax.devices()[0].device_kind.lower()
    except Exception:
        kind = ""
    if "v7" in kind and n_pad % 2 == 0 and (n_pad // 2) % 128 == 0:
        return n_pad // 2
    return n_pad


def pallas_linear(x2d, w_padded, b_padded, n_out, *, tile_n=None):
    """x2d: (B, K) f32, w_padded: (n_pad, K) f32, b_padded: (1, n_pad) f32 -> (B, n_out)."""
    B, K = x2d.shape
    n_pad, Kw = w_padded.shape
    assert K == Kw
    if tile_n is None:
        tile_n = _pick_tile_n(n_pad)
    assert n_pad % tile_n == 0 and tile_n % 128 == 0

    grid = (n_pad // tile_n,)
    out = pl.pallas_call(
        _linear_kernel,
        out_shape=jax.ShapeDtypeStruct((B, n_pad), x2d.dtype),
        grid_spec=pltpu.PrefetchScalarGridSpec(
            num_scalar_prefetch=0,
            grid=grid,
            in_specs=[
                pl.BlockSpec((B, K), lambda j: (0, 0)),        # activations (full, tiny)
                pl.BlockSpec((tile_n, K), lambda j: (j, 0)),   # weight tile, native (N, K)
                pl.BlockSpec((1, tile_n), lambda j: (0, j)),   # bias tile
            ],
            out_specs=pl.BlockSpec((B, tile_n), lambda j: (0, j)),
        ),
        compiler_params=pltpu.CompilerParams(
            dimension_semantics=("parallel",),
            vmem_limit_bytes=32 * 1024 * 1024,
        ),
        cost_estimate=pl.CostEstimate(
            flops=2 * B * K * n_pad,
            bytes_accessed=(n_pad * K + B * K + n_pad + B * n_pad) * 4,
            transcendentals=0,
        ),
    )(x2d, w_padded, b_padded)
    return out[:, :n_out]


def forward(x386, w_padded, b_padded, n_out=OUT_FEATURES):
    """Reproduces M.forward. x386: (B, 1536, 1, 1) f32."""
    x387 = x386.reshape(x386.shape[0], -1)           # flatten(1) -> (B, 1536)
    x388 = pallas_linear(x387, w_padded, b_padded, n_out)   # Linear(1536 -> 1000)
    return x388


if __name__ == "__main__":
    key = jax.random.PRNGKey(0)
    k_x, k_w, k_b = jax.random.split(key, 3)

    # Deterministic synthetic parameters (same shapes as nn.Linear(1536, 1000)).
    bound = 1.0 / (IN_FEATURES ** 0.5)
    weight = jax.random.uniform(
        k_w, (OUT_FEATURES, IN_FEATURES), jnp.float32, -bound, bound)
    bias = jax.random.uniform(
        k_b, (OUT_FEATURES,), jnp.float32, -bound, bound)

    # One-time parameter prep (no per-call transpose / pad).
    w_padded, b_padded, n_out = prepare_linear_params(weight, bias)
    w_padded = jax.block_until_ready(w_padded)
    b_padded = jax.block_until_ready(b_padded)

    # Input matching the module: torch.randn([1, 1536, 1, 1])
    x386 = jax.random.normal(k_x, (1, IN_FEATURES, 1, 1), jnp.float32)

    out = forward(x386, w_padded, b_padded, n_out)
    out = jax.block_until_ready(out)

    # Sanity check against a plain-JAX reference.
    ref = x386.reshape(1, -1) @ weight.T + bias
    assert out.shape == (1, OUT_FEATURES), out.shape
    assert jnp.allclose(out, ref, atol=1e-4, rtol=1e-4)

    print("KERNEL_OK")
</pallas_src>

<mosaic_0001>
module attributes {stable_mosaic.version = 11 : i64} {
  func.func @_linear_kernel(%arg0: i32, %arg1: memref<1x1536xf32, #tpu.memory_space<vmem>>, %arg2: memref<1024x1536xf32, #tpu.memory_space<vmem>>, %arg3: memref<1x1024xf32, #tpu.memory_space<vmem>>, %arg4: memref<1x1024xf32, #tpu.memory_space<vmem>>) attributes {dimension_semantics = [#tpu.dimension_semantics<parallel>], iteration_bounds = array<i64: 1>, scalar_prefetch = 0 : i64, scratch_operands = 0 : i64, tpu.core_type = #tpu.core_type<tc>, window_params = [{pipeline_mode = #tpu.pipeline_mode<synchronous>, transform_indices = @transform_0, window_bounds = array<i64: 1, 1536>}, {transform_indices = @transform_1, window_bounds = array<i64: 1024, 1536>}, {transform_indices = @transform_2, window_bounds = array<i64: 1, 1024>}, {transform_indices = @transform_3, window_bounds = array<i64: 1, 1024>}]} {
    %c0 = arith.constant 0 : index
    %c0_0 = arith.constant 0 : index
    %0 = vector.load %arg1[%c0, %c0_0] : memref<1x1536xf32, #tpu.memory_space<vmem>>, vector<1x1536xf32>
    %c0_1 = arith.constant 0 : index
    %c0_2 = arith.constant 0 : index
    %1 = vector.load %arg2[%c0_1, %c0_2] : memref<1024x1536xf32, #tpu.memory_space<vmem>>, vector<1024x1536xf32>
    %cst = arith.constant dense<0.000000e+00> : vector<1x1024xf32>
    %2 = tpu.matmul %0, %1, %cst {dimension_numbers = #tpu.dot_dimension_numbers<[1], [1], [0], [0], [0, 0, 1, 0], [], []>} : vector<1x1536xf32>, vector<1024x1536xf32>, vector<1x1024xf32> -> vector<1x1024xf32>
    %c0_3 = arith.constant 0 : index
    %c0_4 = arith.constant 0 : index
    %3 = vector.load %arg3[%c0_3, %c0_4] : memref<1x1024xf32, #tpu.memory_space<vmem>>, vector<1x1024xf32>
    %4 = arith.addf %2, %3 : vector<1x1024xf32>
    %c0_5 = arith.constant 0 : index
    %c0_6 = arith.constant 0 : index
    %5 = vector.load %arg4[%c0_5, %c0_6] : memref<1x1024xf32, #tpu.memory_space<vmem>>, vector<1x1024xf32>
    tpu.vector_store %arg4[%c0_5, %c0_6], %4 {strides = array<i32>} : memref<1x1024xf32, #tpu.memory_space<vmem>>, vector<1x1024xf32>,
    return
  }
  func.func @transform_0(%arg0: i32) -> (i32, i32) {
    %c0_i32 = arith.constant 0 : i32
    %c0_i32_0 = arith.constant 0 : i32
    %c0_i32_1 = arith.constant 0 : i32
    return %c0_i32, %c0_i32_0 : i32, i32
  }
  func.func @transform_1(%arg0: i32) -> (i32, i32) {
    %c0_i32 = arith.constant 0 : i32
    %c0_i32_0 = arith.constant 0 : i32
    return %arg0, %c0_i32 : i32, i32
  }
  func.func @transform_2(%arg0: i32) -> (i32, i32) {
    %c0_i32 = arith.constant 0 : i32
    %c0_i32_0 = arith.constant 0 : i32
    return %c0_i32, %arg0 : i32, i32
  }
  func.func @transform_3(%arg0: i32) -> (i32, i32) {
    %c0_i32 = arith.constant 0 : i32
    %c0_i32_0 = arith.constant 0 : i32
    return %c0_i32, %arg0 : i32, i32
  }
}

</mosaic_0001>

<bundles_post_ra>
// kernel: tpu_custom_call.1
= control target key start
LH: loop header
LB: loop body
LE: loop exit
PB: predicated region body
PF: predicated region fallthrough
CT: control target
= control target key end

     0   :  { %8 = vsyncpa [#allocation3], 0  ;;  %s3968_s0 = inlined_call_operand.hbm [shape: f32[1,1536], index: 0, kind: input, shape index: {}]   ;;  %s3969_s1 = inlined_call_operand.hbm [shape: f32[1024,1536], index: 1, kind: input, shape index: {}]   ;;  %s3970_s2 = inlined_call_operand.hbm [shape: f32[1,1024], index: 2, kind: input, shape index: {}]   ;;  %s3971_s3 = inlined_call_operand.hbm [shape: f32[1,1024], index: 3, kind: output, shape index: {}]  }
   0x1   :  { %9 = vsyncpa [#allocation6], 0  ;;  %s26_s14 = sshll.u32 %s3969_s1, 4  ;;  %s27_s14 = int_to_ptr.hbm [resolvable:$true] %s26_s14 }
   0x2   :  { %10 = vsyncpa [#allocation4], 0  ;;  %s3720_s15 = smov [#allocation5]   ;;  %s16_s19 = sshll.u32 %s3968_s0, 4  ;;  %s17_s19 = int_to_ptr.hbm [resolvable:$true] %s16_s19 }
   0x3   :  { %s28_s16 = sshll.u32 %s3720_s15, 4  ;;  %s3721_s20 = smov 1536   ;;  %s29_s16 = int_to_ptr.vmem [resolvable:$true] %s28_s16 }
   0x4   :  { %s3722_s21 = smov 96   ;;  %s3723_s22 = smov [#allocation2]  }
   0x5   :  { %34 = dma.hbm_to_vmem [thread:$0]  %s27_s14, 196608, %s29_s16, [#allocation6], %s3721_s20, %s3721_s20, %s3722_s21  }
   0x6   :  { %s18_s23 = sshll.u32 %s3723_s22, 4  ;;  %s40_s26 = sshll.u32 %s3970_s2, 4  ;;  %s19_s23 = int_to_ptr.vmem [resolvable:$true] %s18_s23  ;;  %s41_s26 = int_to_ptr.hbm [resolvable:$true] %s40_s26 }
   0x7   :  { %21 = dma.hbm_to_vmem [thread:$0]  %s17_s19, 192, %s19_s23, [#allocation3]  }
   0x8   :  { %s3724_s1 = smov [#allocation7]  }
   0x9   :  { %s42_s27 = sshll.u32 %s3724_s1, 4  ;;  %s43_s27 = int_to_ptr.vmem [resolvable:$true] %s42_s27 }
   0xa   :  { %45 = dma.hbm_to_vmem [thread:$0]  %s41_s26, 128, %s43_s27, [#allocation6]  }
   0xb   :  { %3714 = dma.done.wait [#allocation3], 192  }
   0xc   :  { %3715 = vsyncadd [#allocation3], 4294967104 }
   0xd   :  { %3716 = dma.done.wait [#allocation6], 196736  }
   0xe   :  { %3717 = vsyncadd [#allocation6], 4294770560  ;;  %v240_v0 = vld [vmem:[#allocation5 + $0x5a0] sm:$0xff]  ;;  %v242_v1 = vld [vmem:[#allocation5 + $0x5b0] sm:$0xff]  ;;  %vm3575_vm0 = vcmask 1040384   ;;  %vm3577_vm1 = vcmask 1042434  }
   0xf   :  { %v241_v2 = vld [vmem:[#allocation5 + $0x5a8] sm:$0xff]  ;;  %1640 = vmatpush.xpose.msra.mxu0 %v240_v0  ;;  %1680 = vmatpush.xpose.msra.mxu2 %v242_v1  ;;  %v243_v3 = vld [vmem:[#allocation5 + $0x5b8] sm:$0xff]  ;;  %v228_v4 = vld [vmem:[#allocation5 + $0x540] sm:$0xff]  ;;  %vm3579_vm2 = vcmask 1041408   ;;  %vm3581_vm3 = vcmask 1044484   ;;  %vm3583_vm4 = vcmask 1046534  }
  0x10   :  { %1660 = vmatpush.xpose.msra.mxu1 %v241_v2  ;;  %1700 = vmatpush.xpose.msra.mxu3 %v243_v3  ;;  %v230_v5 = vld [vmem:[#allocation5 + $0x550] sm:$0xff]  ;;  %v229_v6 = vld [vmem:[#allocation5 + $0x548] sm:$0xff]  ;;  %v231_v7 = vld [vmem:[#allocation5 + $0x558] sm:$0xff]  ;;  %vm3585_vm5 = vcmask 1045508   ;;  %s3725_s0 = smov [#allocation8]   ;;  %s3598_s30 = sshll.u32 %s3971_s3, 4  ;;  %s3599_s30 = int_to_ptr.hbm [resolvable:$true] %s3598_s30 }
  0x11   :  { %v216_v8 = vld [vmem:[#allocation5 + $0x4e0] sm:$0xff]  ;;  %v218_v9 = vld [vmem:[#allocation5 + $0x4f0] sm:$0xff]  ;;  %v217_v10 = vld [vmem:[#allocation5 + $0x4e8] sm:$0xff]  ;;  %s3596_s2 = sshll.u32 %s3725_s0, 4  ;;  %vm3587_vm6 = vcmask 1043456   ;;  %s3597_s2 = int_to_ptr.vmem [resolvable:$true] %s3596_s2 }
  0x12   :  { %v219_v11 = vld [vmem:[#allocation5 + $0x4f8] sm:$0xff]  ;;  %v204_v12 = vld [vmem:[#allocation5 + $0x480] sm:$0xff]  ;;  %v206_v13 = vld [vmem:[#allocation5 + $0x490] sm:$0xff] }
  0x13   :  { %1641 = vmatpush.xpose.msra.mxu0 %v228_v4  ;;  %1681 = vmatpush.xpose.msra.mxu2 %v230_v5  ;;  %v205_v14 = vld [vmem:[#allocation5 + $0x488] sm:$0xff]  ;;  %v207_v15 = vld [vmem:[#allocation5 + $0x498] sm:$0xff]  ;;  %v192_v16 = vld [vmem:[#allocation5 + $0x420] sm:$0xff] }
  0x14   :  { %1661 = vmatpush.xpose.msra.mxu1 %v229_v6  ;;  %1701 = vmatpush.xpose.msra.mxu3 %v231_v7  ;;  %v194_v17 = vld [vmem:[#allocation5 + $0x430] sm:$0xff]  ;;  %v193_v18 = vld [vmem:[#allocation5 + $0x428] sm:$0xff]  ;;  %v195_v19 = vld [vmem:[#allocation5 + $0x438] sm:$0xff] }
  0x15   :  { %v180_v20 = vld [vmem:[#allocation5 + $0x3c0] sm:$0xff]  ;;  %v182_v21 = vld [vmem:[#allocation5 + $0x3d0] sm:$0xff]  ;;  %v181_v22 = vld [vmem:[#allocation5 + $0x3c8] sm:$0xff] }
  0x16   :  { %v183_v23 = vld [vmem:[#allocation5 + $0x3d8] sm:$0xff]  ;;  %v168_v24 = vld [vmem:[#allocation5 + $0x360] sm:$0xff]  ;;  %v170_v25 = vld [vmem:[#allocation5 + $0x370] sm:$0xff] }
  0x17   :  { %1642 = vmatpush.xpose.msra.mxu0 %v216_v8  ;;  %1682 = vmatpush.xpose.msra.mxu2 %v218_v9  ;;  %v169_v26 = vld [vmem:[#allocation5 + $0x368] sm:$0xff]  ;;  %v171_v27 = vld [vmem:[#allocation5 + $0x378] sm:$0xff]  ;;  %v156_v28 = vld [vmem:[#allocation5 + $0x300] sm:$0xff] }
  0x18   :  { %1662 = vmatpush.xpose.msra.mxu1 %v217_v10  ;;  %1702 = vmatpush.xpose.msra.mxu3 %v219_v11  ;;  %v158_v29 = vld [vmem:[#allocation5 + $0x310] sm:$0xff]  ;;  %v157_v30 = vld [vmem:[#allocation5 + $0x308] sm:$0xff]  ;;  %v159_v31 = vld [vmem:[#allocation5 + $0x318] sm:$0xff] }
  0x19   :  { %v144_v32 = vld [vmem:[#allocation5 + $0x2a0] sm:$0xff]  ;;  %v146_v33 = vld [vmem:[#allocation5 + $0x2b0] sm:$0xff]  ;;  %v145_v34 = vld [vmem:[#allocation5 + $0x2a8] sm:$0xff] }
  0x1a   :  { %v147_v35 = vld [vmem:[#allocation5 + $0x2b8] sm:$0xff]  ;;  %v132_v36 = vld [vmem:[#allocation5 + $0x240] sm:$0xff]  ;;  %v134_v37 = vld [vmem:[#allocation5 + $0x250] sm:$0xff] }
  0x1b   :  { %1643 = vmatpush.xpose.msra.mxu0 %v204_v12  ;;  %1683 = vmatpush.xpose.msra.mxu2 %v206_v13  ;;  %v133_v38 = vld [vmem:[#allocation5 + $0x248] sm:$0xff]  ;;  %v135_v39 = vld [vmem:[#allocation5 + $0x258] sm:$0xff]  ;;  %v120_v40 = vld [vmem:[#allocation5 + $0x1e0] sm:$0xff] }
  0x1c   :  { %1663 = vmatpush.xpose.msra.mxu1 %v205_v14  ;;  %1703 = vmatpush.xpose.msra.mxu3 %v207_v15  ;;  %v122_v41 = vld [vmem:[#allocation5 + $0x1f0] sm:$0xff]  ;;  %v121_v42 = vld [vmem:[#allocation5 + $0x1e8] sm:$0xff]  ;;  %v123_v43 = vld [vmem:[#allocation5 + $0x1f8] sm:$0xff] }
  0x1d   :  { %v108_v44 = vld [vmem:[#allocation5 + $0x180] sm:$0xff]  ;;  %v110_v45 = vld [vmem:[#allocation5 + $0x190] sm:$0xff]  ;;  %v109_v46 = vld [vmem:[#allocation5 + $0x188] sm:$0xff] }
  0x1e   :  { %v111_v47 = vld [vmem:[#allocation5 + $0x198] sm:$0xff]  ;;  %v96_v48 = vld [vmem:[#allocation5 + $0x120] sm:$0xff]  ;;  %v98_v49 = vld [vmem:[#allocation5 + $0x130] sm:$0xff] }
  0x1f   :  { %1644 = vmatpush.xpose.msra.mxu0 %v192_v16  ;;  %1684 = vmatpush.xpose.msra.mxu2 %v194_v17  ;;  %v97_v50 = vld [vmem:[#allocation5 + $0x128] sm:$0xff]  ;;  %v99_v51 = vld [vmem:[#allocation5 + $0x138] sm:$0xff]  ;;  %v84_v52 = vld [vmem:[#allocation5 + $0xc0] sm:$0xff] }
  0x20   :  { %1664 = vmatpush.xpose.msra.mxu1 %v193_v18  ;;  %1704 = vmatpush.xpose.msra.mxu3 %v195_v19  ;;  %v86_v53 = vld [vmem:[#allocation5 + $0xd0] sm:$0xff]  ;;  %v85_v54 = vld [vmem:[#allocation5 + $0xc8] sm:$0xff]  ;;  %v87_v55 = vld [vmem:[#allocation5 + $0xd8] sm:$0xff] }
  0x21   :  { %v72_v56 = vld [vmem:[#allocation5 + $0x60] sm:$0xff]  ;;  %v74_v57 = vld [vmem:[#allocation5 + $0x70] sm:$0xff]  ;;  %v73_v58 = vld [vmem:[#allocation5 + $0x68] sm:$0xff] }
  0x22   :  { %v75_v59 = vld [vmem:[#allocation5 + $0x78] sm:$0xff]  ;;  %v60_v60 = vld [vmem:[#allocation5] sm:$0xff]  ;;  %v62_v61 = vld [vmem:[#allocation5 + $0x10] sm:$0xff] }
  0x23   :  { %1645 = vmatpush.xpose.msra.mxu0 %v180_v20  ;;  %1685 = vmatpush.xpose.msra.mxu2 %v182_v21  ;;  %v244_v62 = vld [vmem:[#allocation5 + $0x5c0] sm:$0xff]  ;;  %v246_v63 = vld [vmem:[#allocation5 + $0x5d0] sm:$0xff]  ;;  %v61_v0 = vld [vmem:[#allocation5 + $0x8] sm:$0xff] }
  0x24   :  { %1665 = vmatpush.xpose.msra.mxu1 %v181_v22  ;;  %1705 = vmatpush.xpose.msra.mxu3 %v183_v23  ;;  %v63_v1 = vld [vmem:[#allocation5 + $0x18] sm:$0xff]  ;;  %v245_v2 = vld [vmem:[#allocation5 + $0x5c8] sm:$0xff]  ;;  %v232_v4 = vld [vmem:[#allocation5 + $0x560] sm:$0xff] }
  0x25   :  { %v247_v3 = vld [vmem:[#allocation5 + $0x5d8] sm:$0xff]  ;;  %v234_v5 = vld [vmem:[#allocation5 + $0x570] sm:$0xff]  ;;  %v233_v6 = vld [vmem:[#allocation5 + $0x568] sm:$0xff] }
  0x26   :  { %v235_v7 = vld [vmem:[#allocation5 + $0x578] sm:$0xff]  ;;  %v220_v8 = vld [vmem:[#allocation5 + $0x500] sm:$0xff]  ;;  %v222_v9 = vld [vmem:[#allocation5 + $0x510] sm:$0xff] }
  0x27   :  { %1646 = vmatpush.xpose.msra.mxu0 %v168_v24  ;;  %1686 = vmatpush.xpose.msra.mxu2 %v170_v25  ;;  %v221_v10 = vld [vmem:[#allocation5 + $0x508] sm:$0xff]  ;;  %v223_v11 = vld [vmem:[#allocation5 + $0x518] sm:$0xff]  ;;  %v208_v12 = vld [vmem:[#allocation5 + $0x4a0] sm:$0xff] }
  0x28   :  { %1666 = vmatpush.xpose.msra.mxu1 %v169_v26  ;;  %1706 = vmatpush.xpose.msra.mxu3 %v171_v27  ;;  %v210_v13 = vld [vmem:[#allocation5 + $0x4b0] sm:$0xff]  ;;  %v209_v14 = vld [vmem:[#allocation5 + $0x4a8] sm:$0xff]  ;;  %v211_v15 = vld [vmem:[#allocation5 + $0x4b8] sm:$0xff] }
  0x29   :  { %v196_v16 = vld [vmem:[#allocation5 + $0x440] sm:$0xff]  ;;  %v198_v17 = vld [vmem:[#allocation5 + $0x450] sm:$0xff]  ;;  %v197_v18 = vld [vmem:[#allocation5 + $0x448] sm:$0xff] }
  0x2a   :  { %v199_v19 = vld [vmem:[#allocation5 + $0x458] sm:$0xff]  ;;  %v184_v20 = vld [vmem:[#allocation5 + $0x3e0] sm:$0xff]  ;;  %v186_v21 = vld [vmem:[#allocation5 + $0x3f0] sm:$0xff] }
  0x2b   :  { %1647 = vmatpush.xpose.msra.mxu0 %v156_v28  ;;  %1687 = vmatpush.xpose.msra.mxu2 %v158_v29  ;;  %v185_v22 = vld [vmem:[#allocation5 + $0x3e8] sm:$0xff]  ;;  %v187_v23 = vld [vmem:[#allocation5 + $0x3f8] sm:$0xff]  ;;  %v172_v24 = vld [vmem:[#allocation5 + $0x380] sm:$0xff] }
  0x2c   :  { %1667 = vmatpush.xpose.msra.mxu1 %v157_v30  ;;  %1707 = vmatpush.xpose.msra.mxu3 %v159_v31  ;;  %v174_v25 = vld [vmem:[#allocation5 + $0x390] sm:$0xff]  ;;  %v173_v26 = vld [vmem:[#allocation5 + $0x388] sm:$0xff]  ;;  %v175_v27 = vld [vmem:[#allocation5 + $0x398] sm:$0xff] }
  0x2d   :  { %v160_v28 = vld [vmem:[#allocation5 + $0x320] sm:$0xff]  ;;  %v162_v29 = vld [vmem:[#allocation5 + $0x330] sm:$0xff]  ;;  %v161_v31 = vld [vmem:[#allocation5 + $0x328] sm:$0xff] }
  0x2e   :  { %v3755_v30 = vld [vmem:[#allocation2] sm:$0xff] }
  0x2f   :  { %1648 = vmatpush.xpose.msra.mxu0 %v144_v32  ;;  %1688 = vmatpush.xpose.msra.mxu2 %v146_v33  ;;  %v163_v32 = vld [vmem:[#allocation5 + $0x338] sm:$0xff]  ;;  %v3758_v33 = vperm.slane %v3755_v30, 0 }
  0x30   :  { %1668 = vmatpush.xpose.msra.mxu1 %v145_v34  ;;  %1708 = vmatpush.xpose.msra.mxu3 %v147_v35  ;;  %v3761_v34 = vperm.slane %v3755_v30, 2  ;;  %v148_v35 = vld [vmem:[#allocation5 + $0x2c0] sm:$0xff] }
  0x33   :  { %1649 = vmatpush.xpose.msra.mxu0 %v132_v36  ;;  %1689 = vmatpush.xpose.msra.mxu2 %v134_v37  ;;  %v150_v36 = vld [vmem:[#allocation5 + $0x2d0] sm:$0xff]  ;;  %v3766_v37 = vperm.slane %v3755_v30, 1 }
  0x34   :  { %1669 = vmatpush.xpose.msra.mxu1 %v133_v38  ;;  %1709 = vmatpush.xpose.msra.mxu3 %v135_v39  ;;  %v3769_v38 = vperm.slane %v3755_v30, 3  ;;  %v149_v39 = vld [vmem:[#allocation5 + $0x2c8] sm:$0xff] }
  0x37   :  { %1650 = vmatpush.xpose.msra.mxu0 %v120_v40  ;;  %1690 = vmatpush.xpose.msra.mxu2 %v122_v41  ;;  %v151_v40 = vld [vmem:[#allocation5 + $0x2d8] sm:$0xff]  ;;  %v136_v41 = vld [vmem:[#allocation5 + $0x260] sm:$0xff] }
  0x38   :  { %1670 = vmatpush.xpose.msra.mxu1 %v121_v42  ;;  %1710 = vmatpush.xpose.msra.mxu3 %v123_v43  ;;  %v138_v42 = vld [vmem:[#allocation5 + $0x270] sm:$0xff]  ;;  %v137_v43 = vld [vmem:[#allocation5 + $0x268] sm:$0xff] }
  0x3b   :  { %1651 = vmatpush.xpose.msra.mxu0 %v108_v44  ;;  %1691 = vmatpush.xpose.msra.mxu2 %v110_v45  ;;  %v139_v44 = vld [vmem:[#allocation5 + $0x278] sm:$0xff]  ;;  %v124_v45 = vld [vmem:[#allocation5 + $0x200] sm:$0xff] }
  0x3c   :  { %1671 = vmatpush.xpose.msra.mxu1 %v109_v46  ;;  %1711 = vmatpush.xpose.msra.mxu3 %v111_v47  ;;  %v126_v46 = vld [vmem:[#allocation5 + $0x210] sm:$0xff]  ;;  %v125_v47 = vld [vmem:[#allocation5 + $0x208] sm:$0xff] }
  0x3f   :  { %1652 = vmatpush.xpose.msra.mxu0 %v96_v48  ;;  %1692 = vmatpush.xpose.msra.mxu2 %v98_v49  ;;  %v127_v48 = vld [vmem:[#allocation5 + $0x218] sm:$0xff]  ;;  %v112_v49 = vld [vmem:[#allocation5 + $0x1a0] sm:$0xff] }
  0x40   :  { %1672 = vmatpush.xpose.msra.mxu1 %v97_v50  ;;  %1712 = vmatpush.xpose.msra.mxu3 %v99_v51  ;;  %v114_v50 = vld [vmem:[#allocation5 + $0x1b0] sm:$0xff]  ;;  %v113_v51 = vld [vmem:[#allocation5 + $0x1a8] sm:$0xff] }
  0x43   :  { %1653 = vmatpush.xpose.msra.mxu0 %v84_v52  ;;  %1693 = vmatpush.xpose.msra.mxu2 %v86_v53  ;;  %v115_v52 = vld [vmem:[#allocation5 + $0x1b8] sm:$0xff]  ;;  %v100_v53 = vld [vmem:[#allocation5 + $0x140] sm:$0xff] }
  0x44   :  { %1673 = vmatpush.xpose.msra.mxu1 %v85_v54  ;;  %1713 = vmatpush.xpose.msra.mxu3 %v87_v55  ;;  %v102_v54 = vld [vmem:[#allocation5 + $0x150] sm:$0xff]  ;;  %v101_v55 = vld [vmem:[#allocation5 + $0x148] sm:$0xff] }
  0x47   :  { %1654 = vmatpush.xpose.msra.mxu0 %v72_v56  ;;  %1694 = vmatpush.xpose.msra.mxu2 %v74_v57  ;;  %v103_v56 = vld [vmem:[#allocation5 + $0x158] sm:$0xff]  ;;  %v88_v57 = vld [vmem:[#allocation5 + $0xe0] sm:$0xff] }
  0x48   :  { %1674 = vmatpush.xpose.msra.mxu1 %v73_v58  ;;  %1714 = vmatpush.xpose.msra.mxu3 %v75_v59  ;;  %v90_v58 = vld [vmem:[#allocation5 + $0xf0] sm:$0xff]  ;;  %v89_v59 = vld [vmem:[#allocation5 + $0xe8] sm:$0xff] }
  0x4b   :  { %1655 = vmatpush.xpose.msra.mxu0 %v60_v60  ;;  %1695 = vmatpush.xpose.msra.mxu2 %v62_v61  ;;  %v91_v60 = vld [vmem:[#allocation5 + $0xf8] sm:$0xff]  ;;  %v76_v61 = vld [vmem:[#allocation5 + $0x80] sm:$0xff] }
  0x4c   :  { %1675 = vmatpush.xpose.msra.mxu1 %v61_v0  ;;  %1715 = vmatpush.xpose.msra.mxu3 %v63_v1  ;;  %v79_v0 = vld [vmem:[#allocation5 + $0x98] sm:$0xff]  ;;  %v64_v1 = vld [vmem:[#allocation5 + $0x20] sm:$0xff] }
  0x4e   :  { %1656 = vmatmul.f32.vlgmr.msra.gmra.mxu0 %v3758_v33  ;;  %1696 = vmatmul.f32.vlgmr.msra.gmra.mxu2 %v3761_v34 }
  0x4f   :  { %1720 = vmatpush.xpose.msrb.mxu0 %v244_v62  ;;  %1760 = vmatpush.xpose.msrb.mxu2 %v246_v63  ;;  %v78_v62 = vld [vmem:[#allocation5 + $0x90] sm:$0xff]  ;;  %v77_v63 = vld [vmem:[#allocation5 + $0x88] sm:$0xff] }
  0x50   :  { %1740 = vmatpush.xpose.msrb.mxu1 %v245_v2  ;;  %1780 = vmatpush.xpose.msrb.mxu3 %v247_v3  ;;  %v66_v2 = vld [vmem:[#allocation5 + $0x30] sm:$0xff]  ;;  %v248_v3 = vld [vmem:[#allocation5 + $0x5e0] sm:$0xff] }
  0x51   :  { %1676 = vmatmul.f32.vlgmr.msra.gmra.mxu1 %v3766_v37  ;;  %1716 = vmatmul.f32.vlgmr.msra.gmra.mxu3 %v3769_v38 }
  0x53   :  { %1721 = vmatpush.xpose.msrb.mxu0 %v232_v4  ;;  %1761 = vmatpush.xpose.msrb.mxu2 %v234_v5  ;;  %v250_v4 = vld [vmem:[#allocation5 + $0x5f0] sm:$0xff]  ;;  %v65_v5 = vld [vmem:[#allocation5 + $0x28] sm:$0xff] }
  0x54   :  { %1741 = vmatpush.xpose.msrb.mxu1 %v233_v6  ;;  %1781 = vmatpush.xpose.msrb.mxu3 %v235_v7  ;;  %v67_v6 = vld [vmem:[#allocation5 + $0x38] sm:$0xff]  ;;  %v249_v7 = vld [vmem:[#allocation5 + $0x5e8] sm:$0xff] }
  0x57   :  { %1722 = vmatpush.xpose.msrb.mxu0 %v220_v8  ;;  %1762 = vmatpush.xpose.msrb.mxu2 %v222_v9  ;;  %v251_v8 = vld [vmem:[#allocation5 + $0x5f8] sm:$0xff]  ;;  %v3774_v9 = vperm.slane %v3755_v30, 6 }
  0x58   :  { %1742 = vmatpush.xpose.msrb.mxu1 %v221_v10  ;;  %1782 = vmatpush.xpose.msrb.mxu3 %v223_v11  ;;  %v3777_v10 = vperm.slane %v3755_v30, 4  ;;  %v236_v11 = vld [vmem:[#allocation5 + $0x580] sm:$0xff] }
  0x5b   :  { %1723 = vmatpush.xpose.msrb.mxu0 %v208_v12  ;;  %1763 = vmatpush.xpose.msrb.mxu2 %v210_v13  ;;  %v238_v12 = vld [vmem:[#allocation5 + $0x590] sm:$0xff]  ;;  %v3780_v13 = vperm.slane %v3755_v30, 7 }
  0x5c   :  { %1743 = vmatpush.xpose.msrb.mxu1 %v209_v14  ;;  %1783 = vmatpush.xpose.msrb.mxu3 %v211_v15  ;;  %v3783_v14 = vperm.slane %v3755_v30, 5  ;;  %v237_v15 = vld [vmem:[#allocation5 + $0x588] sm:$0xff]  ;;  %v190_v30 = vld [vmem:[#allocation5 + $0x410] sm:$0xff] }
  0x5f   :  { %1724 = vmatpush.xpose.msrb.mxu0 %v196_v16  ;;  %1764 = vmatpush.xpose.msrb.mxu2 %v198_v17  ;;  %v239_v16 = vld [vmem:[#allocation5 + $0x598] sm:$0xff]  ;;  %v224_v17 = vld [vmem:[#allocation5 + $0x520] sm:$0xff] }
  0x60   :  { %1744 = vmatpush.xpose.msrb.mxu1 %v197_v18  ;;  %1784 = vmatpush.xpose.msrb.mxu3 %v199_v19  ;;  %v226_v18 = vld [vmem:[#allocation5 + $0x530] sm:$0xff]  ;;  %v225_v19 = vld [vmem:[#allocation5 + $0x528] sm:$0xff] }
  0x63   :  { %1725 = vmatpush.xpose.msrb.mxu0 %v184_v20  ;;  %1765 = vmatpush.xpose.msrb.mxu2 %v186_v21  ;;  %v227_v20 = vld [vmem:[#allocation5 + $0x538] sm:$0xff]  ;;  %v212_v21 = vld [vmem:[#allocation5 + $0x4c0] sm:$0xff] }
  0x64   :  { %1745 = vmatpush.xpose.msrb.mxu1 %v185_v22  ;;  %1785 = vmatpush.xpose.msrb.mxu3 %v187_v23  ;;  %v214_v22 = vld [vmem:[#allocation5 + $0x4d0] sm:$0xff]  ;;  %v213_v23 = vld [vmem:[#allocation5 + $0x4c8] sm:$0xff] }
  0x67   :  { %1726 = vmatpush.xpose.msrb.mxu0 %v172_v24  ;;  %1766 = vmatpush.xpose.msrb.mxu2 %v174_v25  ;;  %v215_v24 = vld [vmem:[#allocation5 + $0x4d8] sm:$0xff]  ;;  %v200_v25 = vld [vmem:[#allocation5 + $0x460] sm:$0xff] }
  0x68   :  { %1746 = vmatpush.xpose.msrb.mxu1 %v173_v26  ;;  %1786 = vmatpush.xpose.msrb.mxu3 %v175_v27  ;;  %v202_v26 = vld [vmem:[#allocation5 + $0x470] sm:$0xff]  ;;  %v201_v27 = vld [vmem:[#allocation5 + $0x468] sm:$0xff] }
  0x6b   :  { %1727 = vmatpush.xpose.msrb.mxu0 %v160_v28  ;;  %1767 = vmatpush.xpose.msrb.mxu2 %v162_v29  ;;  %v203_v28 = vld [vmem:[#allocation5 + $0x478] sm:$0xff]  ;;  %v188_v29 = vld [vmem:[#allocation5 + $0x400] sm:$0xff] }
  0x6c   :  { %1747 = vmatpush.xpose.msrb.mxu1 %v161_v31  ;;  %1787 = vmatpush.xpose.msrb.mxu3 %v163_v32  ;;  %v189_v31 = vld [vmem:[#allocation5 + $0x408] sm:$0xff]  ;;  %v191_v32 = vld [vmem:[#allocation5 + $0x418] sm:$0xff] }
  0x6f   :  { %1728 = vmatpush.xpose.msrb.mxu0 %v148_v35  ;;  %1768 = vmatpush.xpose.msrb.mxu2 %v150_v36  ;;  %v176_v35 = vld [vmem:[#allocation5 + $0x3a0] sm:$0xff]  ;;  %v178_v36 = vld [vmem:[#allocation5 + $0x3b0] sm:$0xff] }
  0x70   :  { %1748 = vmatpush.xpose.msrb.mxu1 %v149_v39  ;;  %1788 = vmatpush.xpose.msrb.mxu3 %v151_v40  ;;  %v177_v39 = vld [vmem:[#allocation5 + $0x3a8] sm:$0xff]  ;;  %v179_v40 = vld [vmem:[#allocation5 + $0x3b8] sm:$0xff] }
  0x73   :  { %1729 = vmatpush.xpose.msrb.mxu0 %v136_v41  ;;  %1769 = vmatpush.xpose.msrb.mxu2 %v138_v42  ;;  %v164_v41 = vld [vmem:[#allocation5 + $0x340] sm:$0xff]  ;;  %v166_v42 = vld [vmem:[#allocation5 + $0x350] sm:$0xff] }
  0x74   :  { %1749 = vmatpush.xpose.msrb.mxu1 %v137_v43  ;;  %1789 = vmatpush.xpose.msrb.mxu3 %v139_v44  ;;  %v165_v43 = vld [vmem:[#allocation5 + $0x348] sm:$0xff]  ;;  %v167_v44 = vld [vmem:[#allocation5 + $0x358] sm:$0xff] }
  0x77   :  { %1730 = vmatpush.xpose.msrb.mxu0 %v124_v45  ;;  %1770 = vmatpush.xpose.msrb.mxu2 %v126_v46  ;;  %v152_v45 = vld [vmem:[#allocation5 + $0x2e0] sm:$0xff]  ;;  %v154_v46 = vld [vmem:[#allocation5 + $0x2f0] sm:$0xff] }
  0x78   :  { %1750 = vmatpush.xpose.msrb.mxu1 %v125_v47  ;;  %1790 = vmatpush.xpose.msrb.mxu3 %v127_v48  ;;  %v153_v47 = vld [vmem:[#allocation5 + $0x2e8] sm:$0xff]  ;;  %v155_v48 = vld [vmem:[#allocation5 + $0x2f8] sm:$0xff] }
  0x7b   :  { %1731 = vmatpush.xpose.msrb.mxu0 %v112_v49  ;;  %1771 = vmatpush.xpose.msrb.mxu2 %v114_v50  ;;  %v140_v49 = vld [vmem:[#allocation5 + $0x280] sm:$0xff]  ;;  %v142_v50 = vld [vmem:[#allocation5 + $0x290] sm:$0xff] }
  0x7c   :  { %1751 = vmatpush.xpose.msrb.mxu1 %v113_v51  ;;  %1791 = vmatpush.xpose.msrb.mxu3 %v115_v52  ;;  %v141_v51 = vld [vmem:[#allocation5 + $0x288] sm:$0xff]  ;;  %v143_v52 = vld [vmem:[#allocation5 + $0x298] sm:$0xff] }
  0x7f   :  { %1732 = vmatpush.xpose.msrb.mxu0 %v100_v53  ;;  %1772 = vmatpush.xpose.msrb.mxu2 %v102_v54  ;;  %v128_v53 = vld [vmem:[#allocation5 + $0x220] sm:$0xff]  ;;  %v130_v54 = vld [vmem:[#allocation5 + $0x230] sm:$0xff] }
  0x80   :  { %1752 = vmatpush.xpose.msrb.mxu1 %v101_v55  ;;  %1792 = vmatpush.xpose.msrb.mxu3 %v103_v56  ;;  %v129_v55 = vld [vmem:[#allocation5 + $0x228] sm:$0xff]  ;;  %v131_v56 = vld [vmem:[#allocation5 + $0x238] sm:$0xff] }
  0x83   :  { %1733 = vmatpush.xpose.msrb.mxu0 %v88_v57  ;;  %1773 = vmatpush.xpose.msrb.mxu2 %v90_v58  ;;  %v116_v57 = vld [vmem:[#allocation5 + $0x1c0] sm:$0xff]  ;;  %v118_v58 = vld [vmem:[#allocation5 + $0x1d0] sm:$0xff] }
  0x84   :  { %1753 = vmatpush.xpose.msrb.mxu1 %v89_v59  ;;  %1793 = vmatpush.xpose.msrb.mxu3 %v91_v60  ;;  %v117_v59 = vld [vmem:[#allocation5 + $0x1c8] sm:$0xff]  ;;  %v119_v60 = vld [vmem:[#allocation5 + $0x1d8] sm:$0xff] }
  0x87   :  { %1734 = vmatpush.xpose.msrb.mxu0 %v76_v61  ;;  %1774 = vmatpush.xpose.msrb.mxu2 %v78_v62  ;;  %v104_v61 = vld [vmem:[#allocation5 + $0x160] sm:$0xff]  ;;  %v106_v62 = vld [vmem:[#allocation5 + $0x170] sm:$0xff] }
  0x88   :  { %1754 = vmatpush.xpose.msrb.mxu1 %v77_v63  ;;  %1794 = vmatpush.xpose.msrb.mxu3 %v79_v0  ;;  %v105_v63 = vld [vmem:[#allocation5 + $0x168] sm:$0xff]  ;;  %v107_v0 = vld [vmem:[#allocation5 + $0x178] sm:$0xff] }
  0x8b   :  { %1735 = vmatpush.xpose.msrb.mxu0 %v64_v1  ;;  %1775 = vmatpush.xpose.msrb.mxu2 %v66_v2  ;;  %v92_v1 = vld [vmem:[#allocation5 + $0x100] sm:$0xff]  ;;  %v94_v2 = vld [vmem:[#allocation5 + $0x110] sm:$0xff] }
  0x8c   :  { %1755 = vmatpush.xpose.msrb.mxu1 %v65_v5  ;;  %1795 = vmatpush.xpose.msrb.mxu3 %v67_v6  ;;  %v80_v5 = vld [vmem:[#allocation5 + $0xa0] sm:$0xff]  ;;  %v82_v6 = vld [vmem:[#allocation5 + $0xb0] sm:$0xff] }
  0x8e   :  { %1776 = vmatmul.f32.vlgmr.msrb.gmra.mxu2 %v3774_v9  ;;  %1736 = vmatmul.f32.vlgmr.msrb.gmra.mxu0 %v3777_v10 }
  0x8f   :  { %1800 = vmatpush.xpose.msra.mxu0 %v248_v3  ;;  %1840 = vmatpush.xpose.msra.mxu2 %v250_v4  ;;  %v93_v3 = vld [vmem:[#allocation5 + $0x108] sm:$0xff]  ;;  %v95_v4 = vld [vmem:[#allocation5 + $0x118] sm:$0xff] }
  0x90   :  { %1820 = vmatpush.xpose.msra.mxu1 %v249_v7  ;;  %1860 = vmatpush.xpose.msra.mxu3 %v251_v8  ;;  %v81_v7 = vld [vmem:[#allocation5 + $0xa8] sm:$0xff]  ;;  %v83_v8 = vld [vmem:[#allocation5 + $0xb8] sm:$0xff] }
  0x91   :  { %1796 = vmatmul.f32.vlgmr.msrb.gmra.mxu3 %v3780_v13  ;;  %1756 = vmatmul.f32.vlgmr.msrb.gmra.mxu1 %v3783_v14 }
  0x93   :  { %1801 = vmatpush.xpose.msra.mxu0 %v236_v11  ;;  %1841 = vmatpush.xpose.msra.mxu2 %v238_v12  ;;  %v59_v11 = vld [vmem:[#allocation2 + $0x8] sm:$0xf]  ;;  %v68_v12 = vld [vmem:[#allocation5 + $0x40] sm:$0xff] }
  0x94   :  { %1821 = vmatpush.xpose.msra.mxu1 %v237_v15  ;;  %1861 = vmatpush.xpose.msra.mxu3 %v239_v16  ;;  %v70_v15 = vld [vmem:[#allocation5 + $0x50] sm:$0xff]  ;;  %v432_v16 = vld [vmem:[#allocation5 + $0xba0] sm:$0xff] }
  0x97   :  { %1802 = vmatpush.xpose.msra.mxu0 %v224_v17  ;;  %1842 = vmatpush.xpose.msra.mxu2 %v226_v18  ;;  %v434_v17 = vld [vmem:[#allocation5 + $0xbb0] sm:$0xff]  ;;  %v69_v18 = vld [vmem:[#allocation5 + $0x48] sm:$0xff] }
  0x98   :  { %1822 = vmatpush.xpose.msra.mxu1 %v225_v19  ;;  %1862 = vmatpush.xpose.msra.mxu3 %v227_v20  ;;  %v71_v19 = vld [vmem:[#allocation5 + $0x58] sm:$0xff]  ;;  %v3789_v20 = vperm.slane %v59_v11, 0 }
  0x9b   :  { %1803 = vmatpush.xpose.msra.mxu0 %v212_v21  ;;  %1843 = vmatpush.xpose.msra.mxu2 %v214_v22  ;;  %v3791_v21 = vperm.slane %v59_v11, 2  ;;  %v433_v22 = vld [vmem:[#allocation5 + $0xba8] sm:$0xff] }
  0x9c   :  { %1823 = vmatpush.xpose.msra.mxu1 %v213_v23  ;;  %1863 = vmatpush.xpose.msra.mxu3 %v215_v24  ;;  %v435_v23 = vld [vmem:[#allocation5 + $0xbb8] sm:$0xff]  ;;  %v3793_v24 = vperm.slane %v59_v11, 1 }
  0x9f   :  { %1804 = vmatpush.xpose.msra.mxu0 %v200_v25  ;;  %1844 = vmatpush.xpose.msra.mxu2 %v202_v26  ;;  %v3795_v25 = vperm.slane %v59_v11, 3  ;;  %v420_v26 = vld [vmem:[#allocation5 + $0xb40] sm:$0xff] }
  0xa0   :  { %1824 = vmatpush.xpose.msra.mxu1 %v201_v27  ;;  %1864 = vmatpush.xpose.msra.mxu3 %v203_v28  ;;  %v422_v27 = vld [vmem:[#allocation5 + $0xb50] sm:$0xff]  ;;  %v421_v28 = vld [vmem:[#allocation5 + $0xb48] sm:$0xff] }
  0xa3   :  { %1805 = vmatpush.xpose.msra.mxu0 %v188_v29  ;;  %1845 = vmatpush.xpose.msra.mxu2 %v190_v30  ;;  %v423_v29 = vld [vmem:[#allocation5 + $0xb58] sm:$0xff]  ;;  %v408_v30 = vld [vmem:[#allocation5 + $0xae0] sm:$0xff] }
  0xa4   :  { %1825 = vmatpush.xpose.msra.mxu1 %v189_v31  ;;  %1865 = vmatpush.xpose.msra.mxu3 %v191_v32  ;;  %v410_v31 = vld [vmem:[#allocation5 + $0xaf0] sm:$0xff]  ;;  %v409_v32 = vld [vmem:[#allocation5 + $0xae8] sm:$0xff] }
  0xa7   :  { %1806 = vmatpush.xpose.msra.mxu0 %v176_v35  ;;  %1846 = vmatpush.xpose.msra.mxu2 %v178_v36  ;;  %v411_v35 = vld [vmem:[#allocation5 + $0xaf8] sm:$0xff]  ;;  %v396_v36 = vld [vmem:[#allocation5 + $0xa80] sm:$0xff] }
  0xa8   :  { %1826 = vmatpush.xpose.msra.mxu1 %v177_v39  ;;  %1866 = vmatpush.xpose.msra.mxu3 %v179_v40  ;;  %v398_v39 = vld [vmem:[#allocation5 + $0xa90] sm:$0xff]  ;;  %v397_v40 = vld [vmem:[#allocation5 + $0xa88] sm:$0xff] }
  0xab   :  { %1807 = vmatpush.xpose.msra.mxu0 %v164_v41  ;;  %1847 = vmatpush.xpose.msra.mxu2 %v166_v42  ;;  %v399_v41 = vld [vmem:[#allocation5 + $0xa98] sm:$0xff]  ;;  %v384_v42 = vld [vmem:[#allocation5 + $0xa20] sm:$0xff] }
  0xac   :  { %1827 = vmatpush.xpose.msra.mxu1 %v165_v43  ;;  %1867 = vmatpush.xpose.msra.mxu3 %v167_v44  ;;  %v386_v43 = vld [vmem:[#allocation5 + $0xa30] sm:$0xff]  ;;  %v385_v44 = vld [vmem:[#allocation5 + $0xa28] sm:$0xff] }
  0xaf   :  { %1808 = vmatpush.xpose.msra.mxu0 %v152_v45  ;;  %1848 = vmatpush.xpose.msra.mxu2 %v154_v46  ;;  %v387_v45 = vld [vmem:[#allocation5 + $0xa38] sm:$0xff]  ;;  %v372_v46 = vld [vmem:[#allocation5 + $0x9c0] sm:$0xff] }
  0xb0   :  { %1828 = vmatpush.xpose.msra.mxu1 %v153_v47  ;;  %1868 = vmatpush.xpose.msra.mxu3 %v155_v48  ;;  %v374_v47 = vld [vmem:[#allocation5 + $0x9d0] sm:$0xff]  ;;  %v373_v48 = vld [vmem:[#allocation5 + $0x9c8] sm:$0xff] }
  0xb3   :  { %1809 = vmatpush.xpose.msra.mxu0 %v140_v49  ;;  %1849 = vmatpush.xpose.msra.mxu2 %v142_v50  ;;  %v375_v49 = vld [vmem:[#allocation5 + $0x9d8] sm:$0xff]  ;;  %v360_v50 = vld [vmem:[#allocation5 + $0x960] sm:$0xff] }
  0xb4   :  { %1829 = vmatpush.xpose.msra.mxu1 %v141_v51  ;;  %1869 = vmatpush.xpose.msra.mxu3 %v143_v52  ;;  %v362_v51 = vld [vmem:[#allocation5 + $0x970] sm:$0xff]  ;;  %v361_v52 = vld [vmem:[#allocation5 + $0x968] sm:$0xff] }
  0xb7   :  { %1810 = vmatpush.xpose.msra.mxu0 %v128_v53  ;;  %1850 = vmatpush.xpose.msra.mxu2 %v130_v54  ;;  %v363_v53 = vld [vmem:[#allocation5 + $0x978] sm:$0xff]  ;;  %v348_v54 = vld [vmem:[#allocation5 + $0x900] sm:$0xff] }
  0xb8   :  { %1830 = vmatpush.xpose.msra.mxu1 %v129_v55  ;;  %1870 = vmatpush.xpose.msra.mxu3 %v131_v56  ;;  %v350_v55 = vld [vmem:[#allocation5 + $0x910] sm:$0xff]  ;;  %v349_v56 = vld [vmem:[#allocation5 + $0x908] sm:$0xff] }
  0xbb   :  { %1811 = vmatpush.xpose.msra.mxu0 %v116_v57  ;;  %1851 = vmatpush.xpose.msra.mxu2 %v118_v58  ;;  %v351_v57 = vld [vmem:[#allocation5 + $0x918] sm:$0xff]  ;;  %v336_v58 = vld [vmem:[#allocation5 + $0x8a0] sm:$0xff] }
  0xbc   :  { %1831 = vmatpush.xpose.msra.mxu1 %v117_v59  ;;  %1871 = vmatpush.xpose.msra.mxu3 %v119_v60  ;;  %v338_v59 = vld [vmem:[#allocation5 + $0x8b0] sm:$0xff]  ;;  %v337_v60 = vld [vmem:[#allocation5 + $0x8a8] sm:$0xff] }
  0xbf   :  { %1812 = vmatpush.xpose.msra.mxu0 %v104_v61  ;;  %1852 = vmatpush.xpose.msra.mxu2 %v106_v62  ;;  %v339_v61 = vld [vmem:[#allocation5 + $0x8b8] sm:$0xff]  ;;  %v3801_v62 = vld [vmem:[#allocation7] sm:$0xff] }
  0xc0   :  { %1832 = vmatpush.xpose.msra.mxu1 %v105_v63  ;;  %1872 = vmatpush.xpose.msra.mxu3 %v107_v0  ;;  %v324_v63 = vld [vmem:[#allocation5 + $0x840] sm:$0xff]  ;;  %v326_v0 = vld [vmem:[#allocation5 + $0x850] sm:$0xff] }
  0xc3   :  { %1813 = vmatpush.xpose.msra.mxu0 %v92_v1  ;;  %1853 = vmatpush.xpose.msra.mxu2 %v94_v2  ;;  %v1624_v1 = vperm.slane %v3801_v62, 0 }
  0xc4   :  { %1833 = vmatpush.xpose.msra.mxu1 %v93_v3  ;;  %1873 = vmatpush.xpose.msra.mxu3 %v95_v4  ;;  %v325_v3 = vld [vmem:[#allocation5 + $0x848] sm:$0xff]  ;;  %v327_v4 = vld [vmem:[#allocation5 + $0x858] sm:$0xff] }
  0xc7   :  { %1814 = vmatpush.xpose.msra.mxu0 %v80_v5  ;;  %1854 = vmatpush.xpose.msra.mxu2 %v82_v6 }
  0xc8   :  { %1834 = vmatpush.xpose.msra.mxu1 %v81_v7  ;;  %1874 = vmatpush.xpose.msra.mxu3 %v83_v8  ;;  %v312_v7 = vld [vmem:[#allocation5 + $0x7e0] sm:$0xff]  ;;  %v314_v8 = vld [vmem:[#allocation5 + $0x7f0] sm:$0xff] }
  0xcb   :  { %1815 = vmatpush.xpose.msra.mxu0 %v68_v12  ;;  %1855 = vmatpush.xpose.msra.mxu2 %v70_v15  ;;  %v1657_v2 = vpop.f32.mrf.mxu0  ;;  %v313_v15 = vld [vmem:[#allocation5 + $0x7e8] sm:$0xff] }
  0xcc   :  { %1835 = vmatpush.xpose.msra.mxu1 %v69_v18  ;;  %1875 = vmatpush.xpose.msra.mxu3 %v71_v19  ;;  %v1658_v5 = vadd.f32 %v1657_v2, %v1624_v1  ;;  %v300_v19 = vld [vmem:[#allocation5 + $0x780] sm:$0xff]  ;;  %v402_v2 = vld [vmem:[#allocation5 + $0xab0] sm:$0xff] }
  0xcd   :  { %v400_v1 = vld [vmem:[#allocation5 + $0xaa0] sm:$0xff] }
  0xce   :  { %1816 = vmatmul.f32.vlgmr.msra.gmra.mxu0 %v3789_v20  ;;  %1856 = vmatmul.f32.vlgmr.msra.gmra.mxu2 %v3791_v21  ;;  %v1677_v6 = vpop.f32.mrf.mxu1 }
  0xcf   :  { %1880 = vmatpush.xpose.msrb.mxu0 %v432_v16  ;;  %1920 = vmatpush.xpose.msrb.mxu2 %v434_v17  ;;  %v1678_v11 = vadd.f32 %v1677_v6, %v1658_v5  ;;  %v315_v16 = vld [vmem:[#allocation5 + $0x7f8] sm:$0xff] }
  0xd0   :  { %1900 = vmatpush.xpose.msrb.mxu1 %v433_v22  ;;  %1940 = vmatpush.xpose.msrb.mxu3 %v435_v23  ;;  %v302_v22 = vld [vmem:[#allocation5 + $0x790] sm:$0xff] }
  0xd1   :  { %1836 = vmatmul.f32.vlgmr.msra.gmra.mxu1 %v3793_v24  ;;  %1876 = vmatmul.f32.vlgmr.msra.gmra.mxu3 %v3795_v25  ;;  %v1697_v12 = vpop.f32.mrf.mxu2 }
  0xd2   :  { %v1698_v17 = vadd.f32 %v1697_v12, %v1678_v11 }
  0xd3   :  { %1881 = vmatpush.xpose.msrb.mxu0 %v420_v26  ;;  %1921 = vmatpush.xpose.msrb.mxu2 %v422_v27  ;;  %v301_v26 = vld [vmem:[#allocation5 + $0x788] sm:$0xff]  ;;  %v303_v27 = vld [vmem:[#allocation5 + $0x798] sm:$0xff] }
  0xd4   :  { %1901 = vmatpush.xpose.msrb.mxu1 %v421_v28  ;;  %1941 = vmatpush.xpose.msrb.mxu3 %v423_v29  ;;  %v1717_v18 = vpop.f32.mrf.mxu3  ;;  %v288_v28 = vld [vmem:[#allocation5 + $0x720] sm:$0xff]  ;;  %v290_v29 = vld [vmem:[#allocation5 + $0x730] sm:$0xff] }
  0xd5   :  { %v3804_v23 = vadd.f32 %v1717_v18, %v1698_v17  ;;  %v376_v17 = vld [vmem:[#allocation5 + $0x9e0] sm:$0xff]  ;;  %v378_v18 = vld [vmem:[#allocation5 + $0x9f0] sm:$0xff] }
  0xd7   :  { %1882 = vmatpush.xpose.msrb.mxu0 %v408_v30  ;;  %1922 = vmatpush.xpose.msrb.mxu2 %v410_v31  ;;  %v289_v30 = vld [vmem:[#allocation5 + $0x728] sm:$0xff]  ;;  %v291_v31 = vld [vmem:[#allocation5 + $0x738] sm:$0xff] }
  0xd8   :  { %1902 = vmatpush.xpose.msrb.mxu1 %v409_v32  ;;  %1942 = vmatpush.xpose.msrb.mxu3 %v411_v35  ;;  %v276_v32 = vld [vmem:[#allocation5 + $0x6c0] sm:$0xff]  ;;  %v278_v35 = vld [vmem:[#allocation5 + $0x6d0] sm:$0xff] }
  0xdb   :  { %1883 = vmatpush.xpose.msrb.mxu0 %v396_v36  ;;  %1923 = vmatpush.xpose.msrb.mxu2 %v398_v39  ;;  %v277_v36 = vld [vmem:[#allocation5 + $0x6c8] sm:$0xff]  ;;  %v279_v39 = vld [vmem:[#allocation5 + $0x6d8] sm:$0xff] }
  0xdc   :  { %1903 = vmatpush.xpose.msrb.mxu1 %v397_v40  ;;  %1943 = vmatpush.xpose.msrb.mxu3 %v399_v41  ;;  %v264_v40 = vld [vmem:[#allocation5 + $0x660] sm:$0xff]  ;;  %v266_v41 = vld [vmem:[#allocation5 + $0x670] sm:$0xff] }
  0xdf   :  { %1884 = vmatpush.xpose.msrb.mxu0 %v384_v42  ;;  %1924 = vmatpush.xpose.msrb.mxu2 %v386_v43  ;;  %v265_v42 = vld [vmem:[#allocation5 + $0x668] sm:$0xff]  ;;  %v267_v43 = vld [vmem:[#allocation5 + $0x678] sm:$0xff] }
  0xe0   :  { %1904 = vmatpush.xpose.msrb.mxu1 %v385_v44  ;;  %1944 = vmatpush.xpose.msrb.mxu3 %v387_v45  ;;  %v252_v44 = vld [vmem:[#allocation5 + $0x600] sm:$0xff]  ;;  %v254_v45 = vld [vmem:[#allocation5 + $0x610] sm:$0xff] }
  0xe3   :  { %1885 = vmatpush.xpose.msrb.mxu0 %v372_v46  ;;  %1925 = vmatpush.xpose.msrb.mxu2 %v374_v47  ;;  %v436_v46 = vld [vmem:[#allocation5 + $0xbc0] sm:$0xff]  ;;  %v438_v47 = vld [vmem:[#allocation5 + $0xbd0] sm:$0xff] }
  0xe4   :  { %1905 = vmatpush.xpose.msrb.mxu1 %v373_v48  ;;  %1945 = vmatpush.xpose.msrb.mxu3 %v375_v49  ;;  %v253_v48 = vld [vmem:[#allocation5 + $0x608] sm:$0xff]  ;;  %v255_v49 = vld [vmem:[#allocation5 + $0x618] sm:$0xff] }
  0xe7   :  { %1886 = vmatpush.xpose.msrb.mxu0 %v360_v50  ;;  %1926 = vmatpush.xpose.msrb.mxu2 %v362_v51  ;;  %v437_v50 = vld [vmem:[#allocation5 + $0xbc8] sm:$0xff]  ;;  %v439_v51 = vld [vmem:[#allocation5 + $0xbd8] sm:$0xff] }
  0xe8   :  { %1906 = vmatpush.xpose.msrb.mxu1 %v361_v52  ;;  %1946 = vmatpush.xpose.msrb.mxu3 %v363_v53  ;;  %v424_v52 = vld [vmem:[#allocation5 + $0xb60] sm:$0xff]  ;;  %v426_v53 = vld [vmem:[#allocation5 + $0xb70] sm:$0xff] }
  0xeb   :  { %1887 = vmatpush.xpose.msrb.mxu0 %v348_v54  ;;  %1927 = vmatpush.xpose.msrb.mxu2 %v350_v55  ;;  %v425_v54 = vld [vmem:[#allocation5 + $0xb68] sm:$0xff]  ;;  %v427_v55 = vld [vmem:[#allocation5 + $0xb78] sm:$0xff] }
  0xec   :  { %1907 = vmatpush.xpose.msrb.mxu1 %v349_v56  ;;  %1947 = vmatpush.xpose.msrb.mxu3 %v351_v57  ;;  %v412_v56 = vld [vmem:[#allocation5 + $0xb00] sm:$0xff]  ;;  %v414_v57 = vld [vmem:[#allocation5 + $0xb10] sm:$0xff] }
  0xef   :  { %1888 = vmatpush.xpose.msrb.mxu0 %v336_v58  ;;  %1928 = vmatpush.xpose.msrb.mxu2 %v338_v59 }
  0xf0   :  { %1908 = vmatpush.xpose.msrb.mxu1 %v337_v60  ;;  %1948 = vmatpush.xpose.msrb.mxu3 %v339_v61  ;;  %v413_v60 = vld [vmem:[#allocation5 + $0xb08] sm:$0xff]  ;;  %v415_v61 = vld [vmem:[#allocation5 + $0xb18] sm:$0xff] }
  0xf3   :  { %1889 = vmatpush.xpose.msrb.mxu0 %v324_v63  ;;  %1929 = vmatpush.xpose.msrb.mxu2 %v326_v0 }
  0xf4   :  { %1909 = vmatpush.xpose.msrb.mxu1 %v325_v3  ;;  %1949 = vmatpush.xpose.msrb.mxu3 %v327_v4  ;;  %v401_v3 = vld [vmem:[#allocation5 + $0xaa8] sm:$0xff]  ;;  %v403_v4 = vld [vmem:[#allocation5 + $0xab8] sm:$0xff] }
  0xf7   :  { %1890 = vmatpush.xpose.msrb.mxu0 %v312_v7  ;;  %1930 = vmatpush.xpose.msrb.mxu2 %v314_v8  ;;  %v388_v7 = vld [vmem:[#allocation5 + $0xa40] sm:$0xff]  ;;  %v390_v8 = vld [vmem:[#allocation5 + $0xa50] sm:$0xff] }
  0xf8   :  { %1910 = vmatpush.xpose.msrb.mxu1 %v313_v15  ;;  %1950 = vmatpush.xpose.msrb.mxu3 %v315_v16  ;;  %v389_v15 = vld [vmem:[#allocation5 + $0xa48] sm:$0xff]  ;;  %v391_v16 = vld [vmem:[#allocation5 + $0xa58] sm:$0xff] }
  0xfb   :  { %1891 = vmatpush.xpose.msrb.mxu0 %v300_v19  ;;  %1931 = vmatpush.xpose.msrb.mxu2 %v302_v22  ;;  %v377_v19 = vld [vmem:[#allocation5 + $0x9e8] sm:$0xff]  ;;  %v379_v22 = vld [vmem:[#allocation5 + $0x9f8] sm:$0xff] }
  0xfc   :  { %1911 = vmatpush.xpose.msrb.mxu1 %v301_v26  ;;  %1951 = vmatpush.xpose.msrb.mxu3 %v303_v27  ;;  %v366_v26 = vld [vmem:[#allocation5 + $0x990] sm:$0xff]  ;;  %v365_v27 = vld [vmem:[#allocation5 + $0x988] sm:$0xff] }
  0xff   :  { %1892 = vmatpush.xpose.msrb.mxu0 %v288_v28  ;;  %1932 = vmatpush.xpose.msrb.mxu2 %v290_v29  ;;  %v367_v28 = vld [vmem:[#allocation5 + $0x998] sm:$0xff]  ;;  %v352_v29 = vld [vmem:[#allocation5 + $0x920] sm:$0xff] }
 0x100   :  { %1912 = vmatpush.xpose.msrb.mxu1 %v289_v30  ;;  %1952 = vmatpush.xpose.msrb.mxu3 %v291_v31  ;;  %v354_v30 = vld [vmem:[#allocation5 + $0x930] sm:$0xff]  ;;  %v353_v31 = vld [vmem:[#allocation5 + $0x928] sm:$0xff] }
 0x103   :  { %1893 = vmatpush.xpose.msrb.mxu0 %v276_v32  ;;  %1933 = vmatpush.xpose.msrb.mxu2 %v278_v35  ;;  %v355_v32 = vld [vmem:[#allocation5 + $0x938] sm:$0xff]  ;;  %v340_v35 = vld [vmem:[#allocation5 + $0x8c0] sm:$0xff] }
 0x104   :  { %1913 = vmatpush.xpose.msrb.mxu1 %v277_v36  ;;  %1953 = vmatpush.xpose.msrb.mxu3 %v279_v39  ;;  %v342_v36 = vld [vmem:[#allocation5 + $0x8d0] sm:$0xff]  ;;  %v341_v39 = vld [vmem:[#allocation5 + $0x8c8] sm:$0xff] }
 0x107   :  { %1894 = vmatpush.xpose.msrb.mxu0 %v264_v40  ;;  %1934 = vmatpush.xpose.msrb.mxu2 %v266_v41  ;;  %v343_v40 = vld [vmem:[#allocation5 + $0x8d8] sm:$0xff]  ;;  %v328_v41 = vld [vmem:[#allocation5 + $0x860] sm:$0xff] }
 0x108   :  { %1914 = vmatpush.xpose.msrb.mxu1 %v265_v42  ;;  %1954 = vmatpush.xpose.msrb.mxu3 %v267_v43  ;;  %v330_v42 = vld [vmem:[#allocation5 + $0x870] sm:$0xff]  ;;  %v329_v43 = vld [vmem:[#allocation5 + $0x868] sm:$0xff] }
 0x10b   :  { %1895 = vmatpush.xpose.msrb.mxu0 %v252_v44  ;;  %1935 = vmatpush.xpose.msrb.mxu2 %v254_v45  ;;  %v1737_v58 = vpop.f32.mrf.mxu0  ;;  %v331_v44 = vld [vmem:[#allocation5 + $0x878] sm:$0xff]  ;;  %v316_v45 = vld [vmem:[#allocation5 + $0x800] sm:$0xff] }
 0x10c   :  { %1915 = vmatpush.xpose.msrb.mxu1 %v253_v48  ;;  %1955 = vmatpush.xpose.msrb.mxu3 %v255_v49  ;;  %v1738_v59 = vadd.f32 %v1737_v58, %v3804_v23  ;;  %v364_v23 = vld [vmem:[#allocation5 + $0x980] sm:$0xff]  ;;  %v319_v48 = vld [vmem:[#allocation5 + $0x818] sm:$0xff]  ;;  %v282_v58 = vld [vmem:[#allocation5 + $0x6f0] sm:$0xff] }
 0x10d   :  { %v304_v49 = vld [vmem:[#allocation5 + $0x7a0] sm:$0xff] }
 0x10e   :  { %1896 = vmatmul.f32.vlgmr.msrb.gmra.mxu0 %v3758_v33  ;;  %1936 = vmatmul.f32.vlgmr.msrb.gmra.mxu2 %v3761_v34  ;;  %v1757_v63 = vpop.f32.mrf.mxu1 }
 0x10f   :  { %1960 = vmatpush.xpose.msra.mxu0 %v436_v46  ;;  %2000 = vmatpush.xpose.msra.mxu2 %v438_v47  ;;  %v1758_v0 = vadd.f32 %v1757_v63, %v1738_v59  ;;  %v318_v46 = vld [vmem:[#allocation5 + $0x810] sm:$0xff]  ;;  %v317_v47 = vld [vmem:[#allocation5 + $0x808] sm:$0xff] }
 0x110   :  { %1980 = vmatpush.xpose.msra.mxu1 %v437_v50  ;;  %2020 = vmatpush.xpose.msra.mxu3 %v439_v51  ;;  %v306_v50 = vld [vmem:[#allocation5 + $0x7b0] sm:$0xff]  ;;  %v305_v51 = vld [vmem:[#allocation5 + $0x7a8] sm:$0xff] }
 0x111   :  { %1916 = vmatmul.f32.vlgmr.msrb.gmra.mxu1 %v3766_v37  ;;  %1956 = vmatmul.f32.vlgmr.msrb.gmra.mxu3 %v3769_v38  ;;  %v1777_v5 = vpop.f32.mrf.mxu2  ;;  %v281_v59 = vld [vmem:[#allocation5 + $0x6e8] sm:$0xff]  ;;  %v270_v63 = vld [vmem:[#allocation5 + $0x690] sm:$0xff] }
 0x112   :  { %v1778_v6 = vadd.f32 %v1777_v5, %v1758_v0  ;;  %v269_v0 = vld [vmem:[#allocation5 + $0x688] sm:$0xff]  ;;  %v442_v5 = vld [vmem:[#allocation5 + $0xbf0] sm:$0xff] }
 0x113   :  { %1961 = vmatpush.xpose.msra.mxu0 %v424_v52  ;;  %2001 = vmatpush.xpose.msra.mxu2 %v426_v53  ;;  %v307_v52 = vld [vmem:[#allocation5 + $0x7b8] sm:$0xff]  ;;  %v292_v53 = vld [vmem:[#allocation5 + $0x740] sm:$0xff] }
 0x114   :  { %1981 = vmatpush.xpose.msra.mxu1 %v425_v54  ;;  %2021 = vmatpush.xpose.msra.mxu3 %v427_v55  ;;  %v1797_v11 = vpop.f32.mrf.mxu3  ;;  %v294_v54 = vld [vmem:[#allocation5 + $0x750] sm:$0xff]  ;;  %v293_v55 = vld [vmem:[#allocation5 + $0x748] sm:$0xff] }
 0x115   :  { %v3811_v12 = vadd.f32 %v1797_v11, %v1778_v6  ;;  %v257_v6 = vld [vmem:[#allocation5 + $0x628] sm:$0xff]  ;;  %v443_v11 = vld [vmem:[#allocation5 + $0xbf8] sm:$0xff] }
 0x117   :  { %1962 = vmatpush.xpose.msra.mxu0 %v412_v56  ;;  %2002 = vmatpush.xpose.msra.mxu2 %v414_v57  ;;  %v295_v56 = vld [vmem:[#allocation5 + $0x758] sm:$0xff]  ;;  %v280_v57 = vld [vmem:[#allocation5 + $0x6e0] sm:$0xff] }
 0x118   :  { %1982 = vmatpush.xpose.msra.mxu1 %v413_v60  ;;  %2022 = vmatpush.xpose.msra.mxu3 %v415_v61  ;;  %v283_v60 = vld [vmem:[#allocation5 + $0x6f8] sm:$0xff]  ;;  %v268_v61 = vld [vmem:[#allocation5 + $0x680] sm:$0xff] }
 0x11b   :  { %1963 = vmatpush.xpose.msra.mxu0 %v400_v1  ;;  %2003 = vmatpush.xpose.msra.mxu2 %v402_v2  ;;  %v271_v1 = vld [vmem:[#allocation5 + $0x698] sm:$0xff]  ;;  %v256_v2 = vld [vmem:[#allocation5 + $0x620] sm:$0xff] }
 0x11c   :  { %1983 = vmatpush.xpose.msra.mxu1 %v401_v3  ;;  %2023 = vmatpush.xpose.msra.mxu3 %v403_v4  ;;  %v258_v3 = vld [vmem:[#allocation5 + $0x630] sm:$0xff]  ;;  %v440_v4 = vld [vmem:[#allocation5 + $0xbe0] sm:$0xff] }
 0x11f   :  { %1964 = vmatpush.xpose.msra.mxu0 %v388_v7  ;;  %2004 = vmatpush.xpose.msra.mxu2 %v390_v8  ;;  %v259_v7 = vld [vmem:[#allocation5 + $0x638] sm:$0xff]  ;;  %v441_v8 = vld [vmem:[#allocation5 + $0xbe8] sm:$0xff] }
 0x120   :  { %1984 = vmatpush.xpose.msra.mxu1 %v389_v15  ;;  %2024 = vmatpush.xpose.msra.mxu3 %v391_v16  ;;  %v428_v15 = vld [vmem:[#allocation5 + $0xb80] sm:$0xff]  ;;  %v430_v16 = vld [vmem:[#allocation5 + $0xb90] sm:$0xff] }
 0x123   :  { %1965 = vmatpush.xpose.msra.mxu0 %v376_v17  ;;  %2005 = vmatpush.xpose.msra.mxu2 %v378_v18  ;;  %v429_v17 = vld [vmem:[#allocation5 + $0xb88] sm:$0xff]  ;;  %v431_v18 = vld [vmem:[#allocation5 + $0xb98] sm:$0xff] }
 0x124   :  { %1985 = vmatpush.xpose.msra.mxu1 %v377_v19  ;;  %2025 = vmatpush.xpose.msra.mxu3 %v379_v22  ;;  %v416_v19 = vld [vmem:[#allocation5 + $0xb20] sm:$0xff]  ;;  %v418_v22 = vld [vmem:[#allocation5 + $0xb30] sm:$0xff] }
 0x127   :  { %1966 = vmatpush.xpose.msra.mxu0 %v364_v23  ;;  %2006 = vmatpush.xpose.msra.mxu2 %v366_v26  ;;  %v417_v23 = vld [vmem:[#allocation5 + $0xb28] sm:$0xff]  ;;  %v419_v26 = vld [vmem:[#allocation5 + $0xb38] sm:$0xff] }
 0x128   :  { %1986 = vmatpush.xpose.msra.mxu1 %v365_v27  ;;  %2026 = vmatpush.xpose.msra.mxu3 %v367_v28  ;;  %v404_v27 = vld [vmem:[#allocation5 + $0xac0] sm:$0xff]  ;;  %v406_v28 = vld [vmem:[#allocation5 + $0xad0] sm:$0xff] }
 0x12b   :  { %1967 = vmatpush.xpose.msra.mxu0 %v352_v29  ;;  %2007 = vmatpush.xpose.msra.mxu2 %v354_v30  ;;  %v405_v29 = vld [vmem:[#allocation5 + $0xac8] sm:$0xff]  ;;  %v407_v30 = vld [vmem:[#allocation5 + $0xad8] sm:$0xff] }
 0x12c   :  { %1987 = vmatpush.xpose.msra.mxu1 %v353_v31  ;;  %2027 = vmatpush.xpose.msra.mxu3 %v355_v32  ;;  %v392_v31 = vld [vmem:[#allocation5 + $0xa60] sm:$0xff]  ;;  %v394_v32 = vld [vmem:[#allocation5 + $0xa70] sm:$0xff] }
 0x12f   :  { %1968 = vmatpush.xpose.msra.mxu0 %v340_v35  ;;  %2008 = vmatpush.xpose.msra.mxu2 %v342_v36  ;;  %v393_v35 = vld [vmem:[#allocation5 + $0xa68] sm:$0xff]  ;;  %v395_v36 = vld [vmem:[#allocation5 + $0xa78] sm:$0xff] }
 0x130   :  { %1988 = vmatpush.xpose.msra.mxu1 %v341_v39  ;;  %2028 = vmatpush.xpose.msra.mxu3 %v343_v40  ;;  %v380_v39 = vld [vmem:[#allocation5 + $0xa00] sm:$0xff]  ;;  %v382_v40 = vld [vmem:[#allocation5 + $0xa10] sm:$0xff] }
 0x133   :  { %1969 = vmatpush.xpose.msra.mxu0 %v328_v41  ;;  %2009 = vmatpush.xpose.msra.mxu2 %v330_v42  ;;  %v381_v41 = vld [vmem:[#allocation5 + $0xa08] sm:$0xff]  ;;  %v383_v42 = vld [vmem:[#allocation5 + $0xa18] sm:$0xff] }
 0x134   :  { %1989 = vmatpush.xpose.msra.mxu1 %v329_v43  ;;  %2029 = vmatpush.xpose.msra.mxu3 %v331_v44  ;;  %v368_v43 = vld [vmem:[#allocation5 + $0x9a0] sm:$0xff]  ;;  %v370_v44 = vld [vmem:[#allocation5 + $0x9b0] sm:$0xff] }
 0x137   :  { %1970 = vmatpush.xpose.msra.mxu0 %v316_v45  ;;  %2010 = vmatpush.xpose.msra.mxu2 %v318_v46  ;;  %v369_v45 = vld [vmem:[#allocation5 + $0x9a8] sm:$0xff]  ;;  %v371_v46 = vld [vmem:[#allocation5 + $0x9b8] sm:$0xff] }
 0x138   :  { %1990 = vmatpush.xpose.msra.mxu1 %v317_v47  ;;  %2030 = vmatpush.xpose.msra.mxu3 %v319_v48  ;;  %v356_v47 = vld [vmem:[#allocation5 + $0x940] sm:$0xff]  ;;  %v358_v48 = vld [vmem:[#allocation5 + $0x950] sm:$0xff] }
 0x13b   :  { %1971 = vmatpush.xpose.msra.mxu0 %v304_v49  ;;  %2011 = vmatpush.xpose.msra.mxu2 %v306_v50  ;;  %v357_v49 = vld [vmem:[#allocation5 + $0x948] sm:$0xff]  ;;  %v359_v50 = vld [vmem:[#allocation5 + $0x958] sm:$0xff] }
 0x13c   :  { %1991 = vmatpush.xpose.msra.mxu1 %v305_v51  ;;  %2031 = vmatpush.xpose.msra.mxu3 %v307_v52  ;;  %v344_v51 = vld [vmem:[#allocation5 + $0x8e0] sm:$0xff]  ;;  %v346_v52 = vld [vmem:[#allocation5 + $0x8f0] sm:$0xff] }
 0x13f   :  { %1972 = vmatpush.xpose.msra.mxu0 %v292_v53  ;;  %2012 = vmatpush.xpose.msra.mxu2 %v294_v54  ;;  %v345_v53 = vld [vmem:[#allocation5 + $0x8e8] sm:$0xff]  ;;  %v347_v54 = vld [vmem:[#allocation5 + $0x8f8] sm:$0xff] }
 0x140   :  { %1992 = vmatpush.xpose.msra.mxu1 %v293_v55  ;;  %2032 = vmatpush.xpose.msra.mxu3 %v295_v56  ;;  %v332_v55 = vld [vmem:[#allocation5 + $0x880] sm:$0xff]  ;;  %v334_v56 = vld [vmem:[#allocation5 + $0x890] sm:$0xff] }
 0x143   :  { %1973 = vmatpush.xpose.msra.mxu0 %v280_v57  ;;  %2013 = vmatpush.xpose.msra.mxu2 %v282_v58  ;;  %v333_v57 = vld [vmem:[#allocation5 + $0x888] sm:$0xff]  ;;  %v335_v58 = vld [vmem:[#allocation5 + $0x898] sm:$0xff] }
 0x144   :  { %1993 = vmatpush.xpose.msra.mxu1 %v281_v59  ;;  %2033 = vmatpush.xpose.msra.mxu3 %v283_v60  ;;  %v320_v59 = vld [vmem:[#allocation5 + $0x820] sm:$0xff]  ;;  %v322_v60 = vld [vmem:[#allocation5 + $0x830] sm:$0xff] }
 0x147   :  { %1974 = vmatpush.xpose.msra.mxu0 %v268_v61  ;;  %2014 = vmatpush.xpose.msra.mxu2 %v270_v63  ;;  %v321_v61 = vld [vmem:[#allocation5 + $0x828] sm:$0xff]  ;;  %v323_v63 = vld [vmem:[#allocation5 + $0x838] sm:$0xff] }
 0x148   :  { %1994 = vmatpush.xpose.msra.mxu1 %v269_v0  ;;  %2034 = vmatpush.xpose.msra.mxu3 %v271_v1  ;;  %v308_v0 = vld [vmem:[#allocation5 + $0x7c0] sm:$0xff]  ;;  %v310_v1 = vld [vmem:[#allocation5 + $0x7d0] sm:$0xff] }
 0x14b   :  { %1975 = vmatpush.xpose.msra.mxu0 %v256_v2  ;;  %2015 = vmatpush.xpose.msra.mxu2 %v258_v3  ;;  %v309_v2 = vld [vmem:[#allocation5 + $0x7c8] sm:$0xff]  ;;  %v311_v3 = vld [vmem:[#allocation5 + $0x7d8] sm:$0xff] }
 0x14c   :  { %1995 = vmatpush.xpose.msra.mxu1 %v257_v6  ;;  %2035 = vmatpush.xpose.msra.mxu3 %v259_v7  ;;  %v297_v6 = vld [vmem:[#allocation5 + $0x768] sm:$0xff]  ;;  %v299_v7 = vld [vmem:[#allocation5 + $0x778] sm:$0xff] }
 0x14e   :  { %2016 = vmatmul.f32.vlgmr.msra.gmra.mxu2 %v3774_v9  ;;  %1976 = vmatmul.f32.vlgmr.msra.gmra.mxu0 %v3777_v10 }
 0x14f   :  { %2040 = vmatpush.xpose.msrb.mxu0 %v440_v4  ;;  %2080 = vmatpush.xpose.msrb.mxu2 %v442_v5  ;;  %v296_v4 = vld [vmem:[#allocation5 + $0x760] sm:$0xff]  ;;  %v298_v5 = vld [vmem:[#allocation5 + $0x770] sm:$0xff] }
 0x150   :  { %2060 = vmatpush.xpose.msrb.mxu1 %v441_v8  ;;  %2100 = vmatpush.xpose.msrb.mxu3 %v443_v11  ;;  %v284_v8 = vld [vmem:[#allocation5 + $0x700] sm:$0xff]  ;;  %v286_v11 = vld [vmem:[#allocation5 + $0x710] sm:$0xff] }
 0x151   :  { %2036 = vmatmul.f32.vlgmr.msra.gmra.mxu3 %v3780_v13  ;;  %1996 = vmatmul.f32.vlgmr.msra.gmra.mxu1 %v3783_v14 }
 0x153   :  { %2041 = vmatpush.xpose.msrb.mxu0 %v428_v15  ;;  %2081 = vmatpush.xpose.msrb.mxu2 %v430_v16  ;;  %v285_v15 = vld [vmem:[#allocation5 + $0x708] sm:$0xff]  ;;  %v287_v16 = vld [vmem:[#allocation5 + $0x718] sm:$0xff] }
 0x154   :  { %2061 = vmatpush.xpose.msrb.mxu1 %v429_v17  ;;  %2101 = vmatpush.xpose.msrb.mxu3 %v431_v18  ;;  %v272_v17 = vld [vmem:[#allocation5 + $0x6a0] sm:$0xff]  ;;  %v274_v18 = vld [vmem:[#allocation5 + $0x6b0] sm:$0xff] }
 0x157   :  { %2042 = vmatpush.xpose.msrb.mxu0 %v416_v19  ;;  %2082 = vmatpush.xpose.msrb.mxu2 %v418_v22  ;;  %v273_v19 = vld [vmem:[#allocation5 + $0x6a8] sm:$0xff]  ;;  %v275_v22 = vld [vmem:[#allocation5 + $0x6b8] sm:$0xff] }
 0x158   :  { %2062 = vmatpush.xpose.msrb.mxu1 %v417_v23  ;;  %2102 = vmatpush.xpose.msrb.mxu3 %v419_v26  ;;  %v260_v23 = vld [vmem:[#allocation5 + $0x640] sm:$0xff]  ;;  %v262_v26 = vld [vmem:[#allocation5 + $0x650] sm:$0xff] }
 0x15b   :  { %2043 = vmatpush.xpose.msrb.mxu0 %v404_v27  ;;  %2083 = vmatpush.xpose.msrb.mxu2 %v406_v28  ;;  %v624_v27 = vld [vmem:[#allocation5 + $0x11a0] sm:$0xff]  ;;  %v626_v28 = vld [vmem:[#allocation5 + $0x11b0] sm:$0xff] }
 0x15c   :  { %2063 = vmatpush.xpose.msrb.mxu1 %v405_v29  ;;  %2103 = vmatpush.xpose.msrb.mxu3 %v407_v30  ;;  %v261_v29 = vld [vmem:[#allocation5 + $0x648] sm:$0xff]  ;;  %v263_v30 = vld [vmem:[#allocation5 + $0x658] sm:$0xff] }
 0x15f   :  { %2044 = vmatpush.xpose.msrb.mxu0 %v392_v31  ;;  %2084 = vmatpush.xpose.msrb.mxu2 %v394_v32  ;;  %v625_v31 = vld [vmem:[#allocation5 + $0x11a8] sm:$0xff]  ;;  %v627_v32 = vld [vmem:[#allocation5 + $0x11b8] sm:$0xff] }
 0x160   :  { %2064 = vmatpush.xpose.msrb.mxu1 %v393_v35  ;;  %2104 = vmatpush.xpose.msrb.mxu3 %v395_v36  ;;  %v612_v35 = vld [vmem:[#allocation5 + $0x1140] sm:$0xff]  ;;  %v614_v36 = vld [vmem:[#allocation5 + $0x1150] sm:$0xff] }
 0x163   :  { %2045 = vmatpush.xpose.msrb.mxu0 %v380_v39  ;;  %2085 = vmatpush.xpose.msrb.mxu2 %v382_v40  ;;  %v613_v39 = vld [vmem:[#allocation5 + $0x1148] sm:$0xff]  ;;  %v615_v40 = vld [vmem:[#allocation5 + $0x1158] sm:$0xff] }
 0x164   :  { %2065 = vmatpush.xpose.msrb.mxu1 %v381_v41  ;;  %2105 = vmatpush.xpose.msrb.mxu3 %v383_v42  ;;  %v600_v41 = vld [vmem:[#allocation5 + $0x10e0] sm:$0xff]  ;;  %v602_v42 = vld [vmem:[#allocation5 + $0x10f0] sm:$0xff] }
 0x167   :  { %2046 = vmatpush.xpose.msrb.mxu0 %v368_v43  ;;  %2086 = vmatpush.xpose.msrb.mxu2 %v370_v44  ;;  %v601_v43 = vld [vmem:[#allocation5 + $0x10e8] sm:$0xff]  ;;  %v603_v44 = vld [vmem:[#allocation5 + $0x10f8] sm:$0xff] }
 0x168   :  { %2066 = vmatpush.xpose.msrb.mxu1 %v369_v45  ;;  %2106 = vmatpush.xpose.msrb.mxu3 %v371_v46  ;;  %v588_v45 = vld [vmem:[#allocation5 + $0x1080] sm:$0xff]  ;;  %v590_v46 = vld [vmem:[#allocation5 + $0x1090] sm:$0xff] }
 0x16b   :  { %2047 = vmatpush.xpose.msrb.mxu0 %v356_v47  ;;  %2087 = vmatpush.xpose.msrb.mxu2 %v358_v48  ;;  %v589_v47 = vld [vmem:[#allocation5 + $0x1088] sm:$0xff]  ;;  %v591_v48 = vld [vmem:[#allocation5 + $0x1098] sm:$0xff] }
 0x16c   :  { %2067 = vmatpush.xpose.msrb.mxu1 %v357_v49  ;;  %2107 = vmatpush.xpose.msrb.mxu3 %v359_v50  ;;  %v576_v49 = vld [vmem:[#allocation5 + $0x1020] sm:$0xff]  ;;  %v578_v50 = vld [vmem:[#allocation5 + $0x1030] sm:$0xff] }
 0x16f   :  { %2048 = vmatpush.xpose.msrb.mxu0 %v344_v51  ;;  %2088 = vmatpush.xpose.msrb.mxu2 %v346_v52  ;;  %v577_v51 = vld [vmem:[#allocation5 + $0x1028] sm:$0xff]  ;;  %v579_v52 = vld [vmem:[#allocation5 + $0x1038] sm:$0xff] }
 0x170   :  { %2068 = vmatpush.xpose.msrb.mxu1 %v345_v53  ;;  %2108 = vmatpush.xpose.msrb.mxu3 %v347_v54  ;;  %v564_v53 = vld [vmem:[#allocation5 + $0xfc0] sm:$0xff]  ;;  %v566_v54 = vld [vmem:[#allocation5 + $0xfd0] sm:$0xff] }
 0x173   :  { %2049 = vmatpush.xpose.msrb.mxu0 %v332_v55  ;;  %2089 = vmatpush.xpose.msrb.mxu2 %v334_v56  ;;  %v565_v55 = vld [vmem:[#allocation5 + $0xfc8] sm:$0xff]  ;;  %v567_v56 = vld [vmem:[#allocation5 + $0xfd8] sm:$0xff] }
 0x174   :  { %2069 = vmatpush.xpose.msrb.mxu1 %v333_v57  ;;  %2109 = vmatpush.xpose.msrb.mxu3 %v335_v58  ;;  %v552_v57 = vld [vmem:[#allocation5 + $0xf60] sm:$0xff]  ;;  %v554_v58 = vld [vmem:[#allocation5 + $0xf70] sm:$0xff] }
 0x177   :  { %2050 = vmatpush.xpose.msrb.mxu0 %v320_v59  ;;  %2090 = vmatpush.xpose.msrb.mxu2 %v322_v60  ;;  %v553_v59 = vld [vmem:[#allocation5 + $0xf68] sm:$0xff]  ;;  %v555_v60 = vld [vmem:[#allocation5 + $0xf78] sm:$0xff] }
 0x178   :  { %2070 = vmatpush.xpose.msrb.mxu1 %v321_v61  ;;  %2110 = vmatpush.xpose.msrb.mxu3 %v323_v63  ;;  %v3821_v61 = vpop.f32.mrf.mxu0  ;;  %v540_v63 = vld [vmem:[#allocation5 + $0xf00] sm:$0xff] }
 0x17b   :  { %2051 = vmatpush.xpose.msrb.mxu0 %v308_v0  ;;  %2091 = vmatpush.xpose.msrb.mxu2 %v310_v1  ;;  %v542_v0 = vld [vmem:[#allocation5 + $0xf10] sm:$0xff]  ;;  %v3823_v1 = vpop.f32.mrf.mxu1 }
 0x17c   :  { %2071 = vmatpush.xpose.msrb.mxu1 %v309_v2  ;;  %2111 = vmatpush.xpose.msrb.mxu3 %v311_v3  ;;  %v541_v2 = vld [vmem:[#allocation5 + $0xf08] sm:$0xff]  ;;  %v543_v3 = vld [vmem:[#allocation5 + $0xf18] sm:$0xff] }
 0x17f   :  { %2052 = vmatpush.xpose.msrb.mxu0 %v296_v4  ;;  %2092 = vmatpush.xpose.msrb.mxu2 %v298_v5  ;;  %v3825_v4 = vpop.f32.mrf.mxu2  ;;  %v528_v5 = vld [vmem:[#allocation5 + $0xea0] sm:$0xff] }
 0x180   :  { %2072 = vmatpush.xpose.msrb.mxu1 %v297_v6  ;;  %2112 = vmatpush.xpose.msrb.mxu3 %v299_v7  ;;  %v530_v6 = vld [vmem:[#allocation5 + $0xeb0] sm:$0xff]  ;;  %v3827_v7 = vpop.f32.mrf.mxu3 }
 0x183   :  { %2053 = vmatpush.xpose.msrb.mxu0 %v284_v8  ;;  %2093 = vmatpush.xpose.msrb.mxu2 %v286_v11  ;;  %v529_v8 = vld [vmem:[#allocation5 + $0xea8] sm:$0xff]  ;;  %v531_v11 = vld [vmem:[#allocation5 + $0xeb8] sm:$0xff] }
 0x184   :  { %2073 = vmatpush.xpose.msrb.mxu1 %v285_v15  ;;  %2113 = vmatpush.xpose.msrb.mxu3 %v287_v16  ;;  %v516_v15 = vld [vmem:[#allocation5 + $0xe40] sm:$0xff]  ;;  %v518_v16 = vld [vmem:[#allocation5 + $0xe50] sm:$0xff] }
 0x187   :  { %2054 = vmatpush.xpose.msrb.mxu0 %v272_v17  ;;  %2094 = vmatpush.xpose.msrb.mxu2 %v274_v18  ;;  %v1625_v17 = vperm.slane %v3801_v62, 1  ;;  %v492_v62 = vld [vmem:[#allocation5 + $0xd80] sm:$0xff] }
 0x188   :  { %2074 = vmatpush.xpose.msrb.mxu1 %v273_v19  ;;  %2114 = vmatpush.xpose.msrb.mxu3 %v275_v22  ;;  %v517_v19 = vld [vmem:[#allocation5 + $0xe48] sm:$0xff]  ;;  %v519_v22 = vld [vmem:[#allocation5 + $0xe58] sm:$0xff] }
 0x18b   :  { %2055 = vmatpush.xpose.msrb.mxu0 %v260_v23  ;;  %2095 = vmatpush.xpose.msrb.mxu2 %v262_v26  ;;  %v1897_v18 = vpop.f32.mrf.mxu0 }
 0x18c   :  { %2075 = vmatpush.xpose.msrb.mxu1 %v261_v29  ;;  %2115 = vmatpush.xpose.msrb.mxu3 %v263_v30  ;;  %v1898_v23 = vadd.f32 %v1897_v18, %v1625_v17  ;;  %v605_v17 = vld [vmem:[#allocation5 + $0x1108] sm:$0xff]  ;;  %v607_v18 = vld [vmem:[#allocation5 + $0x1118] sm:$0xff] }
 0x18e   :  { %2056 = vmatmul.f32.vlgmr.msrb.gmra.mxu0 %v3789_v20  ;;  %2096 = vmatmul.f32.vlgmr.msrb.gmra.mxu2 %v3791_v21  ;;  %v1917_v26 = vpop.f32.mrf.mxu1 }
 0x18f   :  { %2120 = vmatpush.xpose.msra.mxu0 %v624_v27  ;;  %2160 = vmatpush.xpose.msra.mxu2 %v626_v28  ;;  %v504_v27 = vld [vmem:[#allocation5 + $0xde0] sm:$0xff]  ;;  %v506_v28 = vld [vmem:[#allocation5 + $0xdf0] sm:$0xff]  ;;  %v1918_v29 = vadd.f32 %v1917_v26, %v1898_v23 }
 0x190   :  { %2140 = vmatpush.xpose.msra.mxu1 %v625_v31  ;;  %2180 = vmatpush.xpose.msra.mxu3 %v627_v32  ;;  %v505_v31 = vld [vmem:[#allocation5 + $0xde8] sm:$0xff]  ;;  %v507_v32 = vld [vmem:[#allocation5 + $0xdf8] sm:$0xff]  ;;  %v592_v23 = vld [vmem:[#allocation5 + $0x10a0] sm:$0xff] }
 0x191   :  { %2076 = vmatmul.f32.vlgmr.msrb.gmra.mxu1 %v3793_v24  ;;  %2116 = vmatmul.f32.vlgmr.msrb.gmra.mxu3 %v3795_v25  ;;  %v1937_v30 = vpop.f32.mrf.mxu2  ;;  %v594_v26 = vld [vmem:[#allocation5 + $0x10b0] sm:$0xff] }
 0x193   :  { %2121 = vmatpush.xpose.msra.mxu0 %v612_v35  ;;  %2161 = vmatpush.xpose.msra.mxu2 %v614_v36  ;;  %v1938_v35 = vadd.f32 %v1937_v30, %v1918_v29 }
 0x194   :  { %2141 = vmatpush.xpose.msra.mxu1 %v613_v39  ;;  %2181 = vmatpush.xpose.msra.mxu3 %v615_v40  ;;  %v1957_v36 = vpop.f32.mrf.mxu3  ;;  %v494_v39 = vld [vmem:[#allocation5 + $0xd90] sm:$0xff] }
 0x195   :  { %v3830_v40 = vadd.f32 %v1957_v36, %v1938_v35 }
 0x197   :  { %2122 = vmatpush.xpose.msra.mxu0 %v600_v41  ;;  %2162 = vmatpush.xpose.msra.mxu2 %v602_v42  ;;  %v493_v41 = vld [vmem:[#allocation5 + $0xd88] sm:$0xff]  ;;  %v495_v42 = vld [vmem:[#allocation5 + $0xd98] sm:$0xff] }
 0x198   :  { %2142 = vmatpush.xpose.msra.mxu1 %v601_v43  ;;  %2182 = vmatpush.xpose.msra.mxu3 %v603_v44  ;;  %v480_v43 = vld [vmem:[#allocation5 + $0xd20] sm:$0xff]  ;;  %v482_v44 = vld [vmem:[#allocation5 + $0xd30] sm:$0xff] }
 0x19b   :  { %2123 = vmatpush.xpose.msra.mxu0 %v588_v45  ;;  %2163 = vmatpush.xpose.msra.mxu2 %v590_v46  ;;  %v481_v45 = vld [vmem:[#allocation5 + $0xd28] sm:$0xff]  ;;  %v483_v46 = vld [vmem:[#allocation5 + $0xd38] sm:$0xff] }
 0x19c   :  { %2143 = vmatpush.xpose.msra.mxu1 %v589_v47  ;;  %2183 = vmatpush.xpose.msra.mxu3 %v591_v48  ;;  %v468_v47 = vld [vmem:[#allocation5 + $0xcc0] sm:$0xff]  ;;  %v470_v48 = vld [vmem:[#allocation5 + $0xcd0] sm:$0xff] }
 0x19f   :  { %2124 = vmatpush.xpose.msra.mxu0 %v576_v49  ;;  %2164 = vmatpush.xpose.msra.mxu2 %v578_v50  ;;  %v469_v49 = vld [vmem:[#allocation5 + $0xcc8] sm:$0xff]  ;;  %v471_v50 = vld [vmem:[#allocation5 + $0xcd8] sm:$0xff] }
 0x1a0   :  { %2144 = vmatpush.xpose.msra.mxu1 %v577_v51  ;;  %2184 = vmatpush.xpose.msra.mxu3 %v579_v52  ;;  %v456_v51 = vld [vmem:[#allocation5 + $0xc60] sm:$0xff]  ;;  %v458_v52 = vld [vmem:[#allocation5 + $0xc70] sm:$0xff] }
 0x1a3   :  { %2125 = vmatpush.xpose.msra.mxu0 %v564_v53  ;;  %2165 = vmatpush.xpose.msra.mxu2 %v566_v54  ;;  %v457_v53 = vld [vmem:[#allocation5 + $0xc68] sm:$0xff]  ;;  %v459_v54 = vld [vmem:[#allocation5 + $0xc78] sm:$0xff] }
 0x1a4   :  { %2145 = vmatpush.xpose.msra.mxu1 %v565_v55  ;;  %2185 = vmatpush.xpose.msra.mxu3 %v567_v56  ;;  %v444_v55 = vld [vmem:[#allocation5 + $0xc00] sm:$0xff]  ;;  %v446_v56 = vld [vmem:[#allocation5 + $0xc10] sm:$0xff] }
 0x1a7   :  { %2126 = vmatpush.xpose.msra.mxu0 %v552_v57  ;;  %2166 = vmatpush.xpose.msra.mxu2 %v554_v58  ;;  %v628_v57 = vld [vmem:[#allocation5 + $0x11c0] sm:$0xff]  ;;  %v630_v58 = vld [vmem:[#allocation5 + $0x11d0] sm:$0xff] }
 0x1a8   :  { %2146 = vmatpush.xpose.msra.mxu1 %v553_v59  ;;  %2186 = vmatpush.xpose.msra.mxu3 %v555_v60  ;;  %v445_v59 = vld [vmem:[#allocation5 + $0xc08] sm:$0xff]  ;;  %v447_v60 = vld [vmem:[#allocation5 + $0xc18] sm:$0xff] }
 0x1ab   :  { %2127 = vmatpush.xpose.msra.mxu0 %v540_v63  ;;  %2167 = vmatpush.xpose.msra.mxu2 %v542_v0  ;;  %v629_v63 = vld [vmem:[#allocation5 + $0x11c8] sm:$0xff]  ;;  %v631_v0 = vld [vmem:[#allocation5 + $0x11d8] sm:$0xff] }
 0x1ac   :  { %2147 = vmatpush.xpose.msra.mxu1 %v541_v2  ;;  %2187 = vmatpush.xpose.msra.mxu3 %v543_v3  ;;  %v616_v2 = vld [vmem:[#allocation5 + $0x1160] sm:$0xff]  ;;  %v618_v3 = vld [vmem:[#allocation5 + $0x1170] sm:$0xff] }
 0x1af   :  { %2128 = vmatpush.xpose.msra.mxu0 %v528_v5  ;;  %2168 = vmatpush.xpose.msra.mxu2 %v530_v6  ;;  %v617_v5 = vld [vmem:[#allocation5 + $0x1168] sm:$0xff]  ;;  %v619_v6 = vld [vmem:[#allocation5 + $0x1178] sm:$0xff] }
 0x1b0   :  { %2148 = vmatpush.xpose.msra.mxu1 %v529_v8  ;;  %2188 = vmatpush.xpose.msra.mxu3 %v531_v11  ;;  %v604_v8 = vld [vmem:[#allocation5 + $0x1100] sm:$0xff]  ;;  %v606_v11 = vld [vmem:[#allocation5 + $0x1110] sm:$0xff] }
 0x1b3   :  { %2129 = vmatpush.xpose.msra.mxu0 %v516_v15  ;;  %2169 = vmatpush.xpose.msra.mxu2 %v518_v16 }
 0x1b4   :  { %2149 = vmatpush.xpose.msra.mxu1 %v517_v19  ;;  %2189 = vmatpush.xpose.msra.mxu3 %v519_v22 }
 0x1b7   :  { %2130 = vmatpush.xpose.msra.mxu0 %v504_v27  ;;  %2170 = vmatpush.xpose.msra.mxu2 %v506_v28  ;;  %v593_v27 = vld [vmem:[#allocation5 + $0x10a8] sm:$0xff]  ;;  %v595_v28 = vld [vmem:[#allocation5 + $0x10b8] sm:$0xff] }
 0x1b8   :  { %2150 = vmatpush.xpose.msra.mxu1 %v505_v31  ;;  %2190 = vmatpush.xpose.msra.mxu3 %v507_v32  ;;  %v580_v31 = vld [vmem:[#allocation5 + $0x1040] sm:$0xff]  ;;  %v582_v32 = vld [vmem:[#allocation5 + $0x1050] sm:$0xff] }
 0x1bb   :  { %2131 = vmatpush.xpose.msra.mxu0 %v492_v62  ;;  %2171 = vmatpush.xpose.msra.mxu2 %v494_v39  ;;  %v581_v62 = vld [vmem:[#allocation5 + $0x1048] sm:$0xff]  ;;  %v583_v39 = vld [vmem:[#allocation5 + $0x1058] sm:$0xff] }
 0x1bc   :  { %2151 = vmatpush.xpose.msra.mxu1 %v493_v41  ;;  %2191 = vmatpush.xpose.msra.mxu3 %v495_v42  ;;  %v570_v41 = vld [vmem:[#allocation5 + $0xff0] sm:$0xff]  ;;  %v569_v42 = vld [vmem:[#allocation5 + $0xfe8] sm:$0xff] }
 0x1bf   :  { %2132 = vmatpush.xpose.msra.mxu0 %v480_v43  ;;  %2172 = vmatpush.xpose.msra.mxu2 %v482_v44  ;;  %v571_v43 = vld [vmem:[#allocation5 + $0xff8] sm:$0xff]  ;;  %v556_v44 = vld [vmem:[#allocation5 + $0xf80] sm:$0xff] }
 0x1c0   :  { %2152 = vmatpush.xpose.msra.mxu1 %v481_v45  ;;  %2192 = vmatpush.xpose.msra.mxu3 %v483_v46  ;;  %v558_v45 = vld [vmem:[#allocation5 + $0xf90] sm:$0xff]  ;;  %v557_v46 = vld [vmem:[#allocation5 + $0xf88] sm:$0xff] }
 0x1c3   :  { %2133 = vmatpush.xpose.msra.mxu0 %v468_v47  ;;  %2173 = vmatpush.xpose.msra.mxu2 %v470_v48  ;;  %v559_v47 = vld [vmem:[#allocation5 + $0xf98] sm:$0xff]  ;;  %v544_v48 = vld [vmem:[#allocation5 + $0xf20] sm:$0xff] }
 0x1c4   :  { %2153 = vmatpush.xpose.msra.mxu1 %v469_v49  ;;  %2193 = vmatpush.xpose.msra.mxu3 %v471_v50  ;;  %v546_v49 = vld [vmem:[#allocation5 + $0xf30] sm:$0xff]  ;;  %v545_v50 = vld [vmem:[#allocation5 + $0xf28] sm:$0xff] }
 0x1c7   :  { %2134 = vmatpush.xpose.msra.mxu0 %v456_v51  ;;  %2174 = vmatpush.xpose.msra.mxu2 %v458_v52  ;;  %v547_v51 = vld [vmem:[#allocation5 + $0xf38] sm:$0xff]  ;;  %v532_v52 = vld [vmem:[#allocation5 + $0xec0] sm:$0xff] }
 0x1c8   :  { %2154 = vmatpush.xpose.msra.mxu1 %v457_v53  ;;  %2194 = vmatpush.xpose.msra.mxu3 %v459_v54  ;;  %v534_v53 = vld [vmem:[#allocation5 + $0xed0] sm:$0xff]  ;;  %v533_v54 = vld [vmem:[#allocation5 + $0xec8] sm:$0xff] }
 0x1cb   :  { %2135 = vmatpush.xpose.msra.mxu0 %v444_v55  ;;  %2175 = vmatpush.xpose.msra.mxu2 %v446_v56  ;;  %v1977_v15 = vpop.f32.mrf.mxu0  ;;  %v535_v55 = vld [vmem:[#allocation5 + $0xed8] sm:$0xff]  ;;  %v520_v56 = vld [vmem:[#allocation5 + $0xe60] sm:$0xff] }
 0x1cc   :  { %2155 = vmatpush.xpose.msra.mxu1 %v445_v59  ;;  %2195 = vmatpush.xpose.msra.mxu3 %v447_v60  ;;  %v1978_v16 = vadd.f32 %v1977_v15, %v3830_v40  ;;  %v568_v40 = vld [vmem:[#allocation5 + $0xfe0] sm:$0xff]  ;;  %v523_v59 = vld [vmem:[#allocation5 + $0xe78] sm:$0xff]  ;;  %v486_v15 = vld [vmem:[#allocation5 + $0xd50] sm:$0xff] }
 0x1cd   :  { %v508_v60 = vld [vmem:[#allocation5 + $0xe00] sm:$0xff] }
 0x1ce   :  { %2136 = vmatmul.f32.vlgmr.msra.gmra.mxu0 %v3758_v33  ;;  %2176 = vmatmul.f32.vlgmr.msra.gmra.mxu2 %v3761_v34  ;;  %v1997_v19 = vpop.f32.mrf.mxu1 }
 0x1cf   :  { %2200 = vmatpush.xpose.msrb.mxu0 %v628_v57  ;;  %2240 = vmatpush.xpose.msrb.mxu2 %v630_v58  ;;  %v1998_v22 = vadd.f32 %v1997_v19, %v1978_v16  ;;  %v522_v57 = vld [vmem:[#allocation5 + $0xe70] sm:$0xff]  ;;  %v521_v58 = vld [vmem:[#allocation5 + $0xe68] sm:$0xff] }
 0x1d0   :  { %2220 = vmatpush.xpose.msrb.mxu1 %v629_v63  ;;  %2260 = vmatpush.xpose.msrb.mxu3 %v631_v0  ;;  %v510_v63 = vld [vmem:[#allocation5 + $0xe10] sm:$0xff]  ;;  %v509_v0 = vld [vmem:[#allocation5 + $0xe08] sm:$0xff] }
 0x1d1   :  { %2156 = vmatmul.f32.vlgmr.msra.gmra.mxu1 %v3766_v37  ;;  %2196 = vmatmul.f32.vlgmr.msra.gmra.mxu3 %v3769_v38  ;;  %v2017_v29 = vpop.f32.mrf.mxu2  ;;  %v485_v16 = vld [vmem:[#allocation5 + $0xd48] sm:$0xff]  ;;  %v474_v19 = vld [vmem:[#allocation5 + $0xcf0] sm:$0xff] }
 0x1d2   :  { %v2018_v30 = vadd.f32 %v2017_v29, %v1998_v22  ;;  %v473_v22 = vld [vmem:[#allocation5 + $0xce8] sm:$0xff]  ;;  %v463_v29 = vld [vmem:[#allocation5 + $0xc98] sm:$0xff] }
 0x1d3   :  { %2201 = vmatpush.xpose.msrb.mxu0 %v616_v2  ;;  %2241 = vmatpush.xpose.msrb.mxu2 %v618_v3  ;;  %v511_v2 = vld [vmem:[#allocation5 + $0xe18] sm:$0xff]  ;;  %v496_v3 = vld [vmem:[#allocation5 + $0xda0] sm:$0xff] }
 0x1d4   :  { %2221 = vmatpush.xpose.msrb.mxu1 %v617_v5  ;;  %2261 = vmatpush.xpose.msrb.mxu3 %v619_v6  ;;  %v2037_v35 = vpop.f32.mrf.mxu3  ;;  %v498_v5 = vld [vmem:[#allocation5 + $0xdb0] sm:$0xff]  ;;  %v497_v6 = vld [vmem:[#allocation5 + $0xda8] sm:$0xff] }
 0x1d5   :  { %v3837_v36 = vadd.f32 %v2037_v35, %v2018_v30  ;;  %v448_v30 = vld [vmem:[#allocation5 + $0xc20] sm:$0xff]  ;;  %v634_v35 = vld [vmem:[#allocation5 + $0x11f0] sm:$0xff] }
 0x1d7   :  { %2202 = vmatpush.xpose.msrb.mxu0 %v604_v8  ;;  %2242 = vmatpush.xpose.msrb.mxu2 %v606_v11  ;;  %v499_v8 = vld [vmem:[#allocation5 + $0xdb8] sm:$0xff]  ;;  %v484_v11 = vld [vmem:[#allocation5 + $0xd40] sm:$0xff] }
 0x1d8   :  { %2222 = vmatpush.xpose.msrb.mxu1 %v605_v17  ;;  %2262 = vmatpush.xpose.msrb.mxu3 %v607_v18  ;;  %v487_v17 = vld [vmem:[#allocation5 + $0xd58] sm:$0xff]  ;;  %v472_v18 = vld [vmem:[#allocation5 + $0xce0] sm:$0xff] }
 0x1db   :  { %2203 = vmatpush.xpose.msrb.mxu0 %v592_v23  ;;  %2243 = vmatpush.xpose.msrb.mxu2 %v594_v26  ;;  %v475_v23 = vld [vmem:[#allocation5 + $0xcf8] sm:$0xff]  ;;  %v460_v26 = vld [vmem:[#allocation5 + $0xc80] sm:$0xff] }
 0x1dc   :  { %2223 = vmatpush.xpose.msrb.mxu1 %v593_v27  ;;  %2263 = vmatpush.xpose.msrb.mxu3 %v595_v28  ;;  %v462_v27 = vld [vmem:[#allocation5 + $0xc90] sm:$0xff]  ;;  %v461_v28 = vld [vmem:[#allocation5 + $0xc88] sm:$0xff] }
 0x1df   :  { %2204 = vmatpush.xpose.msrb.mxu0 %v580_v31  ;;  %2244 = vmatpush.xpose.msrb.mxu2 %v582_v32  ;;  %v450_v31 = vld [vmem:[#allocation5 + $0xc30] sm:$0xff]  ;;  %v632_v32 = vld [vmem:[#allocation5 + $0x11e0] sm:$0xff] }
 0x1e0   :  { %2224 = vmatpush.xpose.msrb.mxu1 %v581_v62  ;;  %2264 = vmatpush.xpose.msrb.mxu3 %v583_v39  ;;  %v449_v62 = vld [vmem:[#allocation5 + $0xc28] sm:$0xff]  ;;  %v451_v39 = vld [vmem:[#allocation5 + $0xc38] sm:$0xff] }
 0x1e3   :  { %2205 = vmatpush.xpose.msrb.mxu0 %v568_v40  ;;  %2245 = vmatpush.xpose.msrb.mxu2 %v570_v41  ;;  %v633_v40 = vld [vmem:[#allocation5 + $0x11e8] sm:$0xff]  ;;  %v635_v41 = vld [vmem:[#allocation5 + $0x11f8] sm:$0xff] }
 0x1e4   :  { %2225 = vmatpush.xpose.msrb.mxu1 %v569_v42  ;;  %2265 = vmatpush.xpose.msrb.mxu3 %v571_v43  ;;  %v620_v42 = vld [vmem:[#allocation5 + $0x1180] sm:$0xff]  ;;  %v622_v43 = vld [vmem:[#allocation5 + $0x1190] sm:$0xff] }
 0x1e7   :  { %2206 = vmatpush.xpose.msrb.mxu0 %v556_v44  ;;  %2246 = vmatpush.xpose.msrb.mxu2 %v558_v45  ;;  %v621_v44 = vld [vmem:[#allocation5 + $0x1188] sm:$0xff]  ;;  %v623_v45 = vld [vmem:[#allocation5 + $0x1198] sm:$0xff] }
 0x1e8   :  { %2226 = vmatpush.xpose.msrb.mxu1 %v557_v46  ;;  %2266 = vmatpush.xpose.msrb.mxu3 %v559_v47  ;;  %v1818_v47 = vadd.f32 %v3821_v61, %v3811_v12  ;;  %v598_v12 = vld [vmem:[#allocation5 + $0x10d0] sm:$0xff] }
 0x1eb   :  { %2207 = vmatpush.xpose.msrb.mxu0 %v544_v48  ;;  %2247 = vmatpush.xpose.msrb.mxu2 %v546_v49  ;;  %v608_v49 = vld [vmem:[#allocation5 + $0x1120] sm:$0xff] }
 0x1ec   :  { %2227 = vmatpush.xpose.msrb.mxu1 %v545_v50  ;;  %2267 = vmatpush.xpose.msrb.mxu3 %v547_v51  ;;  %v610_v50 = vld [vmem:[#allocation5 + $0x1130] sm:$0xff] }
 0x1ef   :  { %2208 = vmatpush.xpose.msrb.mxu0 %v532_v52  ;;  %2248 = vmatpush.xpose.msrb.mxu2 %v534_v53  ;;  %v609_v52 = vld [vmem:[#allocation5 + $0x1128] sm:$0xff]  ;;  %v611_v53 = vld [vmem:[#allocation5 + $0x1138] sm:$0xff] }
 0x1f0   :  { %2228 = vmatpush.xpose.msrb.mxu1 %v533_v54  ;;  %2268 = vmatpush.xpose.msrb.mxu3 %v535_v55  ;;  %v1838_v54 = vadd.f32 %v3823_v1, %v1818_v47  ;;  %v503_v47 = vld [vmem:[#allocation5 + $0xdd8] sm:$0xff] }
 0x1f3   :  { %2209 = vmatpush.xpose.msrb.mxu0 %v520_v56  ;;  %2249 = vmatpush.xpose.msrb.mxu2 %v522_v57  ;;  %v596_v56 = vld [vmem:[#allocation5 + $0x10c0] sm:$0xff] }
 0x1f4   :  { %2229 = vmatpush.xpose.msrb.mxu1 %v521_v58  ;;  %2269 = vmatpush.xpose.msrb.mxu3 %v523_v59  ;;  %v597_v58 = vld [vmem:[#allocation5 + $0x10c8] sm:$0xff]  ;;  %v599_v59 = vld [vmem:[#allocation5 + $0x10d8] sm:$0xff] }
 0x1f7   :  { %2210 = vmatpush.xpose.msrb.mxu0 %v508_v60  ;;  %2250 = vmatpush.xpose.msrb.mxu2 %v510_v63 }
 0x1f8   :  { %2230 = vmatpush.xpose.msrb.mxu1 %v509_v0  ;;  %2270 = vmatpush.xpose.msrb.mxu3 %v511_v2  ;;  %v584_v0 = vld [vmem:[#allocation5 + $0x1060] sm:$0xff]  ;;  %v586_v2 = vld [vmem:[#allocation5 + $0x1070] sm:$0xff] }
 0x1fb   :  { %2211 = vmatpush.xpose.msrb.mxu0 %v496_v3  ;;  %2251 = vmatpush.xpose.msrb.mxu2 %v498_v5  ;;  %v585_v5 = vld [vmem:[#allocation5 + $0x1068] sm:$0xff] }
 0x1fc   :  { %2231 = vmatpush.xpose.msrb.mxu1 %v497_v6  ;;  %2271 = vmatpush.xpose.msrb.mxu3 %v499_v8  ;;  %v587_v6 = vld [vmem:[#allocation5 + $0x1078] sm:$0xff]  ;;  %v572_v8 = vld [vmem:[#allocation5 + $0x1000] sm:$0xff] }
 0x1ff   :  { %2212 = vmatpush.xpose.msrb.mxu0 %v484_v11  ;;  %2252 = vmatpush.xpose.msrb.mxu2 %v486_v15  ;;  %v574_v11 = vld [vmem:[#allocation5 + $0x1010] sm:$0xff]  ;;  %v573_v15 = vld [vmem:[#allocation5 + $0x1008] sm:$0xff] }
 0x200   :  { %2232 = vmatpush.xpose.msrb.mxu1 %v485_v16  ;;  %2272 = vmatpush.xpose.msrb.mxu3 %v487_v17  ;;  %v575_v16 = vld [vmem:[#allocation5 + $0x1018] sm:$0xff]  ;;  %v560_v17 = vld [vmem:[#allocation5 + $0xfa0] sm:$0xff] }
 0x203   :  { %2213 = vmatpush.xpose.msrb.mxu0 %v472_v18  ;;  %2253 = vmatpush.xpose.msrb.mxu2 %v474_v19  ;;  %v562_v18 = vld [vmem:[#allocation5 + $0xfb0] sm:$0xff]  ;;  %v563_v19 = vld [vmem:[#allocation5 + $0xfb8] sm:$0xff] }
 0x204   :  { %2233 = vmatpush.xpose.msrb.mxu1 %v473_v22  ;;  %2273 = vmatpush.xpose.msrb.mxu3 %v475_v23  ;;  %v548_v22 = vld [vmem:[#allocation5 + $0xf40] sm:$0xff]  ;;  %v550_v23 = vld [vmem:[#allocation5 + $0xf50] sm:$0xff] }
 0x207   :  { %2214 = vmatpush.xpose.msrb.mxu0 %v460_v26  ;;  %2254 = vmatpush.xpose.msrb.mxu2 %v462_v27  ;;  %v549_v26 = vld [vmem:[#allocation5 + $0xf48] sm:$0xff]  ;;  %v551_v27 = vld [vmem:[#allocation5 + $0xf58] sm:$0xff] }
 0x208   :  { %2234 = vmatpush.xpose.msrb.mxu1 %v461_v28  ;;  %2274 = vmatpush.xpose.msrb.mxu3 %v463_v29  ;;  %v536_v28 = vld [vmem:[#allocation5 + $0xee0] sm:$0xff]  ;;  %v538_v29 = vld [vmem:[#allocation5 + $0xef0] sm:$0xff] }
 0x20b   :  { %2215 = vmatpush.xpose.msrb.mxu0 %v448_v30  ;;  %2255 = vmatpush.xpose.msrb.mxu2 %v450_v31  ;;  %v2057_v46 = vpop.f32.mrf.mxu0  ;;  %v537_v30 = vld [vmem:[#allocation5 + $0xee8] sm:$0xff]  ;;  %v539_v31 = vld [vmem:[#allocation5 + $0xef8] sm:$0xff] }
 0x20c   :  { %2235 = vmatpush.xpose.msrb.mxu1 %v449_v62  ;;  %2275 = vmatpush.xpose.msrb.mxu3 %v451_v39  ;;  %v2058_v48 = vadd.f32 %v2057_v46, %v3837_v36  ;;  %v1858_v36 = vadd.f32 %v3825_v4, %v1838_v54  ;;  %v525_v62 = vld [vmem:[#allocation5 + $0xe88] sm:$0xff]  ;;  %v527_v39 = vld [vmem:[#allocation5 + $0xe98] sm:$0xff] }
 0x20d   :  { %v501_v46 = vld [vmem:[#allocation5 + $0xdc8] sm:$0xff] }
 0x20e   :  { %2256 = vmatmul.f32.vlgmr.msrb.gmra.mxu2 %v3774_v9  ;;  %2216 = vmatmul.f32.vlgmr.msrb.gmra.mxu0 %v3777_v10  ;;  %v2077_v51 = vpop.f32.mrf.mxu1  ;;  %v1878_v1 = vadd.f32 %v3827_v7, %v1858_v36  ;;  %v561_v7 = vld [vmem:[#allocation5 + $0xfa8] sm:$0xff]  ;;  %v467_v36 = vld [vmem:[#allocation5 + $0xcb8] sm:$0xff] }
 0x20f   :  { %2280 = vmatpush.xpose.msra.mxu0 %v632_v32  ;;  %2320 = vmatpush.xpose.msra.mxu2 %v634_v35  ;;  %v2078_v55 = vadd.f32 %v2077_v51, %v2058_v48  ;;  %v524_v32 = vld [vmem:[#allocation5 + $0xe80] sm:$0xff]  ;;  %v526_v35 = vld [vmem:[#allocation5 + $0xe90] sm:$0xff]  ;;  %v491_v51 = vld [vmem:[#allocation5 + $0xd78] sm:$0xff] }
 0x210   :  { %2300 = vmatpush.xpose.msra.mxu1 %v633_v40  ;;  %2340 = vmatpush.xpose.msra.mxu3 %v635_v41  ;;  %v512_v40 = vld [vmem:[#allocation5 + $0xe20] sm:$0xff]  ;;  %v514_v41 = vld [vmem:[#allocation5 + $0xe30] sm:$0xff]  ;;  %v477_v54 = vld [vmem:[#allocation5 + $0xd08] sm:$0xff] }
 0x211   :  { %2276 = vmatmul.f32.vlgmr.msrb.gmra.mxu3 %v3780_v13  ;;  %2236 = vmatmul.f32.vlgmr.msrb.gmra.mxu1 %v3783_v14  ;;  %v2097_v61 = vpop.f32.mrf.mxu2  ;;  %v488_v48 = vld [vmem:[#allocation5 + $0xd60] sm:$0xff] }
 0x212   :  { %v2098_v57 = vadd.f32 %v2097_v61, %v2078_v55  ;;  %v479_v55 = vld [vmem:[#allocation5 + $0xd18] sm:$0xff]  ;;  %v465_v61 = vld [vmem:[#allocation5 + $0xca8] sm:$0xff] }
 0x213   :  { %2281 = vmatpush.xpose.msra.mxu0 %v620_v42  ;;  %2321 = vmatpush.xpose.msra.mxu2 %v622_v43  ;;  %v513_v42 = vld [vmem:[#allocation5 + $0xe28] sm:$0xff]  ;;  %v515_v43 = vld [vmem:[#allocation5 + $0xe38] sm:$0xff] }
 0x214   :  { %2301 = vmatpush.xpose.msra.mxu1 %v621_v44  ;;  %2341 = vmatpush.xpose.msra.mxu3 %v623_v45  ;;  %v2117_v60 = vpop.f32.mrf.mxu3  ;;  %v500_v44 = vld [vmem:[#allocation5 + $0xdc0] sm:$0xff]  ;;  %v502_v45 = vld [vmem:[#allocation5 + $0xdd0] sm:$0xff] }
 0x215   :  { %v2118_v63 = vadd.f32 %v2117_v60, %v2098_v57  ;;  %v452_v57 = vld [vmem:[#allocation5 + $0xc40] sm:$0xff]  ;;  %v818_v60 = vld [vmem:[#allocation5 + $0x17b0] sm:$0xff] }
 0x217   :  { %2282 = vmatpush.xpose.msra.mxu0 %v608_v49  ;;  %2322 = vmatpush.xpose.msra.mxu2 %v610_v50  ;;  %v3568_v3 = vrot.slane %v2118_v63, 7  ;;  %v490_v49 = vld [vmem:[#allocation5 + $0xd70] sm:$0xff]  ;;  %v489_v50 = vld [vmem:[#allocation5 + $0xd68] sm:$0xff] }
 0x218   :  { %2302 = vmatpush.xpose.msra.mxu1 %v609_v52  ;;  %2342 = vmatpush.xpose.msra.mxu3 %v611_v53  ;;  %v476_v52 = vld [vmem:[#allocation5 + $0xd00] sm:$0xff]  ;;  %v478_v53 = vld [vmem:[#allocation5 + $0xd10] sm:$0xff]  ;;  %v453_v63 = vld [vmem:[#allocation5 + $0xc48] sm:$0xff] }
 0x219   :  { %v3849_v4 = vsel %vm3575_vm0, %v1878_v1, %v3568_v3  ;;  %v819_v1 = vld [vmem:[#allocation5 + $0x17b8] sm:$0xff]  ;;  %v804_v3 = vld [vmem:[#allocation5 + $0x1740] sm:$0xff] }
 0x21b   :  { %2283 = vmatpush.xpose.msra.mxu0 %v596_v56  ;;  %2323 = vmatpush.xpose.msra.mxu2 %v598_v12  ;;  %v464_v56 = vld [vmem:[#allocation5 + $0xca0] sm:$0xff]  ;;  %v466_v12 = vld [vmem:[#allocation5 + $0xcb0] sm:$0xff] }
 0x21c   :  { %2303 = vmatpush.xpose.msra.mxu1 %v597_v58  ;;  %2343 = vmatpush.xpose.msra.mxu3 %v599_v59  ;;  %v454_v58 = vld [vmem:[#allocation5 + $0xc50] sm:$0xff]  ;;  %v816_v59 = vld [vmem:[#allocation5 + $0x17a0] sm:$0xff] }
 0x21f   :  { %2284 = vmatpush.xpose.msra.mxu0 %v584_v0  ;;  %2324 = vmatpush.xpose.msra.mxu2 %v586_v2  ;;  %v455_v0 = vld [vmem:[#allocation5 + $0xc58] sm:$0xff]  ;;  %v817_v2 = vld [vmem:[#allocation5 + $0x17a8] sm:$0xff] }
 0x220   :  { %2304 = vmatpush.xpose.msra.mxu1 %v585_v5  ;;  %2344 = vmatpush.xpose.msra.mxu3 %v587_v6  ;;  %v806_v5 = vld [vmem:[#allocation5 + $0x1750] sm:$0xff]  ;;  %v805_v6 = vld [vmem:[#allocation5 + $0x1748] sm:$0xff] }
 0x223   :  { %2285 = vmatpush.xpose.msra.mxu0 %v572_v8  ;;  %2325 = vmatpush.xpose.msra.mxu2 %v574_v11  ;;  %v807_v8 = vld [vmem:[#allocation5 + $0x1758] sm:$0xff]  ;;  %v792_v11 = vld [vmem:[#allocation5 + $0x16e0] sm:$0xff] }
 0x224   :  { %2305 = vmatpush.xpose.msra.mxu1 %v573_v15  ;;  %2345 = vmatpush.xpose.msra.mxu3 %v575_v16  ;;  %v794_v15 = vld [vmem:[#allocation5 + $0x16f0] sm:$0xff]  ;;  %v793_v16 = vld [vmem:[#allocation5 + $0x16e8] sm:$0xff] }
 0x227   :  { %2286 = vmatpush.xpose.msra.mxu0 %v560_v17  ;;  %2326 = vmatpush.xpose.msra.mxu2 %v562_v18  ;;  %v795_v17 = vld [vmem:[#allocation5 + $0x16f8] sm:$0xff]  ;;  %v780_v18 = vld [vmem:[#allocation5 + $0x1680] sm:$0xff] }
 0x228   :  { %2306 = vmatpush.xpose.msra.mxu1 %v561_v7  ;;  %2346 = vmatpush.xpose.msra.mxu3 %v563_v19  ;;  %v782_v7 = vld [vmem:[#allocation5 + $0x1690] sm:$0xff]  ;;  %v781_v19 = vld [vmem:[#allocation5 + $0x1688] sm:$0xff] }
 0x22b   :  { %2287 = vmatpush.xpose.msra.mxu0 %v548_v22  ;;  %2327 = vmatpush.xpose.msra.mxu2 %v550_v23  ;;  %v783_v22 = vld [vmem:[#allocation5 + $0x1698] sm:$0xff]  ;;  %v768_v23 = vld [vmem:[#allocation5 + $0x1620] sm:$0xff] }
 0x22c   :  { %2307 = vmatpush.xpose.msra.mxu1 %v549_v26  ;;  %2347 = vmatpush.xpose.msra.mxu3 %v551_v27  ;;  %v770_v26 = vld [vmem:[#allocation5 + $0x1630] sm:$0xff]  ;;  %v769_v27 = vld [vmem:[#allocation5 + $0x1628] sm:$0xff] }
 0x22f   :  { %2288 = vmatpush.xpose.msra.mxu0 %v536_v28  ;;  %2328 = vmatpush.xpose.msra.mxu2 %v538_v29  ;;  %v771_v28 = vld [vmem:[#allocation5 + $0x1638] sm:$0xff]  ;;  %v756_v29 = vld [vmem:[#allocation5 + $0x15c0] sm:$0xff] }
 0x230   :  { %2308 = vmatpush.xpose.msra.mxu1 %v537_v30  ;;  %2348 = vmatpush.xpose.msra.mxu3 %v539_v31  ;;  %v758_v30 = vld [vmem:[#allocation5 + $0x15d0] sm:$0xff]  ;;  %v757_v31 = vld [vmem:[#allocation5 + $0x15c8] sm:$0xff] }
 0x233   :  { %2289 = vmatpush.xpose.msra.mxu0 %v524_v32  ;;  %2329 = vmatpush.xpose.msra.mxu2 %v526_v35  ;;  %v759_v32 = vld [vmem:[#allocation5 + $0x15d8] sm:$0xff]  ;;  %v744_v35 = vld [vmem:[#allocation5 + $0x1560] sm:$0xff] }
 0x234   :  { %2309 = vmatpush.xpose.msra.mxu1 %v525_v62  ;;  %2349 = vmatpush.xpose.msra.mxu3 %v527_v39  ;;  %v746_v62 = vld [vmem:[#allocation5 + $0x1570] sm:$0xff]  ;;  %v745_v39 = vld [vmem:[#allocation5 + $0x1568] sm:$0xff] }
 0x237   :  { %2290 = vmatpush.xpose.msra.mxu0 %v512_v40  ;;  %2330 = vmatpush.xpose.msra.mxu2 %v514_v41  ;;  %v747_v40 = vld [vmem:[#allocation5 + $0x1578] sm:$0xff]  ;;  %v732_v41 = vld [vmem:[#allocation5 + $0x1500] sm:$0xff] }
 0x238   :  { %2310 = vmatpush.xpose.msra.mxu1 %v513_v42  ;;  %2350 = vmatpush.xpose.msra.mxu3 %v515_v43  ;;  %v734_v42 = vld [vmem:[#allocation5 + $0x1510] sm:$0xff]  ;;  %v733_v43 = vld [vmem:[#allocation5 + $0x1508] sm:$0xff] }
 0x23b   :  { %2291 = vmatpush.xpose.msra.mxu0 %v500_v44  ;;  %2331 = vmatpush.xpose.msra.mxu2 %v502_v45  ;;  %v735_v44 = vld [vmem:[#allocation5 + $0x1518] sm:$0xff]  ;;  %v720_v45 = vld [vmem:[#allocation5 + $0x14a0] sm:$0xff] }
 0x23c   :  { %2311 = vmatpush.xpose.msra.mxu1 %v501_v46  ;;  %2351 = vmatpush.xpose.msra.mxu3 %v503_v47  ;;  %v722_v46 = vld [vmem:[#allocation5 + $0x14b0] sm:$0xff]  ;;  %v721_v47 = vld [vmem:[#allocation5 + $0x14a8] sm:$0xff] }
 0x23f   :  { %2292 = vmatpush.xpose.msra.mxu0 %v488_v48  ;;  %2332 = vmatpush.xpose.msra.mxu2 %v490_v49  ;;  %v723_v48 = vld [vmem:[#allocation5 + $0x14b8] sm:$0xff]  ;;  %v708_v49 = vld [vmem:[#allocation5 + $0x1440] sm:$0xff] }
 0x240   :  { %2312 = vmatpush.xpose.msra.mxu1 %v489_v50  ;;  %2352 = vmatpush.xpose.msra.mxu3 %v491_v51  ;;  %v710_v50 = vld [vmem:[#allocation5 + $0x1450] sm:$0xff]  ;;  %v3855_v51 = vld [vmem:[#allocation7] sm:$0xff] }
 0x243   :  { %2293 = vmatpush.xpose.msra.mxu0 %v476_v52  ;;  %2333 = vmatpush.xpose.msra.mxu2 %v478_v53  ;;  %v1626_v52 = vperm.slane %v3855_v51, 2 }
 0x244   :  { %2313 = vmatpush.xpose.msra.mxu1 %v477_v54  ;;  %2353 = vmatpush.xpose.msra.mxu3 %v479_v55  ;;  %v709_v54 = vld [vmem:[#allocation5 + $0x1448] sm:$0xff]  ;;  %v711_v55 = vld [vmem:[#allocation5 + $0x1458] sm:$0xff] }
 0x247   :  { %2294 = vmatpush.xpose.msra.mxu0 %v464_v56  ;;  %2334 = vmatpush.xpose.msra.mxu2 %v466_v12 }
 0x248   :  { %2314 = vmatpush.xpose.msra.mxu1 %v465_v61  ;;  %2354 = vmatpush.xpose.msra.mxu3 %v467_v36  ;;  %v696_v61 = vld [vmem:[#allocation5 + $0x13e0] sm:$0xff]  ;;  %v698_v36 = vld [vmem:[#allocation5 + $0x13f0] sm:$0xff] }
 0x24b   :  { %2295 = vmatpush.xpose.msra.mxu0 %v452_v57  ;;  %2335 = vmatpush.xpose.msra.mxu2 %v454_v58  ;;  %v2137_v53 = vpop.f32.mrf.mxu0 }
 0x24c   :  { %2315 = vmatpush.xpose.msra.mxu1 %v453_v63  ;;  %2355 = vmatpush.xpose.msra.mxu3 %v455_v0  ;;  %v2138_v56 = vadd.f32 %v2137_v53, %v1626_v52  ;;  %v784_v53 = vld [vmem:[#allocation5 + $0x16a0] sm:$0xff] }
 0x24e   :  { %2296 = vmatmul.f32.vlgmr.msra.gmra.mxu0 %v3789_v20  ;;  %2336 = vmatmul.f32.vlgmr.msra.gmra.mxu2 %v3791_v21  ;;  %v2157_v12 = vpop.f32.mrf.mxu1 }
 0x24f   :  { %2360 = vmatpush.xpose.msrb.mxu0 %v816_v59  ;;  %2400 = vmatpush.xpose.msrb.mxu2 %v818_v60  ;;  %v2158_v57 = vadd.f32 %v2157_v12, %v2138_v56  ;;  %v697_v59 = vld [vmem:[#allocation5 + $0x13e8] sm:$0xff]  ;;  %v699_v60 = vld [vmem:[#allocation5 + $0x13f8] sm:$0xff] }
 0x250   :  { %2380 = vmatpush.xpose.msrb.mxu1 %v817_v2  ;;  %2420 = vmatpush.xpose.msrb.mxu3 %v819_v1  ;;  %v684_v2 = vld [vmem:[#allocation5 + $0x1380] sm:$0xff]  ;;  %v686_v1 = vld [vmem:[#allocation5 + $0x1390] sm:$0xff]  ;;  %v787_v56 = vld [vmem:[#allocation5 + $0x16b8] sm:$0xff] }
 0x251   :  { %2316 = vmatmul.f32.vlgmr.msra.gmra.mxu1 %v3793_v24  ;;  %2356 = vmatmul.f32.vlgmr.msra.gmra.mxu3 %v3795_v25  ;;  %v2177_v58 = vpop.f32.mrf.mxu2 }
 0x252   :  { %v2178_v63 = vadd.f32 %v2177_v58, %v2158_v57  ;;  %v774_v57 = vld [vmem:[#allocation5 + $0x1650] sm:$0xff] }
 0x253   :  { %2361 = vmatpush.xpose.msrb.mxu0 %v804_v3  ;;  %2401 = vmatpush.xpose.msrb.mxu2 %v806_v5  ;;  %v685_v5 = vld [vmem:[#allocation5 + $0x1388] sm:$0xff] }
 0x254   :  { %2381 = vmatpush.xpose.msrb.mxu1 %v805_v6  ;;  %2421 = vmatpush.xpose.msrb.mxu3 %v807_v8  ;;  %v2197_v0 = vpop.f32.mrf.mxu3  ;;  %v687_v6 = vld [vmem:[#allocation5 + $0x1398] sm:$0xff]  ;;  %v672_v8 = vld [vmem:[#allocation5 + $0x1320] sm:$0xff] }
 0x255   :  { %v3858_v3 = vadd.f32 %v2197_v0, %v2178_v63  ;;  %v775_v63 = vld [vmem:[#allocation5 + $0x1658] sm:$0xff]  ;;  %v760_v0 = vld [vmem:[#allocation5 + $0x15e0] sm:$0xff] }
 0x257   :  { %2362 = vmatpush.xpose.msrb.mxu0 %v792_v11  ;;  %2402 = vmatpush.xpose.msrb.mxu2 %v794_v15  ;;  %v674_v11 = vld [vmem:[#allocation5 + $0x1330] sm:$0xff]  ;;  %v673_v15 = vld [vmem:[#allocation5 + $0x1328] sm:$0xff] }
 0x258   :  { %2382 = vmatpush.xpose.msrb.mxu1 %v793_v16  ;;  %2422 = vmatpush.xpose.msrb.mxu3 %v795_v17  ;;  %v675_v16 = vld [vmem:[#allocation5 + $0x1338] sm:$0xff]  ;;  %v660_v17 = vld [vmem:[#allocation5 + $0x12c0] sm:$0xff] }
 0x25b   :  { %2363 = vmatpush.xpose.msrb.mxu0 %v780_v18  ;;  %2403 = vmatpush.xpose.msrb.mxu2 %v782_v7  ;;  %v662_v18 = vld [vmem:[#allocation5 + $0x12d0] sm:$0xff]  ;;  %v661_v7 = vld [vmem:[#allocation5 + $0x12c8] sm:$0xff] }
 0x25c   :  { %2383 = vmatpush.xpose.msrb.mxu1 %v781_v19  ;;  %2423 = vmatpush.xpose.msrb.mxu3 %v783_v22  ;;  %v663_v19 = vld [vmem:[#allocation5 + $0x12d8] sm:$0xff]  ;;  %v648_v22 = vld [vmem:[#allocation5 + $0x1260] sm:$0xff] }
 0x25f   :  { %2364 = vmatpush.xpose.msrb.mxu0 %v768_v23  ;;  %2404 = vmatpush.xpose.msrb.mxu2 %v770_v26  ;;  %v650_v23 = vld [vmem:[#allocation5 + $0x1270] sm:$0xff]  ;;  %v649_v26 = vld [vmem:[#allocation5 + $0x1268] sm:$0xff] }
 0x260   :  { %2384 = vmatpush.xpose.msrb.mxu1 %v769_v27  ;;  %2424 = vmatpush.xpose.msrb.mxu3 %v771_v28  ;;  %v651_v27 = vld [vmem:[#allocation5 + $0x1278] sm:$0xff]  ;;  %v636_v28 = vld [vmem:[#allocation5 + $0x1200] sm:$0xff] }
 0x263   :  { %2365 = vmatpush.xpose.msrb.mxu0 %v756_v29  ;;  %2405 = vmatpush.xpose.msrb.mxu2 %v758_v30  ;;  %v638_v29 = vld [vmem:[#allocation5 + $0x1210] sm:$0xff]  ;;  %v820_v30 = vld [vmem:[#allocation5 + $0x17c0] sm:$0xff] }
 0x264   :  { %2385 = vmatpush.xpose.msrb.mxu1 %v757_v31  ;;  %2425 = vmatpush.xpose.msrb.mxu3 %v759_v32  ;;  %v822_v31 = vld [vmem:[#allocation5 + $0x17d0] sm:$0xff]  ;;  %v637_v32 = vld [vmem:[#allocation5 + $0x1208] sm:$0xff] }
 0x267   :  { %2366 = vmatpush.xpose.msrb.mxu0 %v744_v35  ;;  %2406 = vmatpush.xpose.msrb.mxu2 %v746_v62  ;;  %v639_v35 = vld [vmem:[#allocation5 + $0x1218] sm:$0xff]  ;;  %v821_v62 = vld [vmem:[#allocation5 + $0x17c8] sm:$0xff] }
 0x268   :  { %2386 = vmatpush.xpose.msrb.mxu1 %v745_v39  ;;  %2426 = vmatpush.xpose.msrb.mxu3 %v747_v40  ;;  %v823_v39 = vld [vmem:[#allocation5 + $0x17d8] sm:$0xff]  ;;  %v808_v40 = vld [vmem:[#allocation5 + $0x1760] sm:$0xff] }
 0x26b   :  { %2367 = vmatpush.xpose.msrb.mxu0 %v732_v41  ;;  %2407 = vmatpush.xpose.msrb.mxu2 %v734_v42  ;;  %v810_v41 = vld [vmem:[#allocation5 + $0x1770] sm:$0xff]  ;;  %v809_v42 = vld [vmem:[#allocation5 + $0x1768] sm:$0xff] }
 0x26c   :  { %2387 = vmatpush.xpose.msrb.mxu1 %v733_v43  ;;  %2427 = vmatpush.xpose.msrb.mxu3 %v735_v44  ;;  %v811_v43 = vld [vmem:[#allocation5 + $0x1778] sm:$0xff]  ;;  %v796_v44 = vld [vmem:[#allocation5 + $0x1700] sm:$0xff] }
 0x26f   :  { %2368 = vmatpush.xpose.msrb.mxu0 %v720_v45  ;;  %2408 = vmatpush.xpose.msrb.mxu2 %v722_v46  ;;  %v798_v45 = vld [vmem:[#allocation5 + $0x1710] sm:$0xff] }
 0x270   :  { %2388 = vmatpush.xpose.msrb.mxu1 %v721_v47  ;;  %2428 = vmatpush.xpose.msrb.mxu3 %v723_v48  ;;  %v797_v48 = vld [vmem:[#allocation5 + $0x1708] sm:$0xff] }
 0x273   :  { %2369 = vmatpush.xpose.msrb.mxu0 %v708_v49  ;;  %2409 = vmatpush.xpose.msrb.mxu2 %v710_v50  ;;  %v799_v49 = vld [vmem:[#allocation5 + $0x1718] sm:$0xff] }
 0x274   :  { %2389 = vmatpush.xpose.msrb.mxu1 %v709_v54  ;;  %2429 = vmatpush.xpose.msrb.mxu3 %v711_v55  ;;  %v786_v54 = vld [vmem:[#allocation5 + $0x16b0] sm:$0xff]  ;;  %v785_v55 = vld [vmem:[#allocation5 + $0x16a8] sm:$0xff] }
 0x277   :  { %2370 = vmatpush.xpose.msrb.mxu0 %v696_v61  ;;  %2410 = vmatpush.xpose.msrb.mxu2 %v698_v36  ;;  %v772_v36 = vld [vmem:[#allocation5 + $0x1640] sm:$0xff] }
 0x278   :  { %2390 = vmatpush.xpose.msrb.mxu1 %v697_v59  ;;  %2430 = vmatpush.xpose.msrb.mxu3 %v699_v60  ;;  %v773_v60 = vld [vmem:[#allocation5 + $0x1648] sm:$0xff] }
 0x27b   :  { %2371 = vmatpush.xpose.msrb.mxu0 %v684_v2  ;;  %2411 = vmatpush.xpose.msrb.mxu2 %v686_v1  ;;  %v762_v2 = vld [vmem:[#allocation5 + $0x15f0] sm:$0xff]  ;;  %v761_v1 = vld [vmem:[#allocation5 + $0x15e8] sm:$0xff] }
 0x27c   :  { %2391 = vmatpush.xpose.msrb.mxu1 %v685_v5  ;;  %2431 = vmatpush.xpose.msrb.mxu3 %v687_v6  ;;  %v748_v5 = vld [vmem:[#allocation5 + $0x1580] sm:$0xff]  ;;  %v750_v6 = vld [vmem:[#allocation5 + $0x1590] sm:$0xff] }
 0x27f   :  { %2372 = vmatpush.xpose.msrb.mxu0 %v672_v8  ;;  %2412 = vmatpush.xpose.msrb.mxu2 %v674_v11  ;;  %v749_v8 = vld [vmem:[#allocation5 + $0x1588] sm:$0xff]  ;;  %v751_v11 = vld [vmem:[#allocation5 + $0x1598] sm:$0xff] }
 0x280   :  { %2392 = vmatpush.xpose.msrb.mxu1 %v673_v15  ;;  %2432 = vmatpush.xpose.msrb.mxu3 %v675_v16  ;;  %v736_v15 = vld [vmem:[#allocation5 + $0x1520] sm:$0xff]  ;;  %v738_v16 = vld [vmem:[#allocation5 + $0x1530] sm:$0xff] }
 0x283   :  { %2373 = vmatpush.xpose.msrb.mxu0 %v660_v17  ;;  %2413 = vmatpush.xpose.msrb.mxu2 %v662_v18  ;;  %v737_v17 = vld [vmem:[#allocation5 + $0x1528] sm:$0xff]  ;;  %v739_v18 = vld [vmem:[#allocation5 + $0x1538] sm:$0xff] }
 0x284   :  { %2393 = vmatpush.xpose.msrb.mxu1 %v661_v7  ;;  %2433 = vmatpush.xpose.msrb.mxu3 %v663_v19  ;;  %v724_v7 = vld [vmem:[#allocation5 + $0x14c0] sm:$0xff]  ;;  %v726_v19 = vld [vmem:[#allocation5 + $0x14d0] sm:$0xff] }
 0x287   :  { %2374 = vmatpush.xpose.msrb.mxu0 %v648_v22  ;;  %2414 = vmatpush.xpose.msrb.mxu2 %v650_v23  ;;  %v725_v22 = vld [vmem:[#allocation5 + $0x14c8] sm:$0xff]  ;;  %v727_v23 = vld [vmem:[#allocation5 + $0x14d8] sm:$0xff] }
 0x288   :  { %2394 = vmatpush.xpose.msrb.mxu1 %v649_v26  ;;  %2434 = vmatpush.xpose.msrb.mxu3 %v651_v27  ;;  %v712_v26 = vld [vmem:[#allocation5 + $0x1460] sm:$0xff]  ;;  %v714_v27 = vld [vmem:[#allocation5 + $0x1470] sm:$0xff] }
 0x28b   :  { %2375 = vmatpush.xpose.msrb.mxu0 %v636_v28  ;;  %2415 = vmatpush.xpose.msrb.mxu2 %v638_v29  ;;  %v2217_v46 = vpop.f32.mrf.mxu0  ;;  %v713_v28 = vld [vmem:[#allocation5 + $0x1468] sm:$0xff]  ;;  %v715_v29 = vld [vmem:[#allocation5 + $0x1478] sm:$0xff] }
 0x28c   :  { %2395 = vmatpush.xpose.msrb.mxu1 %v637_v32  ;;  %2435 = vmatpush.xpose.msrb.mxu3 %v639_v35  ;;  %v2218_v47 = vadd.f32 %v2217_v46, %v3858_v3  ;;  %v763_v3 = vld [vmem:[#allocation5 + $0x15f8] sm:$0xff]  ;;  %v701_v32 = vld [vmem:[#allocation5 + $0x1408] sm:$0xff]  ;;  %v664_v46 = vld [vmem:[#allocation5 + $0x12e0] sm:$0xff] }
 0x28d   :  { %v703_v35 = vld [vmem:[#allocation5 + $0x1418] sm:$0xff] }
 0x28e   :  { %2376 = vmatmul.f32.vlgmr.msrb.gmra.mxu0 %v3758_v33  ;;  %2416 = vmatmul.f32.vlgmr.msrb.gmra.mxu2 %v3761_v34  ;;  %v2237_v50 = vpop.f32.mrf.mxu1 }
 0x28f   :  { %2440 = vmatpush.xpose.msra.mxu0 %v820_v30  ;;  %2480 = vmatpush.xpose.msra.mxu2 %v822_v31  ;;  %v2238_v52 = vadd.f32 %v2237_v50, %v2218_v47  ;;  %v700_v30 = vld [vmem:[#allocation5 + $0x1400] sm:$0xff]  ;;  %v702_v31 = vld [vmem:[#allocation5 + $0x1410] sm:$0xff] }
 0x290   :  { %2460 = vmatpush.xpose.msra.mxu1 %v821_v62  ;;  %2500 = vmatpush.xpose.msra.mxu3 %v823_v39  ;;  %v688_v62 = vld [vmem:[#allocation5 + $0x13a0] sm:$0xff]  ;;  %v690_v39 = vld [vmem:[#allocation5 + $0x13b0] sm:$0xff] }
 0x291   :  { %2396 = vmatmul.f32.vlgmr.msrb.gmra.mxu1 %v3766_v37  ;;  %2436 = vmatmul.f32.vlgmr.msrb.gmra.mxu3 %v3769_v38  ;;  %v2257_v12 = vpop.f32.mrf.mxu2  ;;  %v666_v47 = vld [vmem:[#allocation5 + $0x12f0] sm:$0xff]  ;;  %v652_v50 = vld [vmem:[#allocation5 + $0x1280] sm:$0xff] }
 0x292   :  { %v2258_v61 = vadd.f32 %v2257_v12, %v2238_v52  ;;  %v654_v52 = vld [vmem:[#allocation5 + $0x1290] sm:$0xff]  ;;  %v824_v12 = vld [vmem:[#allocation5 + $0x17e0] sm:$0xff] }
 0x293   :  { %2441 = vmatpush.xpose.msra.mxu0 %v808_v40  ;;  %2481 = vmatpush.xpose.msra.mxu2 %v810_v41  ;;  %v689_v40 = vld [vmem:[#allocation5 + $0x13a8] sm:$0xff]  ;;  %v691_v41 = vld [vmem:[#allocation5 + $0x13b8] sm:$0xff] }
 0x294   :  { %2461 = vmatpush.xpose.msra.mxu1 %v809_v42  ;;  %2501 = vmatpush.xpose.msra.mxu3 %v811_v43  ;;  %v2277_v58 = vpop.f32.mrf.mxu3  ;;  %v676_v42 = vld [vmem:[#allocation5 + $0x1340] sm:$0xff]  ;;  %v678_v43 = vld [vmem:[#allocation5 + $0x1350] sm:$0xff] }
 0x295   :  { %v3865_v59 = vadd.f32 %v2277_v58, %v2258_v61  ;;  %v826_v61 = vld [vmem:[#allocation5 + $0x17f0] sm:$0xff]  ;;  %v825_v58 = vld [vmem:[#allocation5 + $0x17e8] sm:$0xff] }
 0x297   :  { %2442 = vmatpush.xpose.msra.mxu0 %v796_v44  ;;  %2482 = vmatpush.xpose.msra.mxu2 %v798_v45  ;;  %v677_v44 = vld [vmem:[#allocation5 + $0x1348] sm:$0xff]  ;;  %v679_v45 = vld [vmem:[#allocation5 + $0x1358] sm:$0xff] }
 0x298   :  { %2462 = vmatpush.xpose.msra.mxu1 %v797_v48  ;;  %2502 = vmatpush.xpose.msra.mxu3 %v799_v49  ;;  %v665_v48 = vld [vmem:[#allocation5 + $0x12e8] sm:$0xff]  ;;  %v667_v49 = vld [vmem:[#allocation5 + $0x12f8] sm:$0xff] }
 0x29b   :  { %2443 = vmatpush.xpose.msra.mxu0 %v784_v53  ;;  %2483 = vmatpush.xpose.msra.mxu2 %v786_v54  ;;  %v653_v53 = vld [vmem:[#allocation5 + $0x1288] sm:$0xff]  ;;  %v655_v54 = vld [vmem:[#allocation5 + $0x1298] sm:$0xff] }
 0x29c   :  { %2463 = vmatpush.xpose.msra.mxu1 %v785_v55  ;;  %2503 = vmatpush.xpose.msra.mxu3 %v787_v56  ;;  %v640_v55 = vld [vmem:[#allocation5 + $0x1220] sm:$0xff]  ;;  %v642_v56 = vld [vmem:[#allocation5 + $0x1230] sm:$0xff] }
 0x29f   :  { %2444 = vmatpush.xpose.msra.mxu0 %v772_v36  ;;  %2484 = vmatpush.xpose.msra.mxu2 %v774_v57  ;;  %v641_v36 = vld [vmem:[#allocation5 + $0x1228] sm:$0xff]  ;;  %v643_v57 = vld [vmem:[#allocation5 + $0x1238] sm:$0xff] }
 0x2a0   :  { %2464 = vmatpush.xpose.msra.mxu1 %v773_v60  ;;  %2504 = vmatpush.xpose.msra.mxu3 %v775_v63  ;;  %v827_v60 = vld [vmem:[#allocation5 + $0x17f8] sm:$0xff]  ;;  %v812_v63 = vld [vmem:[#allocation5 + $0x1780] sm:$0xff] }
 0x2a3   :  { %2445 = vmatpush.xpose.msra.mxu0 %v760_v0  ;;  %2485 = vmatpush.xpose.msra.mxu2 %v762_v2  ;;  %v814_v0 = vld [vmem:[#allocation5 + $0x1790] sm:$0xff]  ;;  %v813_v2 = vld [vmem:[#allocation5 + $0x1788] sm:$0xff] }
 0x2a4   :  { %2465 = vmatpush.xpose.msra.mxu1 %v761_v1  ;;  %2505 = vmatpush.xpose.msra.mxu3 %v763_v3  ;;  %v815_v1 = vld [vmem:[#allocation5 + $0x1798] sm:$0xff]  ;;  %v800_v3 = vld [vmem:[#allocation5 + $0x1720] sm:$0xff] }
 0x2a7   :  { %2446 = vmatpush.xpose.msra.mxu0 %v748_v5  ;;  %2486 = vmatpush.xpose.msra.mxu2 %v750_v6  ;;  %v802_v5 = vld [vmem:[#allocation5 + $0x1730] sm:$0xff]  ;;  %v801_v6 = vld [vmem:[#allocation5 + $0x1728] sm:$0xff] }
 0x2a8   :  { %2466 = vmatpush.xpose.msra.mxu1 %v749_v8  ;;  %2506 = vmatpush.xpose.msra.mxu3 %v751_v11  ;;  %v803_v8 = vld [vmem:[#allocation5 + $0x1738] sm:$0xff]  ;;  %v788_v11 = vld [vmem:[#allocation5 + $0x16c0] sm:$0xff] }
 0x2ab   :  { %2447 = vmatpush.xpose.msra.mxu0 %v736_v15  ;;  %2487 = vmatpush.xpose.msra.mxu2 %v738_v16  ;;  %v790_v15 = vld [vmem:[#allocation5 + $0x16d0] sm:$0xff]  ;;  %v789_v16 = vld [vmem:[#allocation5 + $0x16c8] sm:$0xff] }
 0x2ac   :  { %2467 = vmatpush.xpose.msra.mxu1 %v737_v17  ;;  %2507 = vmatpush.xpose.msra.mxu3 %v739_v18  ;;  %v791_v17 = vld [vmem:[#allocation5 + $0x16d8] sm:$0xff]  ;;  %v776_v18 = vld [vmem:[#allocation5 + $0x1660] sm:$0xff] }
 0x2af   :  { %2448 = vmatpush.xpose.msra.mxu0 %v724_v7  ;;  %2488 = vmatpush.xpose.msra.mxu2 %v726_v19  ;;  %v778_v7 = vld [vmem:[#allocation5 + $0x1670] sm:$0xff]  ;;  %v777_v19 = vld [vmem:[#allocation5 + $0x1668] sm:$0xff] }
 0x2b0   :  { %2468 = vmatpush.xpose.msra.mxu1 %v725_v22  ;;  %2508 = vmatpush.xpose.msra.mxu3 %v727_v23  ;;  %v779_v22 = vld [vmem:[#allocation5 + $0x1678] sm:$0xff]  ;;  %v764_v23 = vld [vmem:[#allocation5 + $0x1600] sm:$0xff] }
 0x2b3   :  { %2449 = vmatpush.xpose.msra.mxu0 %v712_v26  ;;  %2489 = vmatpush.xpose.msra.mxu2 %v714_v27  ;;  %v766_v26 = vld [vmem:[#allocation5 + $0x1610] sm:$0xff]  ;;  %v765_v27 = vld [vmem:[#allocation5 + $0x1608] sm:$0xff] }
 0x2b4   :  { %2469 = vmatpush.xpose.msra.mxu1 %v713_v28  ;;  %2509 = vmatpush.xpose.msra.mxu3 %v715_v29  ;;  %v767_v28 = vld [vmem:[#allocation5 + $0x1618] sm:$0xff]  ;;  %v752_v29 = vld [vmem:[#allocation5 + $0x15a0] sm:$0xff] }
 0x2b7   :  { %2450 = vmatpush.xpose.msra.mxu0 %v700_v30  ;;  %2490 = vmatpush.xpose.msra.mxu2 %v702_v31  ;;  %v754_v30 = vld [vmem:[#allocation5 + $0x15b0] sm:$0xff]  ;;  %v753_v31 = vld [vmem:[#allocation5 + $0x15a8] sm:$0xff] }
 0x2b8   :  { %2470 = vmatpush.xpose.msra.mxu1 %v701_v32  ;;  %2510 = vmatpush.xpose.msra.mxu3 %v703_v35  ;;  %v755_v32 = vld [vmem:[#allocation5 + $0x15b8] sm:$0xff]  ;;  %v740_v35 = vld [vmem:[#allocation5 + $0x1540] sm:$0xff] }
 0x2bb   :  { %2451 = vmatpush.xpose.msra.mxu0 %v688_v62  ;;  %2491 = vmatpush.xpose.msra.mxu2 %v690_v39  ;;  %v742_v62 = vld [vmem:[#allocation5 + $0x1550] sm:$0xff]  ;;  %v741_v39 = vld [vmem:[#allocation5 + $0x1548] sm:$0xff] }
 0x2bc   :  { %2471 = vmatpush.xpose.msra.mxu1 %v689_v40  ;;  %2511 = vmatpush.xpose.msra.mxu3 %v691_v41  ;;  %v743_v40 = vld [vmem:[#allocation5 + $0x1558] sm:$0xff]  ;;  %v728_v41 = vld [vmem:[#allocation5 + $0x14e0] sm:$0xff] }
 0x2bf   :  { %2452 = vmatpush.xpose.msra.mxu0 %v676_v42  ;;  %2492 = vmatpush.xpose.msra.mxu2 %v678_v43  ;;  %v730_v42 = vld [vmem:[#allocation5 + $0x14f0] sm:$0xff]  ;;  %v729_v43 = vld [vmem:[#allocation5 + $0x14e8] sm:$0xff] }
 0x2c0   :  { %2472 = vmatpush.xpose.msra.mxu1 %v677_v44  ;;  %2512 = vmatpush.xpose.msra.mxu3 %v679_v45  ;;  %v731_v44 = vld [vmem:[#allocation5 + $0x14f8] sm:$0xff]  ;;  %v716_v45 = vld [vmem:[#allocation5 + $0x1480] sm:$0xff] }
 0x2c3   :  { %2453 = vmatpush.xpose.msra.mxu0 %v664_v46  ;;  %2493 = vmatpush.xpose.msra.mxu2 %v666_v47  ;;  %v718_v46 = vld [vmem:[#allocation5 + $0x1490] sm:$0xff]  ;;  %v717_v47 = vld [vmem:[#allocation5 + $0x1488] sm:$0xff] }
 0x2c4   :  { %2473 = vmatpush.xpose.msra.mxu1 %v665_v48  ;;  %2513 = vmatpush.xpose.msra.mxu3 %v667_v49  ;;  %v719_v48 = vld [vmem:[#allocation5 + $0x1498] sm:$0xff]  ;;  %v704_v49 = vld [vmem:[#allocation5 + $0x1420] sm:$0xff] }
 0x2c7   :  { %2454 = vmatpush.xpose.msra.mxu0 %v652_v50  ;;  %2494 = vmatpush.xpose.msra.mxu2 %v654_v52  ;;  %v706_v50 = vld [vmem:[#allocation5 + $0x1430] sm:$0xff]  ;;  %v705_v52 = vld [vmem:[#allocation5 + $0x1428] sm:$0xff] }
 0x2c8   :  { %2474 = vmatpush.xpose.msra.mxu1 %v653_v53  ;;  %2514 = vmatpush.xpose.msra.mxu3 %v655_v54  ;;  %v707_v53 = vld [vmem:[#allocation5 + $0x1438] sm:$0xff]  ;;  %v692_v54 = vld [vmem:[#allocation5 + $0x13c0] sm:$0xff] }
 0x2cb   :  { %2455 = vmatpush.xpose.msra.mxu0 %v640_v55  ;;  %2495 = vmatpush.xpose.msra.mxu2 %v642_v56  ;;  %v694_v55 = vld [vmem:[#allocation5 + $0x13d0] sm:$0xff]  ;;  %v693_v56 = vld [vmem:[#allocation5 + $0x13c8] sm:$0xff] }
 0x2cc   :  { %2475 = vmatpush.xpose.msra.mxu1 %v641_v36  ;;  %2515 = vmatpush.xpose.msra.mxu3 %v643_v57  ;;  %v682_v36 = vld [vmem:[#allocation5 + $0x1370] sm:$0xff]  ;;  %v681_v57 = vld [vmem:[#allocation5 + $0x1368] sm:$0xff] }
 0x2ce   :  { %2496 = vmatmul.f32.vlgmr.msra.gmra.mxu2 %v3774_v9  ;;  %2456 = vmatmul.f32.vlgmr.msra.gmra.mxu0 %v3777_v10 }
 0x2cf   :  { %2520 = vmatpush.xpose.msrb.mxu0 %v824_v12  ;;  %2560 = vmatpush.xpose.msrb.mxu2 %v826_v61  ;;  %v695_v12 = vld [vmem:[#allocation5 + $0x13d8] sm:$0xff]  ;;  %v680_v61 = vld [vmem:[#allocation5 + $0x1360] sm:$0xff] }
 0x2d0   :  { %2540 = vmatpush.xpose.msrb.mxu1 %v825_v58  ;;  %2580 = vmatpush.xpose.msrb.mxu3 %v827_v60  ;;  %v683_v58 = vld [vmem:[#allocation5 + $0x1378] sm:$0xff]  ;;  %v668_v60 = vld [vmem:[#allocation5 + $0x1300] sm:$0xff] }
 0x2d1   :  { %2516 = vmatmul.f32.vlgmr.msra.gmra.mxu3 %v3780_v13  ;;  %2476 = vmatmul.f32.vlgmr.msra.gmra.mxu1 %v3783_v14 }
 0x2d3   :  { %2521 = vmatpush.xpose.msrb.mxu0 %v812_v63  ;;  %2561 = vmatpush.xpose.msrb.mxu2 %v814_v0  ;;  %v670_v63 = vld [vmem:[#allocation5 + $0x1310] sm:$0xff]  ;;  %v669_v0 = vld [vmem:[#allocation5 + $0x1308] sm:$0xff] }
 0x2d4   :  { %2541 = vmatpush.xpose.msrb.mxu1 %v813_v2  ;;  %2581 = vmatpush.xpose.msrb.mxu3 %v815_v1  ;;  %v671_v2 = vld [vmem:[#allocation5 + $0x1318] sm:$0xff]  ;;  %v656_v1 = vld [vmem:[#allocation5 + $0x12a0] sm:$0xff] }
 0x2d7   :  { %2522 = vmatpush.xpose.msrb.mxu0 %v800_v3  ;;  %2562 = vmatpush.xpose.msrb.mxu2 %v802_v5  ;;  %v658_v3 = vld [vmem:[#allocation5 + $0x12b0] sm:$0xff]  ;;  %v657_v5 = vld [vmem:[#allocation5 + $0x12a8] sm:$0xff] }
 0x2d8   :  { %2542 = vmatpush.xpose.msrb.mxu1 %v801_v6  ;;  %2582 = vmatpush.xpose.msrb.mxu3 %v803_v8  ;;  %v659_v6 = vld [vmem:[#allocation5 + $0x12b8] sm:$0xff]  ;;  %v644_v8 = vld [vmem:[#allocation5 + $0x1240] sm:$0xff] }
 0x2db   :  { %2523 = vmatpush.xpose.msrb.mxu0 %v788_v11  ;;  %2563 = vmatpush.xpose.msrb.mxu2 %v790_v15  ;;  %v646_v11 = vld [vmem:[#allocation5 + $0x1250] sm:$0xff]  ;;  %v1008_v15 = vld [vmem:[#allocation5 + $0x1da0] sm:$0xff] }
 0x2dc   :  { %2543 = vmatpush.xpose.msrb.mxu1 %v789_v16  ;;  %2583 = vmatpush.xpose.msrb.mxu3 %v791_v17  ;;  %v1010_v16 = vld [vmem:[#allocation5 + $0x1db0] sm:$0xff]  ;;  %v645_v17 = vld [vmem:[#allocation5 + $0x1248] sm:$0xff] }
 0x2df   :  { %2524 = vmatpush.xpose.msrb.mxu0 %v776_v18  ;;  %2564 = vmatpush.xpose.msrb.mxu2 %v778_v7  ;;  %v647_v18 = vld [vmem:[#allocation5 + $0x1258] sm:$0xff]  ;;  %v1009_v7 = vld [vmem:[#allocation5 + $0x1da8] sm:$0xff] }
 0x2e0   :  { %2544 = vmatpush.xpose.msrb.mxu1 %v777_v19  ;;  %2584 = vmatpush.xpose.msrb.mxu3 %v779_v22  ;;  %v1011_v19 = vld [vmem:[#allocation5 + $0x1db8] sm:$0xff]  ;;  %v996_v22 = vld [vmem:[#allocation5 + $0x1d40] sm:$0xff] }
 0x2e3   :  { %2525 = vmatpush.xpose.msrb.mxu0 %v764_v23  ;;  %2565 = vmatpush.xpose.msrb.mxu2 %v766_v26  ;;  %v998_v23 = vld [vmem:[#allocation5 + $0x1d50] sm:$0xff]  ;;  %v997_v26 = vld [vmem:[#allocation5 + $0x1d48] sm:$0xff] }
 0x2e4   :  { %2545 = vmatpush.xpose.msrb.mxu1 %v765_v27  ;;  %2585 = vmatpush.xpose.msrb.mxu3 %v767_v28  ;;  %v999_v27 = vld [vmem:[#allocation5 + $0x1d58] sm:$0xff]  ;;  %v984_v28 = vld [vmem:[#allocation5 + $0x1ce0] sm:$0xff] }
 0x2e7   :  { %2526 = vmatpush.xpose.msrb.mxu0 %v752_v29  ;;  %2566 = vmatpush.xpose.msrb.mxu2 %v754_v30  ;;  %v986_v29 = vld [vmem:[#allocation5 + $0x1cf0] sm:$0xff]  ;;  %v985_v30 = vld [vmem:[#allocation5 + $0x1ce8] sm:$0xff] }
 0x2e8   :  { %2546 = vmatpush.xpose.msrb.mxu1 %v753_v31  ;;  %2586 = vmatpush.xpose.msrb.mxu3 %v755_v32  ;;  %v987_v31 = vld [vmem:[#allocation5 + $0x1cf8] sm:$0xff]  ;;  %v972_v32 = vld [vmem:[#allocation5 + $0x1c80] sm:$0xff] }
 0x2eb   :  { %2527 = vmatpush.xpose.msrb.mxu0 %v740_v35  ;;  %2567 = vmatpush.xpose.msrb.mxu2 %v742_v62  ;;  %v974_v35 = vld [vmem:[#allocation5 + $0x1c90] sm:$0xff]  ;;  %v973_v62 = vld [vmem:[#allocation5 + $0x1c88] sm:$0xff] }
 0x2ec   :  { %2547 = vmatpush.xpose.msrb.mxu1 %v741_v39  ;;  %2587 = vmatpush.xpose.msrb.mxu3 %v743_v40  ;;  %v975_v39 = vld [vmem:[#allocation5 + $0x1c98] sm:$0xff]  ;;  %v960_v40 = vld [vmem:[#allocation5 + $0x1c20] sm:$0xff] }
 0x2ef   :  { %2528 = vmatpush.xpose.msrb.mxu0 %v728_v41  ;;  %2568 = vmatpush.xpose.msrb.mxu2 %v730_v42  ;;  %v962_v41 = vld [vmem:[#allocation5 + $0x1c30] sm:$0xff]  ;;  %v961_v42 = vld [vmem:[#allocation5 + $0x1c28] sm:$0xff] }
 0x2f0   :  { %2548 = vmatpush.xpose.msrb.mxu1 %v729_v43  ;;  %2588 = vmatpush.xpose.msrb.mxu3 %v731_v44  ;;  %v963_v43 = vld [vmem:[#allocation5 + $0x1c38] sm:$0xff]  ;;  %v948_v44 = vld [vmem:[#allocation5 + $0x1bc0] sm:$0xff] }
 0x2f3   :  { %2529 = vmatpush.xpose.msrb.mxu0 %v716_v45  ;;  %2569 = vmatpush.xpose.msrb.mxu2 %v718_v46  ;;  %v950_v45 = vld [vmem:[#allocation5 + $0x1bd0] sm:$0xff]  ;;  %v949_v46 = vld [vmem:[#allocation5 + $0x1bc8] sm:$0xff] }
 0x2f4   :  { %2549 = vmatpush.xpose.msrb.mxu1 %v717_v47  ;;  %2589 = vmatpush.xpose.msrb.mxu3 %v719_v48  ;;  %v951_v47 = vld [vmem:[#allocation5 + $0x1bd8] sm:$0xff]  ;;  %v936_v48 = vld [vmem:[#allocation5 + $0x1b60] sm:$0xff] }
 0x2f7   :  { %2530 = vmatpush.xpose.msrb.mxu0 %v704_v49  ;;  %2570 = vmatpush.xpose.msrb.mxu2 %v706_v50  ;;  %v938_v49 = vld [vmem:[#allocation5 + $0x1b70] sm:$0xff]  ;;  %v937_v50 = vld [vmem:[#allocation5 + $0x1b68] sm:$0xff] }
 0x2f8   :  { %2550 = vmatpush.xpose.msrb.mxu1 %v705_v52  ;;  %2590 = vmatpush.xpose.msrb.mxu3 %v707_v53  ;;  %v939_v52 = vld [vmem:[#allocation5 + $0x1b78] sm:$0xff]  ;;  %v3875_v53 = vpop.f32.mrf.mxu0 }
 0x2fb   :  { %2531 = vmatpush.xpose.msrb.mxu0 %v692_v54  ;;  %2571 = vmatpush.xpose.msrb.mxu2 %v694_v55  ;;  %v924_v54 = vld [vmem:[#allocation5 + $0x1b00] sm:$0xff]  ;;  %v926_v55 = vld [vmem:[#allocation5 + $0x1b10] sm:$0xff] }
 0x2fc   :  { %2551 = vmatpush.xpose.msrb.mxu1 %v693_v56  ;;  %2591 = vmatpush.xpose.msrb.mxu3 %v695_v12  ;;  %v3877_v56 = vpop.f32.mrf.mxu1  ;;  %v925_v12 = vld [vmem:[#allocation5 + $0x1b08] sm:$0xff] }
 0x2ff   :  { %2532 = vmatpush.xpose.msrb.mxu0 %v680_v61  ;;  %2572 = vmatpush.xpose.msrb.mxu2 %v682_v36  ;;  %v927_v61 = vld [vmem:[#allocation5 + $0x1b18] sm:$0xff]  ;;  %v3879_v36 = vpop.f32.mrf.mxu2 }
 0x300   :  { %2552 = vmatpush.xpose.msrb.mxu1 %v681_v57  ;;  %2592 = vmatpush.xpose.msrb.mxu3 %v683_v58  ;;  %v912_v57 = vld [vmem:[#allocation5 + $0x1aa0] sm:$0xff]  ;;  %v914_v58 = vld [vmem:[#allocation5 + $0x1ab0] sm:$0xff] }
 0x303   :  { %2533 = vmatpush.xpose.msrb.mxu0 %v668_v60  ;;  %2573 = vmatpush.xpose.msrb.mxu2 %v670_v63  ;;  %v3881_v60 = vpop.f32.mrf.mxu3  ;;  %v913_v63 = vld [vmem:[#allocation5 + $0x1aa8] sm:$0xff] }
 0x304   :  { %2553 = vmatpush.xpose.msrb.mxu1 %v669_v0  ;;  %2593 = vmatpush.xpose.msrb.mxu3 %v671_v2  ;;  %v915_v0 = vld [vmem:[#allocation5 + $0x1ab8] sm:$0xff]  ;;  %v900_v2 = vld [vmem:[#allocation5 + $0x1a40] sm:$0xff] }
 0x307   :  { %2534 = vmatpush.xpose.msrb.mxu0 %v656_v1  ;;  %2574 = vmatpush.xpose.msrb.mxu2 %v658_v3  ;;  %v902_v1 = vld [vmem:[#allocation5 + $0x1a50] sm:$0xff]  ;;  %v1627_v3 = vperm.slane %v3855_v51, 3  ;;  %v876_v51 = vld [vmem:[#allocation5 + $0x1980] sm:$0xff] }
 0x308   :  { %2554 = vmatpush.xpose.msrb.mxu1 %v657_v5  ;;  %2594 = vmatpush.xpose.msrb.mxu3 %v659_v6  ;;  %v901_v6 = vld [vmem:[#allocation5 + $0x1a48] sm:$0xff] }
 0x30b   :  { %2535 = vmatpush.xpose.msrb.mxu0 %v644_v8  ;;  %2575 = vmatpush.xpose.msrb.mxu2 %v646_v11  ;;  %v2377_v5 = vpop.f32.mrf.mxu0  ;;  %v903_v8 = vld [vmem:[#allocation5 + $0x1a58] sm:$0xff] }
 0x30c   :  { %2555 = vmatpush.xpose.msrb.mxu1 %v645_v17  ;;  %2595 = vmatpush.xpose.msrb.mxu3 %v647_v18  ;;  %v2378_v11 = vadd.f32 %v2377_v5, %v1627_v3  ;;  %v890_v17 = vld [vmem:[#allocation5 + $0x19f0] sm:$0xff]  ;;  %v989_v5 = vld [vmem:[#allocation5 + $0x1d08] sm:$0xff] }
 0x30e   :  { %2536 = vmatmul.f32.vlgmr.msrb.gmra.mxu0 %v3789_v20  ;;  %2576 = vmatmul.f32.vlgmr.msrb.gmra.mxu2 %v3791_v21 }
 0x30f   :  { %2600 = vmatpush.xpose.msra.mxu0 %v1008_v15  ;;  %2640 = vmatpush.xpose.msra.mxu2 %v1010_v16  ;;  %v2397_v15 = vpop.f32.mrf.mxu1  ;;  %v888_v16 = vld [vmem:[#allocation5 + $0x19e0] sm:$0xff] }
 0x310   :  { %2620 = vmatpush.xpose.msra.mxu1 %v1009_v7  ;;  %2660 = vmatpush.xpose.msra.mxu3 %v1011_v19  ;;  %v2398_v18 = vadd.f32 %v2397_v15, %v2378_v11  ;;  %v889_v19 = vld [vmem:[#allocation5 + $0x19e8] sm:$0xff]  ;;  %v976_v15 = vld [vmem:[#allocation5 + $0x1ca0] sm:$0xff] }
 0x311   :  { %2556 = vmatmul.f32.vlgmr.msrb.gmra.mxu1 %v3793_v24  ;;  %2596 = vmatmul.f32.vlgmr.msrb.gmra.mxu3 %v3795_v25  ;;  %v2417_v7 = vpop.f32.mrf.mxu2 }
 0x313   :  { %2601 = vmatpush.xpose.msra.mxu0 %v996_v22  ;;  %2641 = vmatpush.xpose.msra.mxu2 %v998_v23  ;;  %v891_v22 = vld [vmem:[#allocation5 + $0x19f8] sm:$0xff]  ;;  %v2418_v23 = vadd.f32 %v2417_v7, %v2398_v18 }
 0x314   :  { %2621 = vmatpush.xpose.msra.mxu1 %v997_v26  ;;  %2661 = vmatpush.xpose.msra.mxu3 %v999_v27  ;;  %v2437_v26 = vpop.f32.mrf.mxu3  ;;  %v878_v27 = vld [vmem:[#allocation5 + $0x1990] sm:$0xff]  ;;  %v979_v18 = vld [vmem:[#allocation5 + $0x1cb8] sm:$0xff] }
 0x317   :  { %2602 = vmatpush.xpose.msra.mxu0 %v984_v28  ;;  %2642 = vmatpush.xpose.msra.mxu2 %v986_v29  ;;  %v3884_v28 = vadd.f32 %v2437_v26, %v2418_v23  ;;  %v877_v29 = vld [vmem:[#allocation5 + $0x1988] sm:$0xff]  ;;  %v966_v23 = vld [vmem:[#allocation5 + $0x1c50] sm:$0xff] }
 0x318   :  { %2622 = vmatpush.xpose.msra.mxu1 %v985_v30  ;;  %2662 = vmatpush.xpose.msra.mxu3 %v987_v31  ;;  %v879_v30 = vld [vmem:[#allocation5 + $0x1998] sm:$0xff]  ;;  %v864_v31 = vld [vmem:[#allocation5 + $0x1920] sm:$0xff] }
 0x31b   :  { %2603 = vmatpush.xpose.msra.mxu0 %v972_v32  ;;  %2643 = vmatpush.xpose.msra.mxu2 %v974_v35  ;;  %v866_v32 = vld [vmem:[#allocation5 + $0x1930] sm:$0xff]  ;;  %v865_v35 = vld [vmem:[#allocation5 + $0x1928] sm:$0xff] }
 0x31c   :  { %2623 = vmatpush.xpose.msra.mxu1 %v973_v62  ;;  %2663 = vmatpush.xpose.msra.mxu3 %v975_v39  ;;  %v867_v62 = vld [vmem:[#allocation5 + $0x1938] sm:$0xff]  ;;  %v852_v39 = vld [vmem:[#allocation5 + $0x18c0] sm:$0xff] }
 0x31f   :  { %2604 = vmatpush.xpose.msra.mxu0 %v960_v40  ;;  %2644 = vmatpush.xpose.msra.mxu2 %v962_v41  ;;  %v854_v40 = vld [vmem:[#allocation5 + $0x18d0] sm:$0xff]  ;;  %v853_v41 = vld [vmem:[#allocation5 + $0x18c8] sm:$0xff] }
 0x320   :  { %2624 = vmatpush.xpose.msra.mxu1 %v961_v42  ;;  %2664 = vmatpush.xpose.msra.mxu3 %v963_v43  ;;  %v855_v42 = vld [vmem:[#allocation5 + $0x18d8] sm:$0xff]  ;;  %v840_v43 = vld [vmem:[#allocation5 + $0x1860] sm:$0xff] }
 0x323   :  { %2605 = vmatpush.xpose.msra.mxu0 %v948_v44  ;;  %2645 = vmatpush.xpose.msra.mxu2 %v950_v45  ;;  %v842_v44 = vld [vmem:[#allocation5 + $0x1870] sm:$0xff]  ;;  %v841_v45 = vld [vmem:[#allocation5 + $0x1868] sm:$0xff] }
 0x324   :  { %2625 = vmatpush.xpose.msra.mxu1 %v949_v46  ;;  %2665 = vmatpush.xpose.msra.mxu3 %v951_v47  ;;  %v843_v46 = vld [vmem:[#allocation5 + $0x1878] sm:$0xff]  ;;  %v828_v47 = vld [vmem:[#allocation5 + $0x1800] sm:$0xff] }
 0x327   :  { %2606 = vmatpush.xpose.msra.mxu0 %v936_v48  ;;  %2646 = vmatpush.xpose.msra.mxu2 %v938_v49  ;;  %v830_v48 = vld [vmem:[#allocation5 + $0x1810] sm:$0xff]  ;;  %v1012_v49 = vld [vmem:[#allocation5 + $0x1dc0] sm:$0xff] }
 0x328   :  { %2626 = vmatpush.xpose.msra.mxu1 %v937_v50  ;;  %2666 = vmatpush.xpose.msra.mxu3 %v939_v52  ;;  %v1014_v50 = vld [vmem:[#allocation5 + $0x1dd0] sm:$0xff]  ;;  %v829_v52 = vld [vmem:[#allocation5 + $0x1808] sm:$0xff] }
 0x32b   :  { %2607 = vmatpush.xpose.msra.mxu0 %v924_v54  ;;  %2647 = vmatpush.xpose.msra.mxu2 %v926_v55  ;;  %v831_v54 = vld [vmem:[#allocation5 + $0x1818] sm:$0xff]  ;;  %v1013_v55 = vld [vmem:[#allocation5 + $0x1dc8] sm:$0xff] }
 0x32c   :  { %2627 = vmatpush.xpose.msra.mxu1 %v925_v12  ;;  %2667 = vmatpush.xpose.msra.mxu3 %v927_v61  ;;  %v1015_v12 = vld [vmem:[#allocation5 + $0x1dd8] sm:$0xff]  ;;  %v1000_v61 = vld [vmem:[#allocation5 + $0x1d60] sm:$0xff] }
 0x32f   :  { %2608 = vmatpush.xpose.msra.mxu0 %v912_v57  ;;  %2648 = vmatpush.xpose.msra.mxu2 %v914_v58  ;;  %v1002_v57 = vld [vmem:[#allocation5 + $0x1d70] sm:$0xff]  ;;  %v1001_v58 = vld [vmem:[#allocation5 + $0x1d68] sm:$0xff] }
 0x330   :  { %2628 = vmatpush.xpose.msra.mxu1 %v913_v63  ;;  %2668 = vmatpush.xpose.msra.mxu3 %v915_v0  ;;  %v1003_v63 = vld [vmem:[#allocation5 + $0x1d78] sm:$0xff]  ;;  %v988_v0 = vld [vmem:[#allocation5 + $0x1d00] sm:$0xff] }
 0x333   :  { %2609 = vmatpush.xpose.msra.mxu0 %v900_v2  ;;  %2649 = vmatpush.xpose.msra.mxu2 %v902_v1  ;;  %v990_v2 = vld [vmem:[#allocation5 + $0x1d10] sm:$0xff] }
 0x334   :  { %2629 = vmatpush.xpose.msra.mxu1 %v901_v6  ;;  %2669 = vmatpush.xpose.msra.mxu3 %v903_v8  ;;  %v991_v6 = vld [vmem:[#allocation5 + $0x1d18] sm:$0xff] }
 0x337   :  { %2610 = vmatpush.xpose.msra.mxu0 %v888_v16  ;;  %2650 = vmatpush.xpose.msra.mxu2 %v890_v17  ;;  %v978_v16 = vld [vmem:[#allocation5 + $0x1cb0] sm:$0xff]  ;;  %v977_v17 = vld [vmem:[#allocation5 + $0x1ca8] sm:$0xff] }
 0x338   :  { %2630 = vmatpush.xpose.msra.mxu1 %v889_v19  ;;  %2670 = vmatpush.xpose.msra.mxu3 %v891_v22  ;;  %v964_v22 = vld [vmem:[#allocation5 + $0x1c40] sm:$0xff] }
 0x33b   :  { %2611 = vmatpush.xpose.msra.mxu0 %v876_v51  ;;  %2651 = vmatpush.xpose.msra.mxu2 %v878_v27  ;;  %v965_v27 = vld [vmem:[#allocation5 + $0x1c48] sm:$0xff] }
 0x33c   :  { %2631 = vmatpush.xpose.msra.mxu1 %v877_v29  ;;  %2671 = vmatpush.xpose.msra.mxu3 %v879_v30  ;;  %v952_v29 = vld [vmem:[#allocation5 + $0x1be0] sm:$0xff]  ;;  %v954_v30 = vld [vmem:[#allocation5 + $0x1bf0] sm:$0xff] }
 0x33f   :  { %2612 = vmatpush.xpose.msra.mxu0 %v864_v31  ;;  %2652 = vmatpush.xpose.msra.mxu2 %v866_v32  ;;  %v953_v31 = vld [vmem:[#allocation5 + $0x1be8] sm:$0xff]  ;;  %v955_v32 = vld [vmem:[#allocation5 + $0x1bf8] sm:$0xff] }
 0x340   :  { %2632 = vmatpush.xpose.msra.mxu1 %v865_v35  ;;  %2672 = vmatpush.xpose.msra.mxu3 %v867_v62  ;;  %v940_v35 = vld [vmem:[#allocation5 + $0x1b80] sm:$0xff]  ;;  %v942_v62 = vld [vmem:[#allocation5 + $0x1b90] sm:$0xff] }
 0x343   :  { %2613 = vmatpush.xpose.msra.mxu0 %v852_v39  ;;  %2653 = vmatpush.xpose.msra.mxu2 %v854_v40  ;;  %v941_v39 = vld [vmem:[#allocation5 + $0x1b88] sm:$0xff]  ;;  %v943_v40 = vld [vmem:[#allocation5 + $0x1b98] sm:$0xff] }
 0x344   :  { %2633 = vmatpush.xpose.msra.mxu1 %v853_v41  ;;  %2673 = vmatpush.xpose.msra.mxu3 %v855_v42  ;;  %v928_v41 = vld [vmem:[#allocation5 + $0x1b20] sm:$0xff]  ;;  %v930_v42 = vld [vmem:[#allocation5 + $0x1b30] sm:$0xff] }
 0x347   :  { %2614 = vmatpush.xpose.msra.mxu0 %v840_v43  ;;  %2654 = vmatpush.xpose.msra.mxu2 %v842_v44  ;;  %v929_v43 = vld [vmem:[#allocation5 + $0x1b28] sm:$0xff]  ;;  %v931_v44 = vld [vmem:[#allocation5 + $0x1b38] sm:$0xff] }
 0x348   :  { %2634 = vmatpush.xpose.msra.mxu1 %v841_v45  ;;  %2674 = vmatpush.xpose.msra.mxu3 %v843_v46  ;;  %v916_v45 = vld [vmem:[#allocation5 + $0x1ac0] sm:$0xff]  ;;  %v918_v46 = vld [vmem:[#allocation5 + $0x1ad0] sm:$0xff] }
 0x34b   :  { %2615 = vmatpush.xpose.msra.mxu0 %v828_v47  ;;  %2655 = vmatpush.xpose.msra.mxu2 %v830_v48  ;;  %v2457_v1 = vpop.f32.mrf.mxu0  ;;  %v917_v47 = vld [vmem:[#allocation5 + $0x1ac8] sm:$0xff]  ;;  %v919_v48 = vld [vmem:[#allocation5 + $0x1ad8] sm:$0xff] }
 0x34c   :  { %2635 = vmatpush.xpose.msra.mxu1 %v829_v52  ;;  %2675 = vmatpush.xpose.msra.mxu3 %v831_v54  ;;  %v2458_v3 = vadd.f32 %v2457_v1, %v3884_v28  ;;  %v967_v28 = vld [vmem:[#allocation5 + $0x1c58] sm:$0xff]  ;;  %v905_v52 = vld [vmem:[#allocation5 + $0x1a68] sm:$0xff]  ;;  %v868_v1 = vld [vmem:[#allocation5 + $0x1940] sm:$0xff] }
 0x34d   :  { %v907_v54 = vld [vmem:[#allocation5 + $0x1a78] sm:$0xff] }
 0x34e   :  { %2616 = vmatmul.f32.vlgmr.msra.gmra.mxu0 %v3758_v33  ;;  %2656 = vmatmul.f32.vlgmr.msra.gmra.mxu2 %v3761_v34  ;;  %v2477_v8 = vpop.f32.mrf.mxu1 }
 0x34f   :  { %2680 = vmatpush.xpose.msrb.mxu0 %v1012_v49  ;;  %2720 = vmatpush.xpose.msrb.mxu2 %v1014_v50  ;;  %v2478_v11 = vadd.f32 %v2477_v8, %v2458_v3  ;;  %v904_v49 = vld [vmem:[#allocation5 + $0x1a60] sm:$0xff]  ;;  %v906_v50 = vld [vmem:[#allocation5 + $0x1a70] sm:$0xff] }
 0x350   :  { %2700 = vmatpush.xpose.msrb.mxu1 %v1013_v55  ;;  %2740 = vmatpush.xpose.msrb.mxu3 %v1015_v12  ;;  %v892_v55 = vld [vmem:[#allocation5 + $0x1a00] sm:$0xff]  ;;  %v894_v12 = vld [vmem:[#allocation5 + $0x1a10] sm:$0xff] }
 0x351   :  { %2636 = vmatmul.f32.vlgmr.msra.gmra.mxu1 %v3766_v37  ;;  %2676 = vmatmul.f32.vlgmr.msra.gmra.mxu3 %v3769_v38  ;;  %v2497_v7 = vpop.f32.mrf.mxu2  ;;  %v870_v3 = vld [vmem:[#allocation5 + $0x1950] sm:$0xff]  ;;  %v856_v8 = vld [vmem:[#allocation5 + $0x18e0] sm:$0xff] }
 0x352   :  { %v2498_v19 = vadd.f32 %v2497_v7, %v2478_v11  ;;  %v858_v11 = vld [vmem:[#allocation5 + $0x18f0] sm:$0xff]  ;;  %v845_v7 = vld [vmem:[#allocation5 + $0x1888] sm:$0xff] }
 0x353   :  { %2681 = vmatpush.xpose.msrb.mxu0 %v1000_v61  ;;  %2721 = vmatpush.xpose.msrb.mxu2 %v1002_v57  ;;  %v893_v61 = vld [vmem:[#allocation5 + $0x1a08] sm:$0xff]  ;;  %v895_v57 = vld [vmem:[#allocation5 + $0x1a18] sm:$0xff] }
 0x354   :  { %2701 = vmatpush.xpose.msrb.mxu1 %v1001_v58  ;;  %2741 = vmatpush.xpose.msrb.mxu3 %v1003_v63  ;;  %v2517_v26 = vpop.f32.mrf.mxu3  ;;  %v880_v58 = vld [vmem:[#allocation5 + $0x19a0] sm:$0xff]  ;;  %v882_v63 = vld [vmem:[#allocation5 + $0x19b0] sm:$0xff] }
 0x355   :  { %v3891_v51 = vadd.f32 %v2517_v26, %v2498_v19  ;;  %v847_v19 = vld [vmem:[#allocation5 + $0x1898] sm:$0xff]  ;;  %v1016_v26 = vld [vmem:[#allocation5 + $0x1de0] sm:$0xff] }
 0x357   :  { %2682 = vmatpush.xpose.msrb.mxu0 %v988_v0  ;;  %2722 = vmatpush.xpose.msrb.mxu2 %v990_v2  ;;  %v881_v0 = vld [vmem:[#allocation5 + $0x19a8] sm:$0xff]  ;;  %v883_v2 = vld [vmem:[#allocation5 + $0x19b8] sm:$0xff] }
 0x358   :  { %2702 = vmatpush.xpose.msrb.mxu1 %v989_v5  ;;  %2742 = vmatpush.xpose.msrb.mxu3 %v991_v6  ;;  %v869_v5 = vld [vmem:[#allocation5 + $0x1948] sm:$0xff]  ;;  %v871_v6 = vld [vmem:[#allocation5 + $0x1958] sm:$0xff] }
 0x35b   :  { %2683 = vmatpush.xpose.msrb.mxu0 %v976_v15  ;;  %2723 = vmatpush.xpose.msrb.mxu2 %v978_v16  ;;  %v857_v15 = vld [vmem:[#allocation5 + $0x18e8] sm:$0xff]  ;;  %v859_v16 = vld [vmem:[#allocation5 + $0x18f8] sm:$0xff] }
 0x35c   :  { %2703 = vmatpush.xpose.msrb.mxu1 %v977_v17  ;;  %2743 = vmatpush.xpose.msrb.mxu3 %v979_v18  ;;  %v844_v17 = vld [vmem:[#allocation5 + $0x1880] sm:$0xff]  ;;  %v846_v18 = vld [vmem:[#allocation5 + $0x1890] sm:$0xff] }
 0x35f   :  { %2684 = vmatpush.xpose.msrb.mxu0 %v964_v22  ;;  %2724 = vmatpush.xpose.msrb.mxu2 %v966_v23  ;;  %v832_v22 = vld [vmem:[#allocation5 + $0x1820] sm:$0xff]  ;;  %v834_v23 = vld [vmem:[#allocation5 + $0x1830] sm:$0xff] }
 0x360   :  { %2704 = vmatpush.xpose.msrb.mxu1 %v965_v27  ;;  %2744 = vmatpush.xpose.msrb.mxu3 %v967_v28  ;;  %v1018_v27 = vld [vmem:[#allocation5 + $0x1df0] sm:$0xff]  ;;  %v833_v28 = vld [vmem:[#allocation5 + $0x1828] sm:$0xff] }
 0x363   :  { %2685 = vmatpush.xpose.msrb.mxu0 %v952_v29  ;;  %2725 = vmatpush.xpose.msrb.mxu2 %v954_v30  ;;  %v835_v29 = vld [vmem:[#allocation5 + $0x1838] sm:$0xff]  ;;  %v1017_v30 = vld [vmem:[#allocation5 + $0x1de8] sm:$0xff] }
 0x364   :  { %2705 = vmatpush.xpose.msrb.mxu1 %v953_v31  ;;  %2745 = vmatpush.xpose.msrb.mxu3 %v955_v32  ;;  %v1019_v31 = vld [vmem:[#allocation5 + $0x1df8] sm:$0xff]  ;;  %v2298_v32 = vadd.f32 %v3875_v53, %v3865_v59  ;;  %v992_v59 = vld [vmem:[#allocation5 + $0x1d20] sm:$0xff]  ;;  %v994_v53 = vld [vmem:[#allocation5 + $0x1d30] sm:$0xff] }
 0x367   :  { %2686 = vmatpush.xpose.msrb.mxu0 %v940_v35  ;;  %2726 = vmatpush.xpose.msrb.mxu2 %v942_v62  ;;  %v1004_v35 = vld [vmem:[#allocation5 + $0x1d80] sm:$0xff]  ;;  %v1006_v62 = vld [vmem:[#allocation5 + $0x1d90] sm:$0xff] }
 0x368   :  { %2706 = vmatpush.xpose.msrb.mxu1 %v941_v39  ;;  %2746 = vmatpush.xpose.msrb.mxu3 %v943_v40  ;;  %v1005_v39 = vld [vmem:[#allocation5 + $0x1d88] sm:$0xff]  ;;  %v1007_v40 = vld [vmem:[#allocation5 + $0x1d98] sm:$0xff] }
 0x36b   :  { %2687 = vmatpush.xpose.msrb.mxu0 %v928_v41  ;;  %2727 = vmatpush.xpose.msrb.mxu2 %v930_v42  ;;  %v2318_v42 = vadd.f32 %v3877_v56, %v2298_v32  ;;  %v982_v56 = vld [vmem:[#allocation5 + $0x1cd0] sm:$0xff]  ;;  %v896_v32 = vld [vmem:[#allocation5 + $0x1a20] sm:$0xff] }
 0x36c   :  { %2707 = vmatpush.xpose.msrb.mxu1 %v929_v43  ;;  %2747 = vmatpush.xpose.msrb.mxu3 %v931_v44 }
 0x36f   :  { %2688 = vmatpush.xpose.msrb.mxu0 %v916_v45  ;;  %2728 = vmatpush.xpose.msrb.mxu2 %v918_v46  ;;  %v2338_v45 = vadd.f32 %v3879_v36, %v2318_v42  ;;  %v993_v46 = vld [vmem:[#allocation5 + $0x1d28] sm:$0xff]  ;;  %v968_v36 = vld [vmem:[#allocation5 + $0x1c60] sm:$0xff] }
 0x370   :  { %2708 = vmatpush.xpose.msrb.mxu1 %v917_v47  ;;  %2748 = vmatpush.xpose.msrb.mxu3 %v919_v48  ;;  %v995_v47 = vld [vmem:[#allocation5 + $0x1d38] sm:$0xff]  ;;  %v885_v42 = vld [vmem:[#allocation5 + $0x19c8] sm:$0xff] }
 0x373   :  { %2689 = vmatpush.xpose.msrb.mxu0 %v904_v49  ;;  %2729 = vmatpush.xpose.msrb.mxu2 %v906_v50  ;;  %v980_v49 = vld [vmem:[#allocation5 + $0x1cc0] sm:$0xff]  ;;  %v2358_v50 = vadd.f32 %v3881_v60, %v2338_v45  ;;  %v875_v45 = vld [vmem:[#allocation5 + $0x1978] sm:$0xff] }
 0x374   :  { %2709 = vmatpush.xpose.msrb.mxu1 %v905_v52  ;;  %2749 = vmatpush.xpose.msrb.mxu3 %v907_v54  ;;  %v981_v54 = vld [vmem:[#allocation5 + $0x1cc8] sm:$0xff] }
 0x377   :  { %2690 = vmatpush.xpose.msrb.mxu0 %v892_v55  ;;  %2730 = vmatpush.xpose.msrb.mxu2 %v894_v12  ;;  %v983_v55 = vld [vmem:[#allocation5 + $0x1cd8] sm:$0xff] }
 0x378   :  { %2710 = vmatpush.xpose.msrb.mxu1 %v893_v61  ;;  %2750 = vmatpush.xpose.msrb.mxu3 %v895_v57  ;;  %v970_v57 = vld [vmem:[#allocation5 + $0x1c70] sm:$0xff] }
 0x37b   :  { %2691 = vmatpush.xpose.msrb.mxu0 %v880_v58  ;;  %2731 = vmatpush.xpose.msrb.mxu2 %v882_v63  ;;  %v3569_v58 = vrot.slane %v2358_v50, 6  ;;  %v849_v50 = vld [vmem:[#allocation5 + $0x18a8] sm:$0xff] }
 0x37c   :  { %2711 = vmatpush.xpose.msrb.mxu1 %v881_v0  ;;  %2751 = vmatpush.xpose.msrb.mxu3 %v883_v2  ;;  %v969_v0 = vld [vmem:[#allocation5 + $0x1c68] sm:$0xff]  ;;  %v971_v2 = vld [vmem:[#allocation5 + $0x1c78] sm:$0xff] }
 0x37f   :  { %2692 = vmatpush.xpose.msrb.mxu0 %v868_v1  ;;  %2732 = vmatpush.xpose.msrb.mxu2 %v870_v3  ;;  %v956_v1 = vld [vmem:[#allocation5 + $0x1c00] sm:$0xff]  ;;  %v958_v3 = vld [vmem:[#allocation5 + $0x1c10] sm:$0xff] }
 0x380   :  { %2712 = vmatpush.xpose.msrb.mxu1 %v869_v5  ;;  %2752 = vmatpush.xpose.msrb.mxu3 %v871_v6  ;;  %v957_v6 = vld [vmem:[#allocation5 + $0x1c08] sm:$0xff] }
 0x383   :  { %2693 = vmatpush.xpose.msrb.mxu0 %v856_v8  ;;  %2733 = vmatpush.xpose.msrb.mxu2 %v858_v11  ;;  %v959_v8 = vld [vmem:[#allocation5 + $0x1c18] sm:$0xff]  ;;  %v944_v11 = vld [vmem:[#allocation5 + $0x1ba0] sm:$0xff] }
 0x384   :  { %2713 = vmatpush.xpose.msrb.mxu1 %v857_v15  ;;  %2753 = vmatpush.xpose.msrb.mxu3 %v859_v16  ;;  %v946_v15 = vld [vmem:[#allocation5 + $0x1bb0] sm:$0xff]  ;;  %v945_v16 = vld [vmem:[#allocation5 + $0x1ba8] sm:$0xff] }
 0x387   :  { %2694 = vmatpush.xpose.msrb.mxu0 %v844_v17  ;;  %2734 = vmatpush.xpose.msrb.mxu2 %v846_v18  ;;  %v947_v17 = vld [vmem:[#allocation5 + $0x1bb8] sm:$0xff]  ;;  %v932_v18 = vld [vmem:[#allocation5 + $0x1b40] sm:$0xff] }
 0x388   :  { %2714 = vmatpush.xpose.msrb.mxu1 %v845_v7  ;;  %2754 = vmatpush.xpose.msrb.mxu3 %v847_v19  ;;  %v934_v7 = vld [vmem:[#allocation5 + $0x1b50] sm:$0xff]  ;;  %v933_v19 = vld [vmem:[#allocation5 + $0x1b48] sm:$0xff] }
 0x38b   :  { %2695 = vmatpush.xpose.msrb.mxu0 %v832_v22  ;;  %2735 = vmatpush.xpose.msrb.mxu2 %v834_v23  ;;  %v2537_v41 = vpop.f32.mrf.mxu0  ;;  %v935_v22 = vld [vmem:[#allocation5 + $0x1b58] sm:$0xff]  ;;  %v922_v23 = vld [vmem:[#allocation5 + $0x1af0] sm:$0xff] }
 0x38c   :  { %2715 = vmatpush.xpose.msrb.mxu1 %v833_v28  ;;  %2755 = vmatpush.xpose.msrb.mxu3 %v835_v29  ;;  %v2538_v43 = vadd.f32 %v2537_v41, %v3891_v51  ;;  %v908_v28 = vld [vmem:[#allocation5 + $0x1a80] sm:$0xff]  ;;  %v910_v29 = vld [vmem:[#allocation5 + $0x1a90] sm:$0xff] }
 0x38d   :  { %v886_v41 = vld [vmem:[#allocation5 + $0x19d0] sm:$0xff] }
 0x38e   :  { %2736 = vmatmul.f32.vlgmr.msrb.gmra.mxu2 %v3774_v9  ;;  %2696 = vmatmul.f32.vlgmr.msrb.gmra.mxu0 %v3777_v10  ;;  %v2557_v44 = vpop.f32.mrf.mxu1 }
 0x38f   :  { %2760 = vmatpush.xpose.msra.mxu0 %v1016_v26  ;;  %2800 = vmatpush.xpose.msra.mxu2 %v1018_v27  ;;  %v2558_v48 = vadd.f32 %v2557_v44, %v2538_v43  ;;  %v921_v26 = vld [vmem:[#allocation5 + $0x1ae8] sm:$0xff]  ;;  %v923_v27 = vld [vmem:[#allocation5 + $0x1af8] sm:$0xff] }
 0x390   :  { %2780 = vmatpush.xpose.msra.mxu1 %v1017_v30  ;;  %2820 = vmatpush.xpose.msra.mxu3 %v1019_v31  ;;  %v909_v30 = vld [vmem:[#allocation5 + $0x1a88] sm:$0xff]  ;;  %v911_v31 = vld [vmem:[#allocation5 + $0x1a98] sm:$0xff] }
 0x391   :  { %2756 = vmatmul.f32.vlgmr.msrb.gmra.mxu3 %v3780_v13  ;;  %2716 = vmatmul.f32.vlgmr.msrb.gmra.mxu1 %v3783_v14  ;;  %v2577_v51 = vpop.f32.mrf.mxu2  ;;  %v887_v43 = vld [vmem:[#allocation5 + $0x19d8] sm:$0xff]  ;;  %v873_v44 = vld [vmem:[#allocation5 + $0x1968] sm:$0xff] }
 0x392   :  { %v2578_v52 = vadd.f32 %v2577_v51, %v2558_v48  ;;  %v861_v48 = vld [vmem:[#allocation5 + $0x1908] sm:$0xff]  ;;  %v850_v51 = vld [vmem:[#allocation5 + $0x18b0] sm:$0xff] }
 0x393   :  { %2761 = vmatpush.xpose.msra.mxu0 %v1004_v35  ;;  %2801 = vmatpush.xpose.msra.mxu2 %v1006_v62  ;;  %v898_v35 = vld [vmem:[#allocation5 + $0x1a30] sm:$0xff]  ;;  %v897_v62 = vld [vmem:[#allocation5 + $0x1a28] sm:$0xff] }
 0x394   :  { %2781 = vmatpush.xpose.msra.mxu1 %v1005_v39  ;;  %2821 = vmatpush.xpose.msra.mxu3 %v1007_v40  ;;  %v2597_v12 = vpop.f32.mrf.mxu3  ;;  %v899_v39 = vld [vmem:[#allocation5 + $0x1a38] sm:$0xff]  ;;  %v884_v40 = vld [vmem:[#allocation5 + $0x19c0] sm:$0xff] }
 0x395   :  { %v2598_v61 = vadd.f32 %v2597_v12, %v2578_v52  ;;  %v851_v52 = vld [vmem:[#allocation5 + $0x18b8] sm:$0xff]  ;;  %v1200_v12 = vld [vmem:[#allocation5 + $0x23a0] sm:$0xff] }
 0x397   :  { %2762 = vmatpush.xpose.msra.mxu0 %v992_v59  ;;  %2802 = vmatpush.xpose.msra.mxu2 %v994_v53  ;;  %v3570_v63 = vrot.slane %v2598_v61, 5  ;;  %v872_v59 = vld [vmem:[#allocation5 + $0x1960] sm:$0xff]  ;;  %v874_v53 = vld [vmem:[#allocation5 + $0x1970] sm:$0xff] }
 0x398   :  { %2782 = vmatpush.xpose.msra.mxu1 %v993_v46  ;;  %2822 = vmatpush.xpose.msra.mxu3 %v995_v47  ;;  %v860_v46 = vld [vmem:[#allocation5 + $0x1900] sm:$0xff]  ;;  %v862_v47 = vld [vmem:[#allocation5 + $0x1910] sm:$0xff] }
 0x399   :  { %v3578_v60 = vsel %vm3577_vm1, %v3569_v58, %v3570_v63  ;;  %v1202_v61 = vld [vmem:[#allocation5 + $0x23b0] sm:$0xff]  ;;  %v1201_v58 = vld [vmem:[#allocation5 + $0x23a8] sm:$0xff]  ;;  %v1203_v63 = vld [vmem:[#allocation5 + $0x23b8] sm:$0xff] }
 0x39a   :  { %v3904_v5 = vsel %vm3579_vm2, %v3849_v4, %v3578_v60  ;;  %v920_v4 = vld [vmem:[#allocation5 + $0x1ae0] sm:$0xff]  ;;  %v1189_v60 = vld [vmem:[#allocation5 + $0x2348] sm:$0xff] }
 0x39b   :  { %2763 = vmatpush.xpose.msra.mxu0 %v980_v49  ;;  %2803 = vmatpush.xpose.msra.mxu2 %v982_v56  ;;  %v863_v49 = vld [vmem:[#allocation5 + $0x1918] sm:$0xff]  ;;  %v848_v56 = vld [vmem:[#allocation5 + $0x18a0] sm:$0xff] }
 0x39c   :  { %2783 = vmatpush.xpose.msra.mxu1 %v981_v54  ;;  %2823 = vmatpush.xpose.msra.mxu3 %v983_v55  ;;  %v836_v54 = vld [vmem:[#allocation5 + $0x1840] sm:$0xff]  ;;  %v838_v55 = vld [vmem:[#allocation5 + $0x1850] sm:$0xff] }
 0x39f   :  { %2764 = vmatpush.xpose.msra.mxu0 %v968_v36  ;;  %2804 = vmatpush.xpose.msra.mxu2 %v970_v57  ;;  %v837_v36 = vld [vmem:[#allocation5 + $0x1848] sm:$0xff]  ;;  %v839_v57 = vld [vmem:[#allocation5 + $0x1858] sm:$0xff] }
 0x3a0   :  { %2784 = vmatpush.xpose.msra.mxu1 %v969_v0  ;;  %2824 = vmatpush.xpose.msra.mxu3 %v971_v2  ;;  %v1188_v0 = vld [vmem:[#allocation5 + $0x2340] sm:$0xff]  ;;  %v1190_v2 = vld [vmem:[#allocation5 + $0x2350] sm:$0xff] }
 0x3a3   :  { %2765 = vmatpush.xpose.msra.mxu0 %v956_v1  ;;  %2805 = vmatpush.xpose.msra.mxu2 %v958_v3  ;;  %v1191_v1 = vld [vmem:[#allocation5 + $0x2358] sm:$0xff]  ;;  %v1176_v3 = vld [vmem:[#allocation5 + $0x22e0] sm:$0xff] }
 0x3a4   :  { %2785 = vmatpush.xpose.msra.mxu1 %v957_v6  ;;  %2825 = vmatpush.xpose.msra.mxu3 %v959_v8  ;;  %v1178_v6 = vld [vmem:[#allocation5 + $0x22f0] sm:$0xff]  ;;  %v1177_v8 = vld [vmem:[#allocation5 + $0x22e8] sm:$0xff] }
 0x3a7   :  { %2766 = vmatpush.xpose.msra.mxu0 %v944_v11  ;;  %2806 = vmatpush.xpose.msra.mxu2 %v946_v15  ;;  %v1179_v11 = vld [vmem:[#allocation5 + $0x22f8] sm:$0xff]  ;;  %v1164_v15 = vld [vmem:[#allocation5 + $0x2280] sm:$0xff] }
 0x3a8   :  { %2786 = vmatpush.xpose.msra.mxu1 %v945_v16  ;;  %2826 = vmatpush.xpose.msra.mxu3 %v947_v17  ;;  %v1166_v16 = vld [vmem:[#allocation5 + $0x2290] sm:$0xff]  ;;  %v1165_v17 = vld [vmem:[#allocation5 + $0x2288] sm:$0xff] }
 0x3ab   :  { %2767 = vmatpush.xpose.msra.mxu0 %v932_v18  ;;  %2807 = vmatpush.xpose.msra.mxu2 %v934_v7  ;;  %v1167_v18 = vld [vmem:[#allocation5 + $0x2298] sm:$0xff]  ;;  %v1152_v7 = vld [vmem:[#allocation5 + $0x2220] sm:$0xff] }
 0x3ac   :  { %2787 = vmatpush.xpose.msra.mxu1 %v933_v19  ;;  %2827 = vmatpush.xpose.msra.mxu3 %v935_v22  ;;  %v1154_v19 = vld [vmem:[#allocation5 + $0x2230] sm:$0xff]  ;;  %v1153_v22 = vld [vmem:[#allocation5 + $0x2228] sm:$0xff] }
 0x3af   :  { %2768 = vmatpush.xpose.msra.mxu0 %v920_v4  ;;  %2808 = vmatpush.xpose.msra.mxu2 %v922_v23  ;;  %v1155_v4 = vld [vmem:[#allocation5 + $0x2238] sm:$0xff]  ;;  %v1140_v23 = vld [vmem:[#allocation5 + $0x21c0] sm:$0xff] }
 0x3b0   :  { %2788 = vmatpush.xpose.msra.mxu1 %v921_v26  ;;  %2828 = vmatpush.xpose.msra.mxu3 %v923_v27  ;;  %v1142_v26 = vld [vmem:[#allocation5 + $0x21d0] sm:$0xff]  ;;  %v1141_v27 = vld [vmem:[#allocation5 + $0x21c8] sm:$0xff] }
 0x3b3   :  { %2769 = vmatpush.xpose.msra.mxu0 %v908_v28  ;;  %2809 = vmatpush.xpose.msra.mxu2 %v910_v29  ;;  %v1143_v28 = vld [vmem:[#allocation5 + $0x21d8] sm:$0xff]  ;;  %v1128_v29 = vld [vmem:[#allocation5 + $0x2160] sm:$0xff] }
 0x3b4   :  { %2789 = vmatpush.xpose.msra.mxu1 %v909_v30  ;;  %2829 = vmatpush.xpose.msra.mxu3 %v911_v31  ;;  %v1130_v30 = vld [vmem:[#allocation5 + $0x2170] sm:$0xff]  ;;  %v1129_v31 = vld [vmem:[#allocation5 + $0x2168] sm:$0xff] }
 0x3b7   :  { %2770 = vmatpush.xpose.msra.mxu0 %v896_v32  ;;  %2810 = vmatpush.xpose.msra.mxu2 %v898_v35  ;;  %v1131_v32 = vld [vmem:[#allocation5 + $0x2178] sm:$0xff]  ;;  %v1116_v35 = vld [vmem:[#allocation5 + $0x2100] sm:$0xff] }
 0x3b8   :  { %2790 = vmatpush.xpose.msra.mxu1 %v897_v62  ;;  %2830 = vmatpush.xpose.msra.mxu3 %v899_v39  ;;  %v1118_v62 = vld [vmem:[#allocation5 + $0x2110] sm:$0xff]  ;;  %v1117_v39 = vld [vmem:[#allocation5 + $0x2108] sm:$0xff] }
 0x3bb   :  { %2771 = vmatpush.xpose.msra.mxu0 %v884_v40  ;;  %2811 = vmatpush.xpose.msra.mxu2 %v886_v41  ;;  %v1119_v40 = vld [vmem:[#allocation5 + $0x2118] sm:$0xff]  ;;  %v1104_v41 = vld [vmem:[#allocation5 + $0x20a0] sm:$0xff] }
 0x3bc   :  { %2791 = vmatpush.xpose.msra.mxu1 %v885_v42  ;;  %2831 = vmatpush.xpose.msra.mxu3 %v887_v43  ;;  %v1106_v42 = vld [vmem:[#allocation5 + $0x20b0] sm:$0xff]  ;;  %v1105_v43 = vld [vmem:[#allocation5 + $0x20a8] sm:$0xff] }
 0x3bf   :  { %2772 = vmatpush.xpose.msra.mxu0 %v872_v59  ;;  %2812 = vmatpush.xpose.msra.mxu2 %v874_v53  ;;  %v1107_v59 = vld [vmem:[#allocation5 + $0x20b8] sm:$0xff]  ;;  %v1092_v53 = vld [vmem:[#allocation5 + $0x2040] sm:$0xff] }
 0x3c0   :  { %2792 = vmatpush.xpose.msra.mxu1 %v873_v44  ;;  %2832 = vmatpush.xpose.msra.mxu3 %v875_v45  ;;  %v1094_v44 = vld [vmem:[#allocation5 + $0x2050] sm:$0xff]  ;;  %v3616_v45 = vld [vmem:[#allocation7] sm:$0xff] }
 0x3c3   :  { %2773 = vmatpush.xpose.msra.mxu0 %v860_v46  ;;  %2813 = vmatpush.xpose.msra.mxu2 %v862_v47  ;;  %v1628_v46 = vperm.slane %v3616_v45, 4 }
 0x3c4   :  { %2793 = vmatpush.xpose.msra.mxu1 %v861_v48  ;;  %2833 = vmatpush.xpose.msra.mxu3 %v863_v49  ;;  %v1093_v48 = vld [vmem:[#allocation5 + $0x2048] sm:$0xff]  ;;  %v1095_v49 = vld [vmem:[#allocation5 + $0x2058] sm:$0xff] }
 0x3c7   :  { %2774 = vmatpush.xpose.msra.mxu0 %v848_v56  ;;  %2814 = vmatpush.xpose.msra.mxu2 %v850_v51 }
 0x3c8   :  { %2794 = vmatpush.xpose.msra.mxu1 %v849_v50  ;;  %2834 = vmatpush.xpose.msra.mxu3 %v851_v52  ;;  %v1080_v50 = vld [vmem:[#allocation5 + $0x1fe0] sm:$0xff]  ;;  %v1082_v52 = vld [vmem:[#allocation5 + $0x1ff0] sm:$0xff] }
 0x3cb   :  { %2775 = vmatpush.xpose.msra.mxu0 %v836_v54  ;;  %2815 = vmatpush.xpose.msra.mxu2 %v838_v55  ;;  %v2617_v47 = vpop.f32.mrf.mxu0 }
 0x3cc   :  { %2795 = vmatpush.xpose.msra.mxu1 %v837_v36  ;;  %2835 = vmatpush.xpose.msra.mxu3 %v839_v57  ;;  %v2618_v56 = vadd.f32 %v2617_v47, %v1628_v46  ;;  %v1168_v46 = vld [vmem:[#allocation5 + $0x22a0] sm:$0xff]  ;;  %v1170_v47 = vld [vmem:[#allocation5 + $0x22b0] sm:$0xff] }
 0x3ce   :  { %2776 = vmatmul.f32.vlgmr.msra.gmra.mxu0 %v3789_v20  ;;  %2816 = vmatmul.f32.vlgmr.msra.gmra.mxu2 %v3791_v21  ;;  %v2637_v51 = vpop.f32.mrf.mxu1 }
 0x3cf   :  { %2840 = vmatpush.xpose.msrb.mxu0 %v1200_v12  ;;  %2880 = vmatpush.xpose.msrb.mxu2 %v1202_v61  ;;  %v2638_v54 = vadd.f32 %v2637_v51, %v2618_v56  ;;  %v1081_v12 = vld [vmem:[#allocation5 + $0x1fe8] sm:$0xff]  ;;  %v1083_v61 = vld [vmem:[#allocation5 + $0x1ff8] sm:$0xff] }
 0x3d0   :  { %2860 = vmatpush.xpose.msrb.mxu1 %v1201_v58  ;;  %2900 = vmatpush.xpose.msrb.mxu3 %v1203_v63  ;;  %v1068_v58 = vld [vmem:[#allocation5 + $0x1f80] sm:$0xff]  ;;  %v1070_v63 = vld [vmem:[#allocation5 + $0x1f90] sm:$0xff] }
 0x3d1   :  { %2796 = vmatmul.f32.vlgmr.msra.gmra.mxu1 %v3793_v24  ;;  %2836 = vmatmul.f32.vlgmr.msra.gmra.mxu3 %v3795_v25  ;;  %v2657_v55 = vpop.f32.mrf.mxu2 }
 0x3d2   :  { %v2658_v36 = vadd.f32 %v2657_v55, %v2638_v54 }
 0x3d3   :  { %2841 = vmatpush.xpose.msrb.mxu0 %v1188_v0  ;;  %2881 = vmatpush.xpose.msrb.mxu2 %v1190_v2  ;;  %v1069_v2 = vld [vmem:[#allocation5 + $0x1f88] sm:$0xff] }
 0x3d4   :  { %2861 = vmatpush.xpose.msrb.mxu1 %v1189_v60  ;;  %2901 = vmatpush.xpose.msrb.mxu3 %v1191_v1  ;;  %v2677_v57 = vpop.f32.mrf.mxu3  ;;  %v1071_v60 = vld [vmem:[#allocation5 + $0x1f98] sm:$0xff]  ;;  %v1056_v1 = vld [vmem:[#allocation5 + $0x1f20] sm:$0xff] }
 0x3d5   :  { %v3910_v0 = vadd.f32 %v2677_v57, %v2658_v36  ;;  %v1144_v36 = vld [vmem:[#allocation5 + $0x21e0] sm:$0xff]  ;;  %v1146_v57 = vld [vmem:[#allocation5 + $0x21f0] sm:$0xff] }
 0x3d7   :  { %2842 = vmatpush.xpose.msrb.mxu0 %v1176_v3  ;;  %2882 = vmatpush.xpose.msrb.mxu2 %v1178_v6  ;;  %v1058_v3 = vld [vmem:[#allocation5 + $0x1f30] sm:$0xff]  ;;  %v1057_v6 = vld [vmem:[#allocation5 + $0x1f28] sm:$0xff] }
 0x3d8   :  { %2862 = vmatpush.xpose.msrb.mxu1 %v1177_v8  ;;  %2902 = vmatpush.xpose.msrb.mxu3 %v1179_v11  ;;  %v1059_v8 = vld [vmem:[#allocation5 + $0x1f38] sm:$0xff]  ;;  %v1044_v11 = vld [vmem:[#allocation5 + $0x1ec0] sm:$0xff] }
 0x3db   :  { %2843 = vmatpush.xpose.msrb.mxu0 %v1164_v15  ;;  %2883 = vmatpush.xpose.msrb.mxu2 %v1166_v16  ;;  %v1046_v15 = vld [vmem:[#allocation5 + $0x1ed0] sm:$0xff]  ;;  %v1045_v16 = vld [vmem:[#allocation5 + $0x1ec8] sm:$0xff] }
 0x3dc   :  { %2863 = vmatpush.xpose.msrb.mxu1 %v1165_v17  ;;  %2903 = vmatpush.xpose.msrb.mxu3 %v1167_v18  ;;  %v1047_v17 = vld [vmem:[#allocation5 + $0x1ed8] sm:$0xff]  ;;  %v1032_v18 = vld [vmem:[#allocation5 + $0x1e60] sm:$0xff] }
 0x3df   :  { %2844 = vmatpush.xpose.msrb.mxu0 %v1152_v7  ;;  %2884 = vmatpush.xpose.msrb.mxu2 %v1154_v19  ;;  %v1034_v7 = vld [vmem:[#allocation5 + $0x1e70] sm:$0xff]  ;;  %v1033_v19 = vld [vmem:[#allocation5 + $0x1e68] sm:$0xff] }
 0x3e0   :  { %2864 = vmatpush.xpose.msrb.mxu1 %v1153_v22  ;;  %2904 = vmatpush.xpose.msrb.mxu3 %v1155_v4  ;;  %v1035_v22 = vld [vmem:[#allocation5 + $0x1e78] sm:$0xff]  ;;  %v1020_v4 = vld [vmem:[#allocation5 + $0x1e00] sm:$0xff] }
 0x3e3   :  { %2845 = vmatpush.xpose.msrb.mxu0 %v1140_v23  ;;  %2885 = vmatpush.xpose.msrb.mxu2 %v1142_v26  ;;  %v1022_v23 = vld [vmem:[#allocation5 + $0x1e10] sm:$0xff]  ;;  %v1204_v26 = vld [vmem:[#allocation5 + $0x23c0] sm:$0xff] }
 0x3e4   :  { %2865 = vmatpush.xpose.msrb.mxu1 %v1141_v27  ;;  %2905 = vmatpush.xpose.msrb.mxu3 %v1143_v28  ;;  %v1206_v27 = vld [vmem:[#allocation5 + $0x23d0] sm:$0xff]  ;;  %v1021_v28 = vld [vmem:[#allocation5 + $0x1e08] sm:$0xff] }
 0x3e7   :  { %2846 = vmatpush.xpose.msrb.mxu0 %v1128_v29  ;;  %2886 = vmatpush.xpose.msrb.mxu2 %v1130_v30  ;;  %v1023_v29 = vld [vmem:[#allocation5 + $0x1e18] sm:$0xff]  ;;  %v1205_v30 = vld [vmem:[#allocation5 + $0x23c8] sm:$0xff] }
 0x3e8   :  { %2866 = vmatpush.xpose.msrb.mxu1 %v1129_v31  ;;  %2906 = vmatpush.xpose.msrb.mxu3 %v1131_v32  ;;  %v1207_v31 = vld [vmem:[#allocation5 + $0x23d8] sm:$0xff]  ;;  %v1192_v32 = vld [vmem:[#allocation5 + $0x2360] sm:$0xff] }
 0x3eb   :  { %2847 = vmatpush.xpose.msrb.mxu0 %v1116_v35  ;;  %2887 = vmatpush.xpose.msrb.mxu2 %v1118_v62  ;;  %v1194_v35 = vld [vmem:[#allocation5 + $0x2370] sm:$0xff]  ;;  %v1193_v62 = vld [vmem:[#allocation5 + $0x2368] sm:$0xff] }
 0x3ec   :  { %2867 = vmatpush.xpose.msrb.mxu1 %v1117_v39  ;;  %2907 = vmatpush.xpose.msrb.mxu3 %v1119_v40  ;;  %v1195_v39 = vld [vmem:[#allocation5 + $0x2378] sm:$0xff]  ;;  %v1180_v40 = vld [vmem:[#allocation5 + $0x2300] sm:$0xff] }
 0x3ef   :  { %2848 = vmatpush.xpose.msrb.mxu0 %v1104_v41  ;;  %2888 = vmatpush.xpose.msrb.mxu2 %v1106_v42  ;;  %v1182_v41 = vld [vmem:[#allocation5 + $0x2310] sm:$0xff] }
 0x3f0   :  { %2868 = vmatpush.xpose.msrb.mxu1 %v1105_v43  ;;  %2908 = vmatpush.xpose.msrb.mxu3 %v1107_v59  ;;  %v1181_v59 = vld [vmem:[#allocation5 + $0x2308] sm:$0xff] }
 0x3f3   :  { %2849 = vmatpush.xpose.msrb.mxu0 %v1092_v53  ;;  %2889 = vmatpush.xpose.msrb.mxu2 %v1094_v44  ;;  %v1183_v53 = vld [vmem:[#allocation5 + $0x2318] sm:$0xff] }
 0x3f4   :  { %2869 = vmatpush.xpose.msrb.mxu1 %v1093_v48  ;;  %2909 = vmatpush.xpose.msrb.mxu3 %v1095_v49  ;;  %v1169_v48 = vld [vmem:[#allocation5 + $0x22a8] sm:$0xff]  ;;  %v1171_v49 = vld [vmem:[#allocation5 + $0x22b8] sm:$0xff] }
 0x3f7   :  { %2850 = vmatpush.xpose.msrb.mxu0 %v1080_v50  ;;  %2890 = vmatpush.xpose.msrb.mxu2 %v1082_v52  ;;  %v1156_v50 = vld [vmem:[#allocation5 + $0x2240] sm:$0xff]  ;;  %v1158_v52 = vld [vmem:[#allocation5 + $0x2250] sm:$0xff] }
 0x3f8   :  { %2870 = vmatpush.xpose.msrb.mxu1 %v1081_v12  ;;  %2910 = vmatpush.xpose.msrb.mxu3 %v1083_v61  ;;  %v1157_v12 = vld [vmem:[#allocation5 + $0x2248] sm:$0xff]  ;;  %v1159_v61 = vld [vmem:[#allocation5 + $0x2258] sm:$0xff] }
 0x3fb   :  { %2851 = vmatpush.xpose.msrb.mxu0 %v1068_v58  ;;  %2891 = vmatpush.xpose.msrb.mxu2 %v1070_v63  ;;  %v1145_v58 = vld [vmem:[#allocation5 + $0x21e8] sm:$0xff]  ;;  %v1147_v63 = vld [vmem:[#allocation5 + $0x21f8] sm:$0xff] }
 0x3fc   :  { %2871 = vmatpush.xpose.msrb.mxu1 %v1069_v2  ;;  %2911 = vmatpush.xpose.msrb.mxu3 %v1071_v60  ;;  %v1134_v2 = vld [vmem:[#allocation5 + $0x2190] sm:$0xff]  ;;  %v1133_v60 = vld [vmem:[#allocation5 + $0x2188] sm:$0xff] }
 0x3ff   :  { %2852 = vmatpush.xpose.msrb.mxu0 %v1056_v1  ;;  %2892 = vmatpush.xpose.msrb.mxu2 %v1058_v3  ;;  %v1135_v1 = vld [vmem:[#allocation5 + $0x2198] sm:$0xff]  ;;  %v1120_v3 = vld [vmem:[#allocation5 + $0x2120] sm:$0xff] }
 0x400   :  { %2872 = vmatpush.xpose.msrb.mxu1 %v1057_v6  ;;  %2912 = vmatpush.xpose.msrb.mxu3 %v1059_v8  ;;  %v1122_v6 = vld [vmem:[#allocation5 + $0x2130] sm:$0xff]  ;;  %v1121_v8 = vld [vmem:[#allocation5 + $0x2128] sm:$0xff] }
 0x403   :  { %2853 = vmatpush.xpose.msrb.mxu0 %v1044_v11  ;;  %2893 = vmatpush.xpose.msrb.mxu2 %v1046_v15  ;;  %v1123_v11 = vld [vmem:[#allocation5 + $0x2138] sm:$0xff]  ;;  %v1108_v15 = vld [vmem:[#allocation5 + $0x20c0] sm:$0xff] }
 0x404   :  { %2873 = vmatpush.xpose.msrb.mxu1 %v1045_v16  ;;  %2913 = vmatpush.xpose.msrb.mxu3 %v1047_v17  ;;  %v1110_v16 = vld [vmem:[#allocation5 + $0x20d0] sm:$0xff]  ;;  %v1109_v17 = vld [vmem:[#allocation5 + $0x20c8] sm:$0xff] }
 0x407   :  { %2854 = vmatpush.xpose.msrb.mxu0 %v1032_v18  ;;  %2894 = vmatpush.xpose.msrb.mxu2 %v1034_v7  ;;  %v1111_v18 = vld [vmem:[#allocation5 + $0x20d8] sm:$0xff]  ;;  %v1096_v7 = vld [vmem:[#allocation5 + $0x2060] sm:$0xff] }
 0x408   :  { %2874 = vmatpush.xpose.msrb.mxu1 %v1033_v19  ;;  %2914 = vmatpush.xpose.msrb.mxu3 %v1035_v22  ;;  %v1098_v19 = vld [vmem:[#allocation5 + $0x2070] sm:$0xff]  ;;  %v1097_v22 = vld [vmem:[#allocation5 + $0x2068] sm:$0xff] }
 0x40b   :  { %2855 = vmatpush.xpose.msrb.mxu0 %v1020_v4  ;;  %2895 = vmatpush.xpose.msrb.mxu2 %v1022_v23  ;;  %v2697_v42 = vpop.f32.mrf.mxu0  ;;  %v1099_v4 = vld [vmem:[#allocation5 + $0x2078] sm:$0xff]  ;;  %v1084_v23 = vld [vmem:[#allocation5 + $0x2000] sm:$0xff] }
 0x40c   :  { %2875 = vmatpush.xpose.msrb.mxu1 %v1021_v28  ;;  %2915 = vmatpush.xpose.msrb.mxu3 %v1023_v29  ;;  %v2698_v43 = vadd.f32 %v2697_v42, %v3910_v0  ;;  %v1132_v0 = vld [vmem:[#allocation5 + $0x2180] sm:$0xff]  ;;  %v1087_v28 = vld [vmem:[#allocation5 + $0x2018] sm:$0xff]  ;;  %v1050_v42 = vld [vmem:[#allocation5 + $0x1ef0] sm:$0xff] }
 0x40d   :  { %v1072_v29 = vld [vmem:[#allocation5 + $0x1fa0] sm:$0xff] }
 0x40e   :  { %2856 = vmatmul.f32.vlgmr.msrb.gmra.mxu0 %v3758_v33  ;;  %2896 = vmatmul.f32.vlgmr.msrb.gmra.mxu2 %v3761_v34  ;;  %v2717_v44 = vpop.f32.mrf.mxu1 }
 0x40f   :  { %2920 = vmatpush.xpose.msra.mxu0 %v1204_v26  ;;  %2960 = vmatpush.xpose.msra.mxu2 %v1206_v27  ;;  %v2718_v45 = vadd.f32 %v2717_v44, %v2698_v43  ;;  %v1086_v26 = vld [vmem:[#allocation5 + $0x2010] sm:$0xff]  ;;  %v1085_v27 = vld [vmem:[#allocation5 + $0x2008] sm:$0xff] }
 0x410   :  { %2940 = vmatpush.xpose.msra.mxu1 %v1205_v30  ;;  %2980 = vmatpush.xpose.msra.mxu3 %v1207_v31  ;;  %v1074_v30 = vld [vmem:[#allocation5 + $0x1fb0] sm:$0xff]  ;;  %v1073_v31 = vld [vmem:[#allocation5 + $0x1fa8] sm:$0xff] }
 0x411   :  { %2876 = vmatmul.f32.vlgmr.msrb.gmra.mxu1 %v3766_v37  ;;  %2916 = vmatmul.f32.vlgmr.msrb.gmra.mxu3 %v3769_v38  ;;  %v2737_v56 = vpop.f32.mrf.mxu2  ;;  %v1049_v43 = vld [vmem:[#allocation5 + $0x1ee8] sm:$0xff]  ;;  %v1038_v44 = vld [vmem:[#allocation5 + $0x1e90] sm:$0xff] }
 0x412   :  { %v2738_v51 = vadd.f32 %v2737_v56, %v2718_v45  ;;  %v1037_v45 = vld [vmem:[#allocation5 + $0x1e88] sm:$0xff]  ;;  %v1210_v56 = vld [vmem:[#allocation5 + $0x23f0] sm:$0xff] }
 0x413   :  { %2921 = vmatpush.xpose.msra.mxu0 %v1192_v32  ;;  %2961 = vmatpush.xpose.msra.mxu2 %v1194_v35  ;;  %v1075_v32 = vld [vmem:[#allocation5 + $0x1fb8] sm:$0xff]  ;;  %v1060_v35 = vld [vmem:[#allocation5 + $0x1f40] sm:$0xff] }
 0x414   :  { %2941 = vmatpush.xpose.msra.mxu1 %v1193_v62  ;;  %2981 = vmatpush.xpose.msra.mxu3 %v1195_v39  ;;  %v2757_v54 = vpop.f32.mrf.mxu3  ;;  %v1062_v62 = vld [vmem:[#allocation5 + $0x1f50] sm:$0xff]  ;;  %v1061_v39 = vld [vmem:[#allocation5 + $0x1f48] sm:$0xff] }
 0x415   :  { %v3917_v55 = vadd.f32 %v2757_v54, %v2738_v51  ;;  %v1025_v51 = vld [vmem:[#allocation5 + $0x1e28] sm:$0xff]  ;;  %v1211_v54 = vld [vmem:[#allocation5 + $0x23f8] sm:$0xff] }
 0x417   :  { %2922 = vmatpush.xpose.msra.mxu0 %v1180_v40  ;;  %2962 = vmatpush.xpose.msra.mxu2 %v1182_v41  ;;  %v1063_v40 = vld [vmem:[#allocation5 + $0x1f58] sm:$0xff]  ;;  %v1048_v41 = vld [vmem:[#allocation5 + $0x1ee0] sm:$0xff] }
 0x418   :  { %2942 = vmatpush.xpose.msra.mxu1 %v1181_v59  ;;  %2982 = vmatpush.xpose.msra.mxu3 %v1183_v53  ;;  %v1051_v59 = vld [vmem:[#allocation5 + $0x1ef8] sm:$0xff]  ;;  %v1036_v53 = vld [vmem:[#allocation5 + $0x1e80] sm:$0xff] }
 0x41b   :  { %2923 = vmatpush.xpose.msra.mxu0 %v1168_v46  ;;  %2963 = vmatpush.xpose.msra.mxu2 %v1170_v47  ;;  %v1039_v46 = vld [vmem:[#allocation5 + $0x1e98] sm:$0xff]  ;;  %v1024_v47 = vld [vmem:[#allocation5 + $0x1e20] sm:$0xff] }
 0x41c   :  { %2943 = vmatpush.xpose.msra.mxu1 %v1169_v48  ;;  %2983 = vmatpush.xpose.msra.mxu3 %v1171_v49  ;;  %v1026_v48 = vld [vmem:[#allocation5 + $0x1e30] sm:$0xff]  ;;  %v1208_v49 = vld [vmem:[#allocation5 + $0x23e0] sm:$0xff] }
 0x41f   :  { %2924 = vmatpush.xpose.msra.mxu0 %v1156_v50  ;;  %2964 = vmatpush.xpose.msra.mxu2 %v1158_v52  ;;  %v1027_v50 = vld [vmem:[#allocation5 + $0x1e38] sm:$0xff]  ;;  %v1209_v52 = vld [vmem:[#allocation5 + $0x23e8] sm:$0xff] }
 0x420   :  { %2944 = vmatpush.xpose.msra.mxu1 %v1157_v12  ;;  %2984 = vmatpush.xpose.msra.mxu3 %v1159_v61  ;;  %v1196_v12 = vld [vmem:[#allocation5 + $0x2380] sm:$0xff]  ;;  %v1198_v61 = vld [vmem:[#allocation5 + $0x2390] sm:$0xff] }
 0x423   :  { %2925 = vmatpush.xpose.msra.mxu0 %v1144_v36  ;;  %2965 = vmatpush.xpose.msra.mxu2 %v1146_v57  ;;  %v1197_v36 = vld [vmem:[#allocation5 + $0x2388] sm:$0xff]  ;;  %v1199_v57 = vld [vmem:[#allocation5 + $0x2398] sm:$0xff] }
 0x424   :  { %2945 = vmatpush.xpose.msra.mxu1 %v1145_v58  ;;  %2985 = vmatpush.xpose.msra.mxu3 %v1147_v63  ;;  %v1184_v58 = vld [vmem:[#allocation5 + $0x2320] sm:$0xff]  ;;  %v1186_v63 = vld [vmem:[#allocation5 + $0x2330] sm:$0xff] }
 0x427   :  { %2926 = vmatpush.xpose.msra.mxu0 %v1132_v0  ;;  %2966 = vmatpush.xpose.msra.mxu2 %v1134_v2  ;;  %v1185_v0 = vld [vmem:[#allocation5 + $0x2328] sm:$0xff]  ;;  %v1187_v2 = vld [vmem:[#allocation5 + $0x2338] sm:$0xff] }
 0x428   :  { %2946 = vmatpush.xpose.msra.mxu1 %v1133_v60  ;;  %2986 = vmatpush.xpose.msra.mxu3 %v1135_v1  ;;  %v1172_v60 = vld [vmem:[#allocation5 + $0x22c0] sm:$0xff]  ;;  %v1174_v1 = vld [vmem:[#allocation5 + $0x22d0] sm:$0xff] }
 0x42b   :  { %2927 = vmatpush.xpose.msra.mxu0 %v1120_v3  ;;  %2967 = vmatpush.xpose.msra.mxu2 %v1122_v6  ;;  %v1173_v3 = vld [vmem:[#allocation5 + $0x22c8] sm:$0xff]  ;;  %v1175_v6 = vld [vmem:[#allocation5 + $0x22d8] sm:$0xff] }
 0x42c   :  { %2947 = vmatpush.xpose.msra.mxu1 %v1121_v8  ;;  %2987 = vmatpush.xpose.msra.mxu3 %v1123_v11  ;;  %v1160_v8 = vld [vmem:[#allocation5 + $0x2260] sm:$0xff]  ;;  %v1162_v11 = vld [vmem:[#allocation5 + $0x2270] sm:$0xff] }
 0x42f   :  { %2928 = vmatpush.xpose.msra.mxu0 %v1108_v15  ;;  %2968 = vmatpush.xpose.msra.mxu2 %v1110_v16  ;;  %v1161_v15 = vld [vmem:[#allocation5 + $0x2268] sm:$0xff]  ;;  %v1163_v16 = vld [vmem:[#allocation5 + $0x2278] sm:$0xff] }
 0x430   :  { %2948 = vmatpush.xpose.msra.mxu1 %v1109_v17  ;;  %2988 = vmatpush.xpose.msra.mxu3 %v1111_v18  ;;  %v1148_v17 = vld [vmem:[#allocation5 + $0x2200] sm:$0xff]  ;;  %v1150_v18 = vld [vmem:[#allocation5 + $0x2210] sm:$0xff] }
 0x433   :  { %2929 = vmatpush.xpose.msra.mxu0 %v1096_v7  ;;  %2969 = vmatpush.xpose.msra.mxu2 %v1098_v19  ;;  %v1149_v7 = vld [vmem:[#allocation5 + $0x2208] sm:$0xff]  ;;  %v1151_v19 = vld [vmem:[#allocation5 + $0x2218] sm:$0xff] }
 0x434   :  { %2949 = vmatpush.xpose.msra.mxu1 %v1097_v22  ;;  %2989 = vmatpush.xpose.msra.mxu3 %v1099_v4  ;;  %v1136_v22 = vld [vmem:[#allocation5 + $0x21a0] sm:$0xff]  ;;  %v1138_v4 = vld [vmem:[#allocation5 + $0x21b0] sm:$0xff] }
 0x437   :  { %2930 = vmatpush.xpose.msra.mxu0 %v1084_v23  ;;  %2970 = vmatpush.xpose.msra.mxu2 %v1086_v26  ;;  %v1137_v23 = vld [vmem:[#allocation5 + $0x21a8] sm:$0xff]  ;;  %v1139_v26 = vld [vmem:[#allocation5 + $0x21b8] sm:$0xff] }
 0x438   :  { %2950 = vmatpush.xpose.msra.mxu1 %v1085_v27  ;;  %2990 = vmatpush.xpose.msra.mxu3 %v1087_v28  ;;  %v1124_v27 = vld [vmem:[#allocation5 + $0x2140] sm:$0xff]  ;;  %v1126_v28 = vld [vmem:[#allocation5 + $0x2150] sm:$0xff] }
 0x43b   :  { %2931 = vmatpush.xpose.msra.mxu0 %v1072_v29  ;;  %2971 = vmatpush.xpose.msra.mxu2 %v1074_v30  ;;  %v1125_v29 = vld [vmem:[#allocation5 + $0x2148] sm:$0xff]  ;;  %v1127_v30 = vld [vmem:[#allocation5 + $0x2158] sm:$0xff] }
 0x43c   :  { %2951 = vmatpush.xpose.msra.mxu1 %v1073_v31  ;;  %2991 = vmatpush.xpose.msra.mxu3 %v1075_v32  ;;  %v1112_v31 = vld [vmem:[#allocation5 + $0x20e0] sm:$0xff]  ;;  %v1114_v32 = vld [vmem:[#allocation5 + $0x20f0] sm:$0xff] }
 0x43f   :  { %2932 = vmatpush.xpose.msra.mxu0 %v1060_v35  ;;  %2972 = vmatpush.xpose.msra.mxu2 %v1062_v62  ;;  %v1113_v35 = vld [vmem:[#allocation5 + $0x20e8] sm:$0xff]  ;;  %v1115_v62 = vld [vmem:[#allocation5 + $0x20f8] sm:$0xff] }
 0x440   :  { %2952 = vmatpush.xpose.msra.mxu1 %v1061_v39  ;;  %2992 = vmatpush.xpose.msra.mxu3 %v1063_v40  ;;  %v1100_v39 = vld [vmem:[#allocation5 + $0x2080] sm:$0xff]  ;;  %v1102_v40 = vld [vmem:[#allocation5 + $0x2090] sm:$0xff] }
 0x443   :  { %2933 = vmatpush.xpose.msra.mxu0 %v1048_v41  ;;  %2973 = vmatpush.xpose.msra.mxu2 %v1050_v42  ;;  %v1101_v41 = vld [vmem:[#allocation5 + $0x2088] sm:$0xff]  ;;  %v1103_v42 = vld [vmem:[#allocation5 + $0x2098] sm:$0xff] }
 0x444   :  { %2953 = vmatpush.xpose.msra.mxu1 %v1049_v43  ;;  %2993 = vmatpush.xpose.msra.mxu3 %v1051_v59  ;;  %v1088_v43 = vld [vmem:[#allocation5 + $0x2020] sm:$0xff]  ;;  %v1090_v59 = vld [vmem:[#allocation5 + $0x2030] sm:$0xff] }
 0x447   :  { %2934 = vmatpush.xpose.msra.mxu0 %v1036_v53  ;;  %2974 = vmatpush.xpose.msra.mxu2 %v1038_v44  ;;  %v1089_v53 = vld [vmem:[#allocation5 + $0x2028] sm:$0xff]  ;;  %v1091_v44 = vld [vmem:[#allocation5 + $0x2038] sm:$0xff] }
 0x448   :  { %2954 = vmatpush.xpose.msra.mxu1 %v1037_v45  ;;  %2994 = vmatpush.xpose.msra.mxu3 %v1039_v46  ;;  %v1076_v45 = vld [vmem:[#allocation5 + $0x1fc0] sm:$0xff]  ;;  %v1078_v46 = vld [vmem:[#allocation5 + $0x1fd0] sm:$0xff] }
 0x44b   :  { %2935 = vmatpush.xpose.msra.mxu0 %v1024_v47  ;;  %2975 = vmatpush.xpose.msra.mxu2 %v1026_v48  ;;  %v1077_v47 = vld [vmem:[#allocation5 + $0x1fc8] sm:$0xff]  ;;  %v1079_v48 = vld [vmem:[#allocation5 + $0x1fd8] sm:$0xff] }
 0x44c   :  { %2955 = vmatpush.xpose.msra.mxu1 %v1025_v51  ;;  %2995 = vmatpush.xpose.msra.mxu3 %v1027_v50  ;;  %v1065_v51 = vld [vmem:[#allocation5 + $0x1f68] sm:$0xff]  ;;  %v1067_v50 = vld [vmem:[#allocation5 + $0x1f78] sm:$0xff] }
 0x44e   :  { %2976 = vmatmul.f32.vlgmr.msra.gmra.mxu2 %v3774_v9  ;;  %2936 = vmatmul.f32.vlgmr.msra.gmra.mxu0 %v3777_v10 }
 0x44f   :  { %3000 = vmatpush.xpose.msrb.mxu0 %v1208_v49  ;;  %3040 = vmatpush.xpose.msrb.mxu2 %v1210_v56  ;;  %v1064_v49 = vld [vmem:[#allocation5 + $0x1f60] sm:$0xff]  ;;  %v1066_v56 = vld [vmem:[#allocation5 + $0x1f70] sm:$0xff] }
 0x450   :  { %3020 = vmatpush.xpose.msrb.mxu1 %v1209_v52  ;;  %3060 = vmatpush.xpose.msrb.mxu3 %v1211_v54  ;;  %v1052_v52 = vld [vmem:[#allocation5 + $0x1f00] sm:$0xff]  ;;  %v1054_v54 = vld [vmem:[#allocation5 + $0x1f10] sm:$0xff] }
 0x451   :  { %2996 = vmatmul.f32.vlgmr.msra.gmra.mxu3 %v3780_v13  ;;  %2956 = vmatmul.f32.vlgmr.msra.gmra.mxu1 %v3783_v14 }
 0x453   :  { %3001 = vmatpush.xpose.msrb.mxu0 %v1196_v12  ;;  %3041 = vmatpush.xpose.msrb.mxu2 %v1198_v61  ;;  %v1053_v12 = vld [vmem:[#allocation5 + $0x1f08] sm:$0xff]  ;;  %v1055_v61 = vld [vmem:[#allocation5 + $0x1f18] sm:$0xff] }
 0x454   :  { %3021 = vmatpush.xpose.msrb.mxu1 %v1197_v36  ;;  %3061 = vmatpush.xpose.msrb.mxu3 %v1199_v57  ;;  %v1040_v36 = vld [vmem:[#allocation5 + $0x1ea0] sm:$0xff]  ;;  %v1042_v57 = vld [vmem:[#allocation5 + $0x1eb0] sm:$0xff] }
 0x457   :  { %3002 = vmatpush.xpose.msrb.mxu0 %v1184_v58  ;;  %3042 = vmatpush.xpose.msrb.mxu2 %v1186_v63  ;;  %v1041_v58 = vld [vmem:[#allocation5 + $0x1ea8] sm:$0xff]  ;;  %v1043_v63 = vld [vmem:[#allocation5 + $0x1eb8] sm:$0xff] }
 0x458   :  { %3022 = vmatpush.xpose.msrb.mxu1 %v1185_v0  ;;  %3062 = vmatpush.xpose.msrb.mxu3 %v1187_v2  ;;  %v1028_v0 = vld [vmem:[#allocation5 + $0x1e40] sm:$0xff]  ;;  %v1030_v2 = vld [vmem:[#allocation5 + $0x1e50] sm:$0xff] }
 0x45b   :  { %3003 = vmatpush.xpose.msrb.mxu0 %v1172_v60  ;;  %3043 = vmatpush.xpose.msrb.mxu2 %v1174_v1  ;;  %v1392_v60 = vld [vmem:[#allocation5 + $0x29a0] sm:$0xff]  ;;  %v1394_v1 = vld [vmem:[#allocation5 + $0x29b0] sm:$0xff] }
 0x45c   :  { %3023 = vmatpush.xpose.msrb.mxu1 %v1173_v3  ;;  %3063 = vmatpush.xpose.msrb.mxu3 %v1175_v6  ;;  %v1029_v3 = vld [vmem:[#allocation5 + $0x1e48] sm:$0xff]  ;;  %v1031_v6 = vld [vmem:[#allocation5 + $0x1e58] sm:$0xff] }
 0x45f   :  { %3004 = vmatpush.xpose.msrb.mxu0 %v1160_v8  ;;  %3044 = vmatpush.xpose.msrb.mxu2 %v1162_v11  ;;  %v1393_v8 = vld [vmem:[#allocation5 + $0x29a8] sm:$0xff]  ;;  %v1395_v11 = vld [vmem:[#allocation5 + $0x29b8] sm:$0xff] }
 0x460   :  { %3024 = vmatpush.xpose.msrb.mxu1 %v1161_v15  ;;  %3064 = vmatpush.xpose.msrb.mxu3 %v1163_v16  ;;  %v1380_v15 = vld [vmem:[#allocation5 + $0x2940] sm:$0xff]  ;;  %v1382_v16 = vld [vmem:[#allocation5 + $0x2950] sm:$0xff] }
 0x463   :  { %3005 = vmatpush.xpose.msrb.mxu0 %v1148_v17  ;;  %3045 = vmatpush.xpose.msrb.mxu2 %v1150_v18  ;;  %v1381_v17 = vld [vmem:[#allocation5 + $0x2948] sm:$0xff]  ;;  %v1383_v18 = vld [vmem:[#allocation5 + $0x2958] sm:$0xff] }
 0x464   :  { %3025 = vmatpush.xpose.msrb.mxu1 %v1149_v7  ;;  %3065 = vmatpush.xpose.msrb.mxu3 %v1151_v19  ;;  %v1368_v7 = vld [vmem:[#allocation5 + $0x28e0] sm:$0xff]  ;;  %v1370_v19 = vld [vmem:[#allocation5 + $0x28f0] sm:$0xff] }
 0x467   :  { %3006 = vmatpush.xpose.msrb.mxu0 %v1136_v22  ;;  %3046 = vmatpush.xpose.msrb.mxu2 %v1138_v4  ;;  %v1369_v22 = vld [vmem:[#allocation5 + $0x28e8] sm:$0xff]  ;;  %v1371_v4 = vld [vmem:[#allocation5 + $0x28f8] sm:$0xff] }
 0x468   :  { %3026 = vmatpush.xpose.msrb.mxu1 %v1137_v23  ;;  %3066 = vmatpush.xpose.msrb.mxu3 %v1139_v26  ;;  %v1356_v23 = vld [vmem:[#allocation5 + $0x2880] sm:$0xff]  ;;  %v1358_v26 = vld [vmem:[#allocation5 + $0x2890] sm:$0xff] }
 0x46b   :  { %3007 = vmatpush.xpose.msrb.mxu0 %v1124_v27  ;;  %3047 = vmatpush.xpose.msrb.mxu2 %v1126_v28  ;;  %v1357_v27 = vld [vmem:[#allocation5 + $0x2888] sm:$0xff]  ;;  %v1359_v28 = vld [vmem:[#allocation5 + $0x2898] sm:$0xff] }
 0x46c   :  { %3027 = vmatpush.xpose.msrb.mxu1 %v1125_v29  ;;  %3067 = vmatpush.xpose.msrb.mxu3 %v1127_v30  ;;  %v1344_v29 = vld [vmem:[#allocation5 + $0x2820] sm:$0xff]  ;;  %v1346_v30 = vld [vmem:[#allocation5 + $0x2830] sm:$0xff] }
 0x46f   :  { %3008 = vmatpush.xpose.msrb.mxu0 %v1112_v31  ;;  %3048 = vmatpush.xpose.msrb.mxu2 %v1114_v32  ;;  %v1345_v31 = vld [vmem:[#allocation5 + $0x2828] sm:$0xff]  ;;  %v1347_v32 = vld [vmem:[#allocation5 + $0x2838] sm:$0xff] }
 0x470   :  { %3028 = vmatpush.xpose.msrb.mxu1 %v1113_v35  ;;  %3068 = vmatpush.xpose.msrb.mxu3 %v1115_v62  ;;  %v1332_v35 = vld [vmem:[#allocation5 + $0x27c0] sm:$0xff]  ;;  %v1334_v62 = vld [vmem:[#allocation5 + $0x27d0] sm:$0xff] }
 0x473   :  { %3009 = vmatpush.xpose.msrb.mxu0 %v1100_v39  ;;  %3049 = vmatpush.xpose.msrb.mxu2 %v1102_v40  ;;  %v1333_v39 = vld [vmem:[#allocation5 + $0x27c8] sm:$0xff]  ;;  %v1335_v40 = vld [vmem:[#allocation5 + $0x27d8] sm:$0xff] }
 0x474   :  { %3029 = vmatpush.xpose.msrb.mxu1 %v1101_v41  ;;  %3069 = vmatpush.xpose.msrb.mxu3 %v1103_v42  ;;  %v1320_v41 = vld [vmem:[#allocation5 + $0x2760] sm:$0xff]  ;;  %v1322_v42 = vld [vmem:[#allocation5 + $0x2770] sm:$0xff] }
 0x477   :  { %3010 = vmatpush.xpose.msrb.mxu0 %v1088_v43  ;;  %3050 = vmatpush.xpose.msrb.mxu2 %v1090_v59  ;;  %v1321_v43 = vld [vmem:[#allocation5 + $0x2768] sm:$0xff]  ;;  %v1323_v59 = vld [vmem:[#allocation5 + $0x2778] sm:$0xff] }
 0x478   :  { %3030 = vmatpush.xpose.msrb.mxu1 %v1089_v53  ;;  %3070 = vmatpush.xpose.msrb.mxu3 %v1091_v44  ;;  %v1308_v53 = vld [vmem:[#allocation5 + $0x2700] sm:$0xff]  ;;  %v1310_v44 = vld [vmem:[#allocation5 + $0x2710] sm:$0xff] }
 0x47b   :  { %3011 = vmatpush.xpose.msrb.mxu0 %v1076_v45  ;;  %3051 = vmatpush.xpose.msrb.mxu2 %v1078_v46  ;;  %v1309_v45 = vld [vmem:[#allocation5 + $0x2708] sm:$0xff]  ;;  %v1311_v46 = vld [vmem:[#allocation5 + $0x2718] sm:$0xff] }
 0x47c   :  { %3031 = vmatpush.xpose.msrb.mxu1 %v1077_v47  ;;  %3071 = vmatpush.xpose.msrb.mxu3 %v1079_v48  ;;  %v1296_v47 = vld [vmem:[#allocation5 + $0x26a0] sm:$0xff]  ;;  %v1298_v48 = vld [vmem:[#allocation5 + $0x26b0] sm:$0xff] }
 0x47f   :  { %3012 = vmatpush.xpose.msrb.mxu0 %v1064_v49  ;;  %3052 = vmatpush.xpose.msrb.mxu2 %v1066_v56  ;;  %v1297_v49 = vld [vmem:[#allocation5 + $0x26a8] sm:$0xff]  ;;  %v1299_v56 = vld [vmem:[#allocation5 + $0x26b8] sm:$0xff] }
 0x480   :  { %3032 = vmatpush.xpose.msrb.mxu1 %v1065_v51  ;;  %3072 = vmatpush.xpose.msrb.mxu3 %v1067_v50  ;;  %v1284_v51 = vld [vmem:[#allocation5 + $0x2640] sm:$0xff]  ;;  %v1286_v50 = vld [vmem:[#allocation5 + $0x2650] sm:$0xff] }
 0x483   :  { %3013 = vmatpush.xpose.msrb.mxu0 %v1052_v52  ;;  %3053 = vmatpush.xpose.msrb.mxu2 %v1054_v54  ;;  %v1285_v52 = vld [vmem:[#allocation5 + $0x2648] sm:$0xff]  ;;  %v1287_v54 = vld [vmem:[#allocation5 + $0x2658] sm:$0xff] }
 0x484   :  { %3033 = vmatpush.xpose.msrb.mxu1 %v1053_v12  ;;  %3073 = vmatpush.xpose.msrb.mxu3 %v1055_v61  ;;  %v1272_v12 = vld [vmem:[#allocation5 + $0x25e0] sm:$0xff]  ;;  %v1274_v61 = vld [vmem:[#allocation5 + $0x25f0] sm:$0xff] }
 0x487   :  { %3014 = vmatpush.xpose.msrb.mxu0 %v1040_v36  ;;  %3054 = vmatpush.xpose.msrb.mxu2 %v1042_v57  ;;  %v1273_v36 = vld [vmem:[#allocation5 + $0x25e8] sm:$0xff]  ;;  %v1275_v57 = vld [vmem:[#allocation5 + $0x25f8] sm:$0xff] }
 0x488   :  { %3034 = vmatpush.xpose.msrb.mxu1 %v1041_v58  ;;  %3074 = vmatpush.xpose.msrb.mxu3 %v1043_v63  ;;  %v1260_v58 = vld [vmem:[#allocation5 + $0x2580] sm:$0xff]  ;;  %v1262_v63 = vld [vmem:[#allocation5 + $0x2590] sm:$0xff] }
 0x48b   :  { %3015 = vmatpush.xpose.msrb.mxu0 %v1028_v0  ;;  %3055 = vmatpush.xpose.msrb.mxu2 %v1030_v2  ;;  %v1261_v0 = vld [vmem:[#allocation5 + $0x2588] sm:$0xff]  ;;  %v1263_v2 = vld [vmem:[#allocation5 + $0x2598] sm:$0xff] }
 0x48c   :  { %3035 = vmatpush.xpose.msrb.mxu1 %v1029_v3  ;;  %3075 = vmatpush.xpose.msrb.mxu3 %v1031_v6  ;;  %v1249_v3 = vld [vmem:[#allocation5 + $0x2528] sm:$0xff]  ;;  %v1251_v6 = vld [vmem:[#allocation5 + $0x2538] sm:$0xff] }
 0x48e   :  { %3016 = vmatmul.f32.vlgmr.msrb.gmra.mxu0 %v3789_v20  ;;  %3056 = vmatmul.f32.vlgmr.msrb.gmra.mxu2 %v3791_v21 }
 0x48f   :  { %3080 = vmatpush.xpose.msra.mxu0 %v1392_v60  ;;  %3120 = vmatpush.xpose.msra.mxu2 %v1394_v1  ;;  %v1248_v60 = vld [vmem:[#allocation5 + $0x2520] sm:$0xff]  ;;  %v1250_v1 = vld [vmem:[#allocation5 + $0x2530] sm:$0xff] }
 0x490   :  { %3100 = vmatpush.xpose.msra.mxu1 %v1393_v8  ;;  %3140 = vmatpush.xpose.msra.mxu3 %v1395_v11  ;;  %v1236_v8 = vld [vmem:[#allocation5 + $0x24c0] sm:$0xff]  ;;  %v1238_v11 = vld [vmem:[#allocation5 + $0x24d0] sm:$0xff] }
 0x491   :  { %3036 = vmatmul.f32.vlgmr.msrb.gmra.mxu1 %v3793_v24  ;;  %3076 = vmatmul.f32.vlgmr.msrb.gmra.mxu3 %v3795_v25 }
 0x493   :  { %3081 = vmatpush.xpose.msra.mxu0 %v1380_v15  ;;  %3121 = vmatpush.xpose.msra.mxu2 %v1382_v16  ;;  %v1237_v15 = vld [vmem:[#allocation5 + $0x24c8] sm:$0xff]  ;;  %v1239_v16 = vld [vmem:[#allocation5 + $0x24d8] sm:$0xff] }
 0x494   :  { %3101 = vmatpush.xpose.msra.mxu1 %v1381_v17  ;;  %3141 = vmatpush.xpose.msra.mxu3 %v1383_v18  ;;  %v1224_v17 = vld [vmem:[#allocation5 + $0x2460] sm:$0xff]  ;;  %v1226_v18 = vld [vmem:[#allocation5 + $0x2470] sm:$0xff] }
 0x497   :  { %3082 = vmatpush.xpose.msra.mxu0 %v1368_v7  ;;  %3122 = vmatpush.xpose.msra.mxu2 %v1370_v19  ;;  %v1225_v7 = vld [vmem:[#allocation5 + $0x2468] sm:$0xff]  ;;  %v1227_v19 = vld [vmem:[#allocation5 + $0x2478] sm:$0xff] }
 0x498   :  { %3102 = vmatpush.xpose.msra.mxu1 %v1369_v22  ;;  %3142 = vmatpush.xpose.msra.mxu3 %v1371_v4  ;;  %v1212_v22 = vld [vmem:[#allocation5 + $0x2400] sm:$0xff]  ;;  %v1214_v4 = vld [vmem:[#allocation5 + $0x2410] sm:$0xff] }
 0x49b   :  { %3083 = vmatpush.xpose.msra.mxu0 %v1356_v23  ;;  %3123 = vmatpush.xpose.msra.mxu2 %v1358_v26  ;;  %v1396_v23 = vld [vmem:[#allocation5 + $0x29c0] sm:$0xff]  ;;  %v1398_v26 = vld [vmem:[#allocation5 + $0x29d0] sm:$0xff] }
 0x49c   :  { %3103 = vmatpush.xpose.msra.mxu1 %v1357_v27  ;;  %3143 = vmatpush.xpose.msra.mxu3 %v1359_v28  ;;  %v1213_v27 = vld [vmem:[#allocation5 + $0x2408] sm:$0xff]  ;;  %v1215_v28 = vld [vmem:[#allocation5 + $0x2418] sm:$0xff] }
 0x49f   :  { %3084 = vmatpush.xpose.msra.mxu0 %v1344_v29  ;;  %3124 = vmatpush.xpose.msra.mxu2 %v1346_v30  ;;  %v1397_v29 = vld [vmem:[#allocation5 + $0x29c8] sm:$0xff]  ;;  %v1399_v30 = vld [vmem:[#allocation5 + $0x29d8] sm:$0xff] }
 0x4a0   :  { %3104 = vmatpush.xpose.msra.mxu1 %v1345_v31  ;;  %3144 = vmatpush.xpose.msra.mxu3 %v1347_v32  ;;  %v1384_v31 = vld [vmem:[#allocation5 + $0x2960] sm:$0xff]  ;;  %v1386_v32 = vld [vmem:[#allocation5 + $0x2970] sm:$0xff] }
 0x4a3   :  { %3085 = vmatpush.xpose.msra.mxu0 %v1332_v35  ;;  %3125 = vmatpush.xpose.msra.mxu2 %v1334_v62  ;;  %v1385_v35 = vld [vmem:[#allocation5 + $0x2968] sm:$0xff]  ;;  %v1387_v62 = vld [vmem:[#allocation5 + $0x2978] sm:$0xff] }
 0x4a4   :  { %3105 = vmatpush.xpose.msra.mxu1 %v1333_v39  ;;  %3145 = vmatpush.xpose.msra.mxu3 %v1335_v40  ;;  %v1372_v39 = vld [vmem:[#allocation5 + $0x2900] sm:$0xff]  ;;  %v1374_v40 = vld [vmem:[#allocation5 + $0x2910] sm:$0xff] }
 0x4a7   :  { %3086 = vmatpush.xpose.msra.mxu0 %v1320_v41  ;;  %3126 = vmatpush.xpose.msra.mxu2 %v1322_v42  ;;  %v1373_v41 = vld [vmem:[#allocation5 + $0x2908] sm:$0xff]  ;;  %v1375_v42 = vld [vmem:[#allocation5 + $0x2918] sm:$0xff] }
 0x4a8   :  { %3106 = vmatpush.xpose.msra.mxu1 %v1321_v43  ;;  %3146 = vmatpush.xpose.msra.mxu3 %v1323_v59  ;;  %v1360_v43 = vld [vmem:[#allocation5 + $0x28a0] sm:$0xff]  ;;  %v1362_v59 = vld [vmem:[#allocation5 + $0x28b0] sm:$0xff] }
 0x4ab   :  { %3087 = vmatpush.xpose.msra.mxu0 %v1308_v53  ;;  %3127 = vmatpush.xpose.msra.mxu2 %v1310_v44  ;;  %v1361_v53 = vld [vmem:[#allocation5 + $0x28a8] sm:$0xff]  ;;  %v1363_v44 = vld [vmem:[#allocation5 + $0x28b8] sm:$0xff] }
 0x4ac   :  { %3107 = vmatpush.xpose.msra.mxu1 %v1309_v45  ;;  %3147 = vmatpush.xpose.msra.mxu3 %v1311_v46  ;;  %v1348_v45 = vld [vmem:[#allocation5 + $0x2840] sm:$0xff]  ;;  %v1350_v46 = vld [vmem:[#allocation5 + $0x2850] sm:$0xff] }
 0x4af   :  { %3088 = vmatpush.xpose.msra.mxu0 %v1296_v47  ;;  %3128 = vmatpush.xpose.msra.mxu2 %v1298_v48  ;;  %v1349_v47 = vld [vmem:[#allocation5 + $0x2848] sm:$0xff]  ;;  %v1351_v48 = vld [vmem:[#allocation5 + $0x2858] sm:$0xff] }
 0x4b0   :  { %3108 = vmatpush.xpose.msra.mxu1 %v1297_v49  ;;  %3148 = vmatpush.xpose.msra.mxu3 %v1299_v56  ;;  %v1336_v49 = vld [vmem:[#allocation5 + $0x27e0] sm:$0xff]  ;;  %v1338_v56 = vld [vmem:[#allocation5 + $0x27f0] sm:$0xff] }
 0x4b3   :  { %3089 = vmatpush.xpose.msra.mxu0 %v1284_v51  ;;  %3129 = vmatpush.xpose.msra.mxu2 %v1286_v50  ;;  %v1337_v51 = vld [vmem:[#allocation5 + $0x27e8] sm:$0xff]  ;;  %v1339_v50 = vld [vmem:[#allocation5 + $0x27f8] sm:$0xff] }
 0x4b4   :  { %3109 = vmatpush.xpose.msra.mxu1 %v1285_v52  ;;  %3149 = vmatpush.xpose.msra.mxu3 %v1287_v54  ;;  %v1324_v52 = vld [vmem:[#allocation5 + $0x2780] sm:$0xff]  ;;  %v1326_v54 = vld [vmem:[#allocation5 + $0x2790] sm:$0xff] }
 0x4b7   :  { %3090 = vmatpush.xpose.msra.mxu0 %v1272_v12  ;;  %3130 = vmatpush.xpose.msra.mxu2 %v1274_v61  ;;  %v1325_v12 = vld [vmem:[#allocation5 + $0x2788] sm:$0xff]  ;;  %v1327_v61 = vld [vmem:[#allocation5 + $0x2798] sm:$0xff] }
 0x4b8   :  { %3110 = vmatpush.xpose.msra.mxu1 %v1273_v36  ;;  %3150 = vmatpush.xpose.msra.mxu3 %v1275_v57  ;;  %v1312_v36 = vld [vmem:[#allocation5 + $0x2720] sm:$0xff]  ;;  %v1314_v57 = vld [vmem:[#allocation5 + $0x2730] sm:$0xff] }
 0x4bb   :  { %3091 = vmatpush.xpose.msra.mxu0 %v1260_v58  ;;  %3131 = vmatpush.xpose.msra.mxu2 %v1262_v63  ;;  %v1313_v58 = vld [vmem:[#allocation5 + $0x2728] sm:$0xff]  ;;  %v1315_v63 = vld [vmem:[#allocation5 + $0x2738] sm:$0xff] }
 0x4bc   :  { %3111 = vmatpush.xpose.msra.mxu1 %v1261_v0  ;;  %3151 = vmatpush.xpose.msra.mxu3 %v1263_v2  ;;  %v1300_v0 = vld [vmem:[#allocation5 + $0x26c0] sm:$0xff]  ;;  %v1302_v2 = vld [vmem:[#allocation5 + $0x26d0] sm:$0xff] }
 0x4bf   :  { %3092 = vmatpush.xpose.msra.mxu0 %v1248_v60  ;;  %3132 = vmatpush.xpose.msra.mxu2 %v1250_v1  ;;  %v1301_v60 = vld [vmem:[#allocation5 + $0x26c8] sm:$0xff]  ;;  %v1303_v1 = vld [vmem:[#allocation5 + $0x26d8] sm:$0xff] }
 0x4c0   :  { %3112 = vmatpush.xpose.msra.mxu1 %v1249_v3  ;;  %3152 = vmatpush.xpose.msra.mxu3 %v1251_v6  ;;  %v1288_v3 = vld [vmem:[#allocation5 + $0x2660] sm:$0xff]  ;;  %v1290_v6 = vld [vmem:[#allocation5 + $0x2670] sm:$0xff] }
 0x4c3   :  { %3093 = vmatpush.xpose.msra.mxu0 %v1236_v8  ;;  %3133 = vmatpush.xpose.msra.mxu2 %v1238_v11  ;;  %v1289_v8 = vld [vmem:[#allocation5 + $0x2668] sm:$0xff]  ;;  %v1291_v11 = vld [vmem:[#allocation5 + $0x2678] sm:$0xff] }
 0x4c4   :  { %3113 = vmatpush.xpose.msra.mxu1 %v1237_v15  ;;  %3153 = vmatpush.xpose.msra.mxu3 %v1239_v16  ;;  %v1276_v15 = vld [vmem:[#allocation5 + $0x2600] sm:$0xff]  ;;  %v1278_v16 = vld [vmem:[#allocation5 + $0x2610] sm:$0xff] }
 0x4c7   :  { %3094 = vmatpush.xpose.msra.mxu0 %v1224_v17  ;;  %3134 = vmatpush.xpose.msra.mxu2 %v1226_v18  ;;  %v1277_v17 = vld [vmem:[#allocation5 + $0x2608] sm:$0xff]  ;;  %v1279_v18 = vld [vmem:[#allocation5 + $0x2618] sm:$0xff] }
 0x4c8   :  { %3114 = vmatpush.xpose.msra.mxu1 %v1225_v7  ;;  %3154 = vmatpush.xpose.msra.mxu3 %v1227_v19  ;;  %v1264_v7 = vld [vmem:[#allocation5 + $0x25a0] sm:$0xff]  ;;  %v1266_v19 = vld [vmem:[#allocation5 + $0x25b0] sm:$0xff] }
 0x4cb   :  { %3095 = vmatpush.xpose.msra.mxu0 %v1212_v22  ;;  %3135 = vmatpush.xpose.msra.mxu2 %v1214_v4  ;;  %v1265_v22 = vld [vmem:[#allocation5 + $0x25a8] sm:$0xff]  ;;  %v1267_v4 = vld [vmem:[#allocation5 + $0x25b8] sm:$0xff] }
 0x4cc   :  { %3115 = vmatpush.xpose.msra.mxu1 %v1213_v27  ;;  %3155 = vmatpush.xpose.msra.mxu3 %v1215_v28  ;;  %v1253_v27 = vld [vmem:[#allocation5 + $0x2548] sm:$0xff]  ;;  %v1255_v28 = vld [vmem:[#allocation5 + $0x2558] sm:$0xff] }
 0x4ce   :  { %3096 = vmatmul.f32.vlgmr.msra.gmra.mxu0 %v3758_v33  ;;  %3136 = vmatmul.f32.vlgmr.msra.gmra.mxu2 %v3761_v34 }
 0x4cf   :  { %3160 = vmatpush.xpose.msrb.mxu0 %v1396_v23  ;;  %3200 = vmatpush.xpose.msrb.mxu2 %v1398_v26  ;;  %v1252_v23 = vld [vmem:[#allocation5 + $0x2540] sm:$0xff]  ;;  %v1254_v26 = vld [vmem:[#allocation5 + $0x2550] sm:$0xff] }
 0x4d0   :  { %3180 = vmatpush.xpose.msrb.mxu1 %v1397_v29  ;;  %3220 = vmatpush.xpose.msrb.mxu3 %v1399_v30  ;;  %v1240_v29 = vld [vmem:[#allocation5 + $0x24e0] sm:$0xff]  ;;  %v1242_v30 = vld [vmem:[#allocation5 + $0x24f0] sm:$0xff] }
 0x4d1   :  { %3116 = vmatmul.f32.vlgmr.msra.gmra.mxu1 %v3766_v37  ;;  %3156 = vmatmul.f32.vlgmr.msra.gmra.mxu3 %v3769_v38 }
 0x4d3   :  { %3161 = vmatpush.xpose.msrb.mxu0 %v1384_v31  ;;  %3201 = vmatpush.xpose.msrb.mxu2 %v1386_v32  ;;  %v1241_v31 = vld [vmem:[#allocation5 + $0x24e8] sm:$0xff]  ;;  %v1243_v32 = vld [vmem:[#allocation5 + $0x24f8] sm:$0xff] }
 0x4d4   :  { %3181 = vmatpush.xpose.msrb.mxu1 %v1385_v35  ;;  %3221 = vmatpush.xpose.msrb.mxu3 %v1387_v62  ;;  %v1228_v35 = vld [vmem:[#allocation5 + $0x2480] sm:$0xff]  ;;  %v1230_v62 = vld [vmem:[#allocation5 + $0x2490] sm:$0xff] }
 0x4d7   :  { %3162 = vmatpush.xpose.msrb.mxu0 %v1372_v39  ;;  %3202 = vmatpush.xpose.msrb.mxu2 %v1374_v40  ;;  %v1229_v39 = vld [vmem:[#allocation5 + $0x2488] sm:$0xff]  ;;  %v1231_v40 = vld [vmem:[#allocation5 + $0x2498] sm:$0xff] }
 0x4d8   :  { %3182 = vmatpush.xpose.msrb.mxu1 %v1373_v41  ;;  %3222 = vmatpush.xpose.msrb.mxu3 %v1375_v42  ;;  %v1216_v41 = vld [vmem:[#allocation5 + $0x2420] sm:$0xff]  ;;  %v1218_v42 = vld [vmem:[#allocation5 + $0x2430] sm:$0xff] }
 0x4db   :  { %3163 = vmatpush.xpose.msrb.mxu0 %v1360_v43  ;;  %3203 = vmatpush.xpose.msrb.mxu2 %v1362_v59  ;;  %v1400_v43 = vld [vmem:[#allocation5 + $0x29e0] sm:$0xff]  ;;  %v1402_v59 = vld [vmem:[#allocation5 + $0x29f0] sm:$0xff] }
 0x4dc   :  { %3183 = vmatpush.xpose.msrb.mxu1 %v1361_v53  ;;  %3223 = vmatpush.xpose.msrb.mxu3 %v1363_v44  ;;  %v1217_v53 = vld [vmem:[#allocation5 + $0x2428] sm:$0xff]  ;;  %v1219_v44 = vld [vmem:[#allocation5 + $0x2438] sm:$0xff] }
 0x4df   :  { %3164 = vmatpush.xpose.msrb.mxu0 %v1348_v45  ;;  %3204 = vmatpush.xpose.msrb.mxu2 %v1350_v46  ;;  %v1401_v45 = vld [vmem:[#allocation5 + $0x29e8] sm:$0xff]  ;;  %v1403_v46 = vld [vmem:[#allocation5 + $0x29f8] sm:$0xff] }
 0x4e0   :  { %3184 = vmatpush.xpose.msrb.mxu1 %v1349_v47  ;;  %3224 = vmatpush.xpose.msrb.mxu3 %v1351_v48  ;;  %v1388_v47 = vld [vmem:[#allocation5 + $0x2980] sm:$0xff]  ;;  %v1390_v48 = vld [vmem:[#allocation5 + $0x2990] sm:$0xff] }
 0x4e3   :  { %3165 = vmatpush.xpose.msrb.mxu0 %v1336_v49  ;;  %3205 = vmatpush.xpose.msrb.mxu2 %v1338_v56  ;;  %v1389_v49 = vld [vmem:[#allocation5 + $0x2988] sm:$0xff]  ;;  %v1391_v56 = vld [vmem:[#allocation5 + $0x2998] sm:$0xff] }
 0x4e4   :  { %3185 = vmatpush.xpose.msrb.mxu1 %v1337_v51  ;;  %3225 = vmatpush.xpose.msrb.mxu3 %v1339_v50  ;;  %v1376_v51 = vld [vmem:[#allocation5 + $0x2920] sm:$0xff]  ;;  %v1378_v50 = vld [vmem:[#allocation5 + $0x2930] sm:$0xff] }
 0x4e7   :  { %3166 = vmatpush.xpose.msrb.mxu0 %v1324_v52  ;;  %3206 = vmatpush.xpose.msrb.mxu2 %v1326_v54  ;;  %v1377_v52 = vld [vmem:[#allocation5 + $0x2928] sm:$0xff]  ;;  %v1379_v54 = vld [vmem:[#allocation5 + $0x2938] sm:$0xff] }
 0x4e8   :  { %3186 = vmatpush.xpose.msrb.mxu1 %v1325_v12  ;;  %3226 = vmatpush.xpose.msrb.mxu3 %v1327_v61  ;;  %v1364_v12 = vld [vmem:[#allocation5 + $0x28c0] sm:$0xff]  ;;  %v1366_v61 = vld [vmem:[#allocation5 + $0x28d0] sm:$0xff] }
 0x4eb   :  { %3167 = vmatpush.xpose.msrb.mxu0 %v1312_v36  ;;  %3207 = vmatpush.xpose.msrb.mxu2 %v1314_v57  ;;  %v1365_v36 = vld [vmem:[#allocation5 + $0x28c8] sm:$0xff]  ;;  %v1367_v57 = vld [vmem:[#allocation5 + $0x28d8] sm:$0xff] }
 0x4ec   :  { %3187 = vmatpush.xpose.msrb.mxu1 %v1313_v58  ;;  %3227 = vmatpush.xpose.msrb.mxu3 %v1315_v63  ;;  %v1352_v58 = vld [vmem:[#allocation5 + $0x2860] sm:$0xff]  ;;  %v1354_v63 = vld [vmem:[#allocation5 + $0x2870] sm:$0xff] }
 0x4ef   :  { %3168 = vmatpush.xpose.msrb.mxu0 %v1300_v0  ;;  %3208 = vmatpush.xpose.msrb.mxu2 %v1302_v2  ;;  %v1353_v0 = vld [vmem:[#allocation5 + $0x2868] sm:$0xff]  ;;  %v1355_v2 = vld [vmem:[#allocation5 + $0x2878] sm:$0xff] }
 0x4f0   :  { %3188 = vmatpush.xpose.msrb.mxu1 %v1301_v60  ;;  %3228 = vmatpush.xpose.msrb.mxu3 %v1303_v1  ;;  %v1340_v60 = vld [vmem:[#allocation5 + $0x2800] sm:$0xff]  ;;  %v1342_v1 = vld [vmem:[#allocation5 + $0x2810] sm:$0xff] }
 0x4f3   :  { %3169 = vmatpush.xpose.msrb.mxu0 %v1288_v3  ;;  %3209 = vmatpush.xpose.msrb.mxu2 %v1290_v6  ;;  %v1341_v3 = vld [vmem:[#allocation5 + $0x2808] sm:$0xff]  ;;  %v1343_v6 = vld [vmem:[#allocation5 + $0x2818] sm:$0xff] }
 0x4f4   :  { %3189 = vmatpush.xpose.msrb.mxu1 %v1289_v8  ;;  %3229 = vmatpush.xpose.msrb.mxu3 %v1291_v11  ;;  %v1328_v8 = vld [vmem:[#allocation5 + $0x27a0] sm:$0xff]  ;;  %v1330_v11 = vld [vmem:[#allocation5 + $0x27b0] sm:$0xff] }
 0x4f7   :  { %3170 = vmatpush.xpose.msrb.mxu0 %v1276_v15  ;;  %3210 = vmatpush.xpose.msrb.mxu2 %v1278_v16  ;;  %v1329_v15 = vld [vmem:[#allocation5 + $0x27a8] sm:$0xff]  ;;  %v1331_v16 = vld [vmem:[#allocation5 + $0x27b8] sm:$0xff] }
 0x4f8   :  { %3190 = vmatpush.xpose.msrb.mxu1 %v1277_v17  ;;  %3230 = vmatpush.xpose.msrb.mxu3 %v1279_v18  ;;  %v1316_v17 = vld [vmem:[#allocation5 + $0x2740] sm:$0xff]  ;;  %v1318_v18 = vld [vmem:[#allocation5 + $0x2750] sm:$0xff] }
 0x4fb   :  { %3171 = vmatpush.xpose.msrb.mxu0 %v1264_v7  ;;  %3211 = vmatpush.xpose.msrb.mxu2 %v1266_v19  ;;  %v1317_v7 = vld [vmem:[#allocation5 + $0x2748] sm:$0xff]  ;;  %v1319_v19 = vld [vmem:[#allocation5 + $0x2758] sm:$0xff] }
 0x4fc   :  { %3191 = vmatpush.xpose.msrb.mxu1 %v1265_v22  ;;  %3231 = vmatpush.xpose.msrb.mxu3 %v1267_v4  ;;  %v1304_v22 = vld [vmem:[#allocation5 + $0x26e0] sm:$0xff]  ;;  %v1306_v4 = vld [vmem:[#allocation5 + $0x26f0] sm:$0xff] }
 0x4ff   :  { %3172 = vmatpush.xpose.msrb.mxu0 %v1252_v23  ;;  %3212 = vmatpush.xpose.msrb.mxu2 %v1254_v26  ;;  %v1305_v23 = vld [vmem:[#allocation5 + $0x26e8] sm:$0xff]  ;;  %v1307_v26 = vld [vmem:[#allocation5 + $0x26f8] sm:$0xff] }
 0x500   :  { %3192 = vmatpush.xpose.msrb.mxu1 %v1253_v27  ;;  %3232 = vmatpush.xpose.msrb.mxu3 %v1255_v28  ;;  %v1292_v27 = vld [vmem:[#allocation5 + $0x2680] sm:$0xff]  ;;  %v1294_v28 = vld [vmem:[#allocation5 + $0x2690] sm:$0xff] }
 0x503   :  { %3173 = vmatpush.xpose.msrb.mxu0 %v1240_v29  ;;  %3213 = vmatpush.xpose.msrb.mxu2 %v1242_v30  ;;  %v1293_v29 = vld [vmem:[#allocation5 + $0x2688] sm:$0xff]  ;;  %v1295_v30 = vld [vmem:[#allocation5 + $0x2698] sm:$0xff] }
 0x504   :  { %3193 = vmatpush.xpose.msrb.mxu1 %v1241_v31  ;;  %3233 = vmatpush.xpose.msrb.mxu3 %v1243_v32  ;;  %v1280_v31 = vld [vmem:[#allocation5 + $0x2620] sm:$0xff]  ;;  %v1282_v32 = vld [vmem:[#allocation5 + $0x2630] sm:$0xff] }
 0x507   :  { %3174 = vmatpush.xpose.msrb.mxu0 %v1228_v35  ;;  %3214 = vmatpush.xpose.msrb.mxu2 %v1230_v62  ;;  %v1281_v35 = vld [vmem:[#allocation5 + $0x2628] sm:$0xff]  ;;  %v1283_v62 = vld [vmem:[#allocation5 + $0x2638] sm:$0xff] }
 0x508   :  { %3194 = vmatpush.xpose.msrb.mxu1 %v1229_v39  ;;  %3234 = vmatpush.xpose.msrb.mxu3 %v1231_v40  ;;  %v1268_v39 = vld [vmem:[#allocation5 + $0x25c0] sm:$0xff]  ;;  %v1270_v40 = vld [vmem:[#allocation5 + $0x25d0] sm:$0xff] }
 0x50b   :  { %3175 = vmatpush.xpose.msrb.mxu0 %v1216_v41  ;;  %3215 = vmatpush.xpose.msrb.mxu2 %v1218_v42  ;;  %v1269_v41 = vld [vmem:[#allocation5 + $0x25c8] sm:$0xff]  ;;  %v1271_v42 = vld [vmem:[#allocation5 + $0x25d8] sm:$0xff] }
 0x50c   :  { %3195 = vmatpush.xpose.msrb.mxu1 %v1217_v53  ;;  %3235 = vmatpush.xpose.msrb.mxu3 %v1219_v44  ;;  %v1257_v53 = vld [vmem:[#allocation5 + $0x2568] sm:$0xff]  ;;  %v1259_v44 = vld [vmem:[#allocation5 + $0x2578] sm:$0xff] }
 0x50e   :  { %3216 = vmatmul.f32.vlgmr.msrb.gmra.mxu2 %v3774_v9  ;;  %3176 = vmatmul.f32.vlgmr.msrb.gmra.mxu0 %v3777_v10 }
 0x50f   :  { %3240 = vmatpush.xpose.msra.mxu0 %v1400_v43  ;;  %3280 = vmatpush.xpose.msra.mxu2 %v1402_v59  ;;  %v1256_v43 = vld [vmem:[#allocation5 + $0x2560] sm:$0xff]  ;;  %v1258_v59 = vld [vmem:[#allocation5 + $0x2570] sm:$0xff] }
 0x510   :  { %3260 = vmatpush.xpose.msra.mxu1 %v1401_v45  ;;  %3300 = vmatpush.xpose.msra.mxu3 %v1403_v46  ;;  %v1244_v45 = vld [vmem:[#allocation5 + $0x2500] sm:$0xff]  ;;  %v1246_v46 = vld [vmem:[#allocation5 + $0x2510] sm:$0xff] }
 0x511   :  { %3236 = vmatmul.f32.vlgmr.msrb.gmra.mxu3 %v3780_v13  ;;  %3196 = vmatmul.f32.vlgmr.msrb.gmra.mxu1 %v3783_v14 }
 0x513   :  { %3241 = vmatpush.xpose.msra.mxu0 %v1388_v47  ;;  %3281 = vmatpush.xpose.msra.mxu2 %v1390_v48  ;;  %v1245_v47 = vld [vmem:[#allocation5 + $0x2508] sm:$0xff]  ;;  %v1247_v48 = vld [vmem:[#allocation5 + $0x2518] sm:$0xff] }
 0x514   :  { %3261 = vmatpush.xpose.msra.mxu1 %v1389_v49  ;;  %3301 = vmatpush.xpose.msra.mxu3 %v1391_v56  ;;  %v1232_v49 = vld [vmem:[#allocation5 + $0x24a0] sm:$0xff]  ;;  %v1234_v56 = vld [vmem:[#allocation5 + $0x24b0] sm:$0xff] }
 0x517   :  { %3242 = vmatpush.xpose.msra.mxu0 %v1376_v51  ;;  %3282 = vmatpush.xpose.msra.mxu2 %v1378_v50  ;;  %v1233_v51 = vld [vmem:[#allocation5 + $0x24a8] sm:$0xff]  ;;  %v1235_v50 = vld [vmem:[#allocation5 + $0x24b8] sm:$0xff] }
 0x518   :  { %3262 = vmatpush.xpose.msra.mxu1 %v1377_v52  ;;  %3302 = vmatpush.xpose.msra.mxu3 %v1379_v54  ;;  %v1220_v52 = vld [vmem:[#allocation5 + $0x2440] sm:$0xff]  ;;  %v1222_v54 = vld [vmem:[#allocation5 + $0x2450] sm:$0xff] }
 0x51b   :  { %3243 = vmatpush.xpose.msra.mxu0 %v1364_v12  ;;  %3283 = vmatpush.xpose.msra.mxu2 %v1366_v61  ;;  %v1584_v12 = vld [vmem:[#allocation5 + $0x2fa0] sm:$0xff]  ;;  %v1586_v61 = vld [vmem:[#allocation5 + $0x2fb0] sm:$0xff] }
 0x51c   :  { %3263 = vmatpush.xpose.msra.mxu1 %v1365_v36  ;;  %3303 = vmatpush.xpose.msra.mxu3 %v1367_v57  ;;  %v1221_v36 = vld [vmem:[#allocation5 + $0x2448] sm:$0xff]  ;;  %v1223_v57 = vld [vmem:[#allocation5 + $0x2458] sm:$0xff] }
 0x51f   :  { %3244 = vmatpush.xpose.msra.mxu0 %v1352_v58  ;;  %3284 = vmatpush.xpose.msra.mxu2 %v1354_v63  ;;  %v1585_v58 = vld [vmem:[#allocation5 + $0x2fa8] sm:$0xff]  ;;  %v1587_v63 = vld [vmem:[#allocation5 + $0x2fb8] sm:$0xff] }
 0x520   :  { %3264 = vmatpush.xpose.msra.mxu1 %v1353_v0  ;;  %3304 = vmatpush.xpose.msra.mxu3 %v1355_v2  ;;  %v1572_v0 = vld [vmem:[#allocation5 + $0x2f40] sm:$0xff]  ;;  %v1574_v2 = vld [vmem:[#allocation5 + $0x2f50] sm:$0xff] }
 0x523   :  { %3245 = vmatpush.xpose.msra.mxu0 %v1340_v60  ;;  %3285 = vmatpush.xpose.msra.mxu2 %v1342_v1  ;;  %v1573_v60 = vld [vmem:[#allocation5 + $0x2f48] sm:$0xff]  ;;  %v1575_v1 = vld [vmem:[#allocation5 + $0x2f58] sm:$0xff] }
 0x524   :  { %3265 = vmatpush.xpose.msra.mxu1 %v1341_v3  ;;  %3305 = vmatpush.xpose.msra.mxu3 %v1343_v6  ;;  %v1560_v3 = vld [vmem:[#allocation5 + $0x2ee0] sm:$0xff]  ;;  %v1562_v6 = vld [vmem:[#allocation5 + $0x2ef0] sm:$0xff] }
 0x527   :  { %3246 = vmatpush.xpose.msra.mxu0 %v1328_v8  ;;  %3286 = vmatpush.xpose.msra.mxu2 %v1330_v11  ;;  %v1561_v8 = vld [vmem:[#allocation5 + $0x2ee8] sm:$0xff]  ;;  %v1563_v11 = vld [vmem:[#allocation5 + $0x2ef8] sm:$0xff] }
 0x528   :  { %3266 = vmatpush.xpose.msra.mxu1 %v1329_v15  ;;  %3306 = vmatpush.xpose.msra.mxu3 %v1331_v16  ;;  %v1548_v15 = vld [vmem:[#allocation5 + $0x2e80] sm:$0xff]  ;;  %v1550_v16 = vld [vmem:[#allocation5 + $0x2e90] sm:$0xff] }
 0x52b   :  { %3247 = vmatpush.xpose.msra.mxu0 %v1316_v17  ;;  %3287 = vmatpush.xpose.msra.mxu2 %v1318_v18  ;;  %v1549_v17 = vld [vmem:[#allocation5 + $0x2e88] sm:$0xff]  ;;  %v1551_v18 = vld [vmem:[#allocation5 + $0x2e98] sm:$0xff] }
 0x52c   :  { %3267 = vmatpush.xpose.msra.mxu1 %v1317_v7  ;;  %3307 = vmatpush.xpose.msra.mxu3 %v1319_v19  ;;  %v1536_v7 = vld [vmem:[#allocation5 + $0x2e20] sm:$0xff]  ;;  %v1538_v19 = vld [vmem:[#allocation5 + $0x2e30] sm:$0xff] }
 0x52f   :  { %3248 = vmatpush.xpose.msra.mxu0 %v1304_v22  ;;  %3288 = vmatpush.xpose.msra.mxu2 %v1306_v4  ;;  %v1537_v22 = vld [vmem:[#allocation5 + $0x2e28] sm:$0xff]  ;;  %v1539_v4 = vld [vmem:[#allocation5 + $0x2e38] sm:$0xff] }
 0x530   :  { %3268 = vmatpush.xpose.msra.mxu1 %v1305_v23  ;;  %3308 = vmatpush.xpose.msra.mxu3 %v1307_v26  ;;  %v1524_v23 = vld [vmem:[#allocation5 + $0x2dc0] sm:$0xff]  ;;  %v1526_v26 = vld [vmem:[#allocation5 + $0x2dd0] sm:$0xff] }
 0x533   :  { %3249 = vmatpush.xpose.msra.mxu0 %v1292_v27  ;;  %3289 = vmatpush.xpose.msra.mxu2 %v1294_v28  ;;  %v1525_v27 = vld [vmem:[#allocation5 + $0x2dc8] sm:$0xff]  ;;  %v1527_v28 = vld [vmem:[#allocation5 + $0x2dd8] sm:$0xff] }
 0x534   :  { %3269 = vmatpush.xpose.msra.mxu1 %v1293_v29  ;;  %3309 = vmatpush.xpose.msra.mxu3 %v1295_v30  ;;  %v1512_v29 = vld [vmem:[#allocation5 + $0x2d60] sm:$0xff]  ;;  %v1514_v30 = vld [vmem:[#allocation5 + $0x2d70] sm:$0xff] }
 0x537   :  { %3250 = vmatpush.xpose.msra.mxu0 %v1280_v31  ;;  %3290 = vmatpush.xpose.msra.mxu2 %v1282_v32  ;;  %v1513_v31 = vld [vmem:[#allocation5 + $0x2d68] sm:$0xff]  ;;  %v1515_v32 = vld [vmem:[#allocation5 + $0x2d78] sm:$0xff] }
 0x538   :  { %3270 = vmatpush.xpose.msra.mxu1 %v1281_v35  ;;  %3310 = vmatpush.xpose.msra.mxu3 %v1283_v62  ;;  %v1500_v35 = vld [vmem:[#allocation5 + $0x2d00] sm:$0xff]  ;;  %v1502_v62 = vld [vmem:[#allocation5 + $0x2d10] sm:$0xff] }
 0x53b   :  { %3251 = vmatpush.xpose.msra.mxu0 %v1268_v39  ;;  %3291 = vmatpush.xpose.msra.mxu2 %v1270_v40  ;;  %v1501_v39 = vld [vmem:[#allocation5 + $0x2d08] sm:$0xff]  ;;  %v1503_v40 = vld [vmem:[#allocation5 + $0x2d18] sm:$0xff] }
 0x53c   :  { %3271 = vmatpush.xpose.msra.mxu1 %v1269_v41  ;;  %3311 = vmatpush.xpose.msra.mxu3 %v1271_v42  ;;  %v1488_v41 = vld [vmem:[#allocation5 + $0x2ca0] sm:$0xff]  ;;  %v1490_v42 = vld [vmem:[#allocation5 + $0x2cb0] sm:$0xff] }
 0x53f   :  { %3252 = vmatpush.xpose.msra.mxu0 %v1256_v43  ;;  %3292 = vmatpush.xpose.msra.mxu2 %v1258_v59  ;;  %v1489_v43 = vld [vmem:[#allocation5 + $0x2ca8] sm:$0xff]  ;;  %v1491_v59 = vld [vmem:[#allocation5 + $0x2cb8] sm:$0xff] }
 0x540   :  { %3272 = vmatpush.xpose.msra.mxu1 %v1257_v53  ;;  %3312 = vmatpush.xpose.msra.mxu3 %v1259_v44  ;;  %v1476_v53 = vld [vmem:[#allocation5 + $0x2c40] sm:$0xff]  ;;  %v1478_v44 = vld [vmem:[#allocation5 + $0x2c50] sm:$0xff] }
 0x543   :  { %3253 = vmatpush.xpose.msra.mxu0 %v1244_v45  ;;  %3293 = vmatpush.xpose.msra.mxu2 %v1246_v46  ;;  %v1477_v45 = vld [vmem:[#allocation5 + $0x2c48] sm:$0xff]  ;;  %v1479_v46 = vld [vmem:[#allocation5 + $0x2c58] sm:$0xff] }
 0x544   :  { %3273 = vmatpush.xpose.msra.mxu1 %v1245_v47  ;;  %3313 = vmatpush.xpose.msra.mxu3 %v1247_v48  ;;  %v1464_v47 = vld [vmem:[#allocation5 + $0x2be0] sm:$0xff]  ;;  %v1466_v48 = vld [vmem:[#allocation5 + $0x2bf0] sm:$0xff] }
 0x547   :  { %3254 = vmatpush.xpose.msra.mxu0 %v1232_v49  ;;  %3294 = vmatpush.xpose.msra.mxu2 %v1234_v56  ;;  %v1465_v49 = vld [vmem:[#allocation5 + $0x2be8] sm:$0xff]  ;;  %v1467_v56 = vld [vmem:[#allocation5 + $0x2bf8] sm:$0xff] }
 0x548   :  { %3274 = vmatpush.xpose.msra.mxu1 %v1233_v51  ;;  %3314 = vmatpush.xpose.msra.mxu3 %v1235_v50  ;;  %v1452_v51 = vld [vmem:[#allocation5 + $0x2b80] sm:$0xff]  ;;  %v1454_v50 = vld [vmem:[#allocation5 + $0x2b90] sm:$0xff] }
 0x54b   :  { %3255 = vmatpush.xpose.msra.mxu0 %v1220_v52  ;;  %3295 = vmatpush.xpose.msra.mxu2 %v1222_v54  ;;  %v1453_v52 = vld [vmem:[#allocation5 + $0x2b88] sm:$0xff]  ;;  %v1455_v54 = vld [vmem:[#allocation5 + $0x2b98] sm:$0xff] }
 0x54c   :  { %3275 = vmatpush.xpose.msra.mxu1 %v1221_v36  ;;  %3315 = vmatpush.xpose.msra.mxu3 %v1223_v57  ;;  %v1441_v36 = vld [vmem:[#allocation5 + $0x2b28] sm:$0xff]  ;;  %v1443_v57 = vld [vmem:[#allocation5 + $0x2b38] sm:$0xff] }
 0x54e   :  { %3256 = vmatmul.f32.vlgmr.msra.gmra.mxu0 %v3789_v20  ;;  %3296 = vmatmul.f32.vlgmr.msra.gmra.mxu2 %v3791_v21 }
 0x54f   :  { %3320 = vmatpush.xpose.msrb.mxu0 %v1584_v12  ;;  %3360 = vmatpush.xpose.msrb.mxu2 %v1586_v61  ;;  %v1440_v12 = vld [vmem:[#allocation5 + $0x2b20] sm:$0xff]  ;;  %v1442_v61 = vld [vmem:[#allocation5 + $0x2b30] sm:$0xff] }
 0x550   :  { %3340 = vmatpush.xpose.msrb.mxu1 %v1585_v58  ;;  %3380 = vmatpush.xpose.msrb.mxu3 %v1587_v63  ;;  %v1428_v58 = vld [vmem:[#allocation5 + $0x2ac0] sm:$0xff]  ;;  %v1430_v63 = vld [vmem:[#allocation5 + $0x2ad0] sm:$0xff] }
 0x551   :  { %3276 = vmatmul.f32.vlgmr.msra.gmra.mxu1 %v3793_v24  ;;  %3316 = vmatmul.f32.vlgmr.msra.gmra.mxu3 %v3795_v25 }
 0x553   :  { %3321 = vmatpush.xpose.msrb.mxu0 %v1572_v0  ;;  %3361 = vmatpush.xpose.msrb.mxu2 %v1574_v2  ;;  %v1429_v0 = vld [vmem:[#allocation5 + $0x2ac8] sm:$0xff]  ;;  %v1431_v2 = vld [vmem:[#allocation5 + $0x2ad8] sm:$0xff] }
 0x554   :  { %3341 = vmatpush.xpose.msrb.mxu1 %v1573_v60  ;;  %3381 = vmatpush.xpose.msrb.mxu3 %v1575_v1  ;;  %v1416_v60 = vld [vmem:[#allocation5 + $0x2a60] sm:$0xff]  ;;  %v1418_v1 = vld [vmem:[#allocation5 + $0x2a70] sm:$0xff] }
 0x557   :  { %3322 = vmatpush.xpose.msrb.mxu0 %v1560_v3  ;;  %3362 = vmatpush.xpose.msrb.mxu2 %v1562_v6  ;;  %v1417_v3 = vld [vmem:[#allocation5 + $0x2a68] sm:$0xff]  ;;  %v1419_v6 = vld [vmem:[#allocation5 + $0x2a78] sm:$0xff] }
 0x558   :  { %3342 = vmatpush.xpose.msrb.mxu1 %v1561_v8  ;;  %3382 = vmatpush.xpose.msrb.mxu3 %v1563_v11  ;;  %v1404_v8 = vld [vmem:[#allocation5 + $0x2a00] sm:$0xff]  ;;  %v1406_v11 = vld [vmem:[#allocation5 + $0x2a10] sm:$0xff] }
 0x55b   :  { %3323 = vmatpush.xpose.msrb.mxu0 %v1548_v15  ;;  %3363 = vmatpush.xpose.msrb.mxu2 %v1550_v16  ;;  %v1588_v15 = vld [vmem:[#allocation5 + $0x2fc0] sm:$0xff]  ;;  %v1590_v16 = vld [vmem:[#allocation5 + $0x2fd0] sm:$0xff] }
 0x55c   :  { %3343 = vmatpush.xpose.msrb.mxu1 %v1549_v17  ;;  %3383 = vmatpush.xpose.msrb.mxu3 %v1551_v18  ;;  %v1405_v17 = vld [vmem:[#allocation5 + $0x2a08] sm:$0xff]  ;;  %v1407_v18 = vld [vmem:[#allocation5 + $0x2a18] sm:$0xff] }
 0x55f   :  { %3324 = vmatpush.xpose.msrb.mxu0 %v1536_v7  ;;  %3364 = vmatpush.xpose.msrb.mxu2 %v1538_v19  ;;  %v1589_v7 = vld [vmem:[#allocation5 + $0x2fc8] sm:$0xff]  ;;  %v1591_v19 = vld [vmem:[#allocation5 + $0x2fd8] sm:$0xff] }
 0x560   :  { %3344 = vmatpush.xpose.msrb.mxu1 %v1537_v22  ;;  %3384 = vmatpush.xpose.msrb.mxu3 %v1539_v4  ;;  %v1576_v22 = vld [vmem:[#allocation5 + $0x2f60] sm:$0xff]  ;;  %v1578_v4 = vld [vmem:[#allocation5 + $0x2f70] sm:$0xff] }
 0x563   :  { %3325 = vmatpush.xpose.msrb.mxu0 %v1524_v23  ;;  %3365 = vmatpush.xpose.msrb.mxu2 %v1526_v26  ;;  %v1577_v23 = vld [vmem:[#allocation5 + $0x2f68] sm:$0xff]  ;;  %v1579_v26 = vld [vmem:[#allocation5 + $0x2f78] sm:$0xff] }
 0x564   :  { %3345 = vmatpush.xpose.msrb.mxu1 %v1525_v27  ;;  %3385 = vmatpush.xpose.msrb.mxu3 %v1527_v28  ;;  %v1564_v27 = vld [vmem:[#allocation5 + $0x2f00] sm:$0xff]  ;;  %v1566_v28 = vld [vmem:[#allocation5 + $0x2f10] sm:$0xff] }
 0x567   :  { %3326 = vmatpush.xpose.msrb.mxu0 %v1512_v29  ;;  %3366 = vmatpush.xpose.msrb.mxu2 %v1514_v30  ;;  %v1565_v29 = vld [vmem:[#allocation5 + $0x2f08] sm:$0xff]  ;;  %v1567_v30 = vld [vmem:[#allocation5 + $0x2f18] sm:$0xff] }
 0x568   :  { %3346 = vmatpush.xpose.msrb.mxu1 %v1513_v31  ;;  %3386 = vmatpush.xpose.msrb.mxu3 %v1515_v32  ;;  %v1552_v31 = vld [vmem:[#allocation5 + $0x2ea0] sm:$0xff]  ;;  %v1554_v32 = vld [vmem:[#allocation5 + $0x2eb0] sm:$0xff] }
 0x56b   :  { %3327 = vmatpush.xpose.msrb.mxu0 %v1500_v35  ;;  %3367 = vmatpush.xpose.msrb.mxu2 %v1502_v62  ;;  %v1540_v35 = vld [vmem:[#allocation5 + $0x2e40] sm:$0xff]  ;;  %v1542_v62 = vld [vmem:[#allocation5 + $0x2e50] sm:$0xff] }
 0x56c   :  { %3347 = vmatpush.xpose.msrb.mxu1 %v1501_v39  ;;  %3387 = vmatpush.xpose.msrb.mxu3 %v1503_v40  ;;  %v1528_v39 = vld [vmem:[#allocation5 + $0x2de0] sm:$0xff]  ;;  %v1530_v40 = vld [vmem:[#allocation5 + $0x2df0] sm:$0xff] }
 0x56f   :  { %3328 = vmatpush.xpose.msrb.mxu0 %v1488_v41  ;;  %3368 = vmatpush.xpose.msrb.mxu2 %v1490_v42  ;;  %v1529_v41 = vld [vmem:[#allocation5 + $0x2de8] sm:$0xff]  ;;  %v1531_v42 = vld [vmem:[#allocation5 + $0x2df8] sm:$0xff] }
 0x570   :  { %3348 = vmatpush.xpose.msrb.mxu1 %v1489_v43  ;;  %3388 = vmatpush.xpose.msrb.mxu3 %v1491_v59  ;;  %v1516_v43 = vld [vmem:[#allocation5 + $0x2d80] sm:$0xff]  ;;  %v1518_v59 = vld [vmem:[#allocation5 + $0x2d90] sm:$0xff] }
 0x573   :  { %3329 = vmatpush.xpose.msrb.mxu0 %v1476_v53  ;;  %3369 = vmatpush.xpose.msrb.mxu2 %v1478_v44  ;;  %v1517_v53 = vld [vmem:[#allocation5 + $0x2d88] sm:$0xff]  ;;  %v1519_v44 = vld [vmem:[#allocation5 + $0x2d98] sm:$0xff] }
 0x574   :  { %3349 = vmatpush.xpose.msrb.mxu1 %v1477_v45  ;;  %3389 = vmatpush.xpose.msrb.mxu3 %v1479_v46  ;;  %v1504_v45 = vld [vmem:[#allocation5 + $0x2d20] sm:$0xff]  ;;  %v1506_v46 = vld [vmem:[#allocation5 + $0x2d30] sm:$0xff] }
 0x577   :  { %3330 = vmatpush.xpose.msrb.mxu0 %v1464_v47  ;;  %3370 = vmatpush.xpose.msrb.mxu2 %v1466_v48  ;;  %v1505_v47 = vld [vmem:[#allocation5 + $0x2d28] sm:$0xff]  ;;  %v1507_v48 = vld [vmem:[#allocation5 + $0x2d38] sm:$0xff] }
 0x578   :  { %3350 = vmatpush.xpose.msrb.mxu1 %v1465_v49  ;;  %3390 = vmatpush.xpose.msrb.mxu3 %v1467_v56  ;;  %v1492_v49 = vld [vmem:[#allocation5 + $0x2cc0] sm:$0xff]  ;;  %v1494_v56 = vld [vmem:[#allocation5 + $0x2cd0] sm:$0xff] }
 0x57b   :  { %3331 = vmatpush.xpose.msrb.mxu0 %v1452_v51  ;;  %3371 = vmatpush.xpose.msrb.mxu2 %v1454_v50  ;;  %v1493_v51 = vld [vmem:[#allocation5 + $0x2cc8] sm:$0xff]  ;;  %v1495_v50 = vld [vmem:[#allocation5 + $0x2cd8] sm:$0xff] }
 0x57c   :  { %3351 = vmatpush.xpose.msrb.mxu1 %v1453_v52  ;;  %3391 = vmatpush.xpose.msrb.mxu3 %v1455_v54  ;;  %v1480_v52 = vld [vmem:[#allocation5 + $0x2c60] sm:$0xff]  ;;  %v1482_v54 = vld [vmem:[#allocation5 + $0x2c70] sm:$0xff] }
 0x57f   :  { %3332 = vmatpush.xpose.msrb.mxu0 %v1440_v12  ;;  %3372 = vmatpush.xpose.msrb.mxu2 %v1442_v61  ;;  %v1481_v12 = vld [vmem:[#allocation5 + $0x2c68] sm:$0xff]  ;;  %v1483_v61 = vld [vmem:[#allocation5 + $0x2c78] sm:$0xff] }
 0x580   :  { %3352 = vmatpush.xpose.msrb.mxu1 %v1441_v36  ;;  %3392 = vmatpush.xpose.msrb.mxu3 %v1443_v57  ;;  %v1468_v36 = vld [vmem:[#allocation5 + $0x2c00] sm:$0xff]  ;;  %v1470_v57 = vld [vmem:[#allocation5 + $0x2c10] sm:$0xff] }
 0x583   :  { %3333 = vmatpush.xpose.msrb.mxu0 %v1428_v58  ;;  %3373 = vmatpush.xpose.msrb.mxu2 %v1430_v63  ;;  %v1469_v58 = vld [vmem:[#allocation5 + $0x2c08] sm:$0xff]  ;;  %v1471_v63 = vld [vmem:[#allocation5 + $0x2c18] sm:$0xff] }
 0x584   :  { %3353 = vmatpush.xpose.msrb.mxu1 %v1429_v0  ;;  %3393 = vmatpush.xpose.msrb.mxu3 %v1431_v2  ;;  %v1456_v0 = vld [vmem:[#allocation5 + $0x2ba0] sm:$0xff]  ;;  %v1458_v2 = vld [vmem:[#allocation5 + $0x2bb0] sm:$0xff] }
 0x587   :  { %3334 = vmatpush.xpose.msrb.mxu0 %v1416_v60  ;;  %3374 = vmatpush.xpose.msrb.mxu2 %v1418_v1  ;;  %v1457_v60 = vld [vmem:[#allocation5 + $0x2ba8] sm:$0xff]  ;;  %v1459_v1 = vld [vmem:[#allocation5 + $0x2bb8] sm:$0xff] }
 0x588   :  { %3354 = vmatpush.xpose.msrb.mxu1 %v1417_v3  ;;  %3394 = vmatpush.xpose.msrb.mxu3 %v1419_v6  ;;  %v1444_v3 = vld [vmem:[#allocation5 + $0x2b40] sm:$0xff]  ;;  %v1446_v6 = vld [vmem:[#allocation5 + $0x2b50] sm:$0xff] }
 0x58b   :  { %3335 = vmatpush.xpose.msrb.mxu0 %v1404_v8  ;;  %3375 = vmatpush.xpose.msrb.mxu2 %v1406_v11  ;;  %v1445_v8 = vld [vmem:[#allocation5 + $0x2b48] sm:$0xff]  ;;  %v1447_v11 = vld [vmem:[#allocation5 + $0x2b58] sm:$0xff] }
 0x58c   :  { %3355 = vmatpush.xpose.msrb.mxu1 %v1405_v17  ;;  %3395 = vmatpush.xpose.msrb.mxu3 %v1407_v18  ;;  %v1433_v17 = vld [vmem:[#allocation5 + $0x2ae8] sm:$0xff]  ;;  %v1435_v18 = vld [vmem:[#allocation5 + $0x2af8] sm:$0xff] }
 0x58e   :  { %3336 = vmatmul.f32.vlgmr.msrb.gmra.mxu0 %v3758_v33  ;;  %3376 = vmatmul.f32.vlgmr.msrb.gmra.mxu2 %v3761_v34  ;;  %v1553_v33 = vld [vmem:[#allocation5 + $0x2ea8] sm:$0xff]  ;;  %v1555_v34 = vld [vmem:[#allocation5 + $0x2eb8] sm:$0xff] }
 0x58f   :  { %3400 = vmatpush.xpose.msra.mxu0 %v1588_v15  ;;  %3440 = vmatpush.xpose.msra.mxu2 %v1590_v16  ;;  %v1432_v15 = vld [vmem:[#allocation5 + $0x2ae0] sm:$0xff]  ;;  %v1434_v16 = vld [vmem:[#allocation5 + $0x2af0] sm:$0xff] }
 0x590   :  { %3420 = vmatpush.xpose.msra.mxu1 %v1589_v7  ;;  %3460 = vmatpush.xpose.msra.mxu3 %v1591_v19  ;;  %v1420_v7 = vld [vmem:[#allocation5 + $0x2a80] sm:$0xff]  ;;  %v1422_v19 = vld [vmem:[#allocation5 + $0x2a90] sm:$0xff] }
 0x591   :  { %3356 = vmatmul.f32.vlgmr.msrb.gmra.mxu1 %v3766_v37  ;;  %3396 = vmatmul.f32.vlgmr.msrb.gmra.mxu3 %v3769_v38  ;;  %v1541_v37 = vld [vmem:[#allocation5 + $0x2e48] sm:$0xff]  ;;  %v1543_v38 = vld [vmem:[#allocation5 + $0x2e58] sm:$0xff] }
 0x593   :  { %3401 = vmatpush.xpose.msra.mxu0 %v1576_v22  ;;  %3441 = vmatpush.xpose.msra.mxu2 %v1578_v4  ;;  %v1421_v22 = vld [vmem:[#allocation5 + $0x2a88] sm:$0xff]  ;;  %v1423_v4 = vld [vmem:[#allocation5 + $0x2a98] sm:$0xff] }
 0x594   :  { %3421 = vmatpush.xpose.msra.mxu1 %v1577_v23  ;;  %3461 = vmatpush.xpose.msra.mxu3 %v1579_v26  ;;  %v1408_v23 = vld [vmem:[#allocation5 + $0x2a20] sm:$0xff]  ;;  %v1410_v26 = vld [vmem:[#allocation5 + $0x2a30] sm:$0xff] }
 0x597   :  { %3402 = vmatpush.xpose.msra.mxu0 %v1564_v27  ;;  %3442 = vmatpush.xpose.msra.mxu2 %v1566_v28  ;;  %v1592_v27 = vld [vmem:[#allocation5 + $0x2fe0] sm:$0xff]  ;;  %v1594_v28 = vld [vmem:[#allocation5 + $0x2ff0] sm:$0xff] }
 0x598   :  { %3422 = vmatpush.xpose.msra.mxu1 %v1565_v29  ;;  %3462 = vmatpush.xpose.msra.mxu3 %v1567_v30  ;;  %v1409_v29 = vld [vmem:[#allocation5 + $0x2a28] sm:$0xff]  ;;  %v1411_v30 = vld [vmem:[#allocation5 + $0x2a38] sm:$0xff] }
 0x59b   :  { %3403 = vmatpush.xpose.msra.mxu0 %v1552_v31  ;;  %3443 = vmatpush.xpose.msra.mxu2 %v1554_v32  ;;  %v1593_v31 = vld [vmem:[#allocation5 + $0x2fe8] sm:$0xff]  ;;  %v1595_v32 = vld [vmem:[#allocation5 + $0x2ff8] sm:$0xff] }
 0x59c   :  { %3423 = vmatpush.xpose.msra.mxu1 %v1553_v33  ;;  %3463 = vmatpush.xpose.msra.mxu3 %v1555_v34  ;;  %v1580_v33 = vld [vmem:[#allocation5 + $0x2f80] sm:$0xff]  ;;  %v1582_v34 = vld [vmem:[#allocation5 + $0x2f90] sm:$0xff] }
 0x59f   :  { %3404 = vmatpush.xpose.msra.mxu0 %v1540_v35  ;;  %3444 = vmatpush.xpose.msra.mxu2 %v1542_v62  ;;  %v1581_v35 = vld [vmem:[#allocation5 + $0x2f88] sm:$0xff]  ;;  %v1583_v62 = vld [vmem:[#allocation5 + $0x2f98] sm:$0xff] }
 0x5a0   :  { %3424 = vmatpush.xpose.msra.mxu1 %v1541_v37  ;;  %3464 = vmatpush.xpose.msra.mxu3 %v1543_v38  ;;  %v1568_v37 = vld [vmem:[#allocation5 + $0x2f20] sm:$0xff]  ;;  %v1570_v38 = vld [vmem:[#allocation5 + $0x2f30] sm:$0xff] }
 0x5a3   :  { %3405 = vmatpush.xpose.msra.mxu0 %v1528_v39  ;;  %3445 = vmatpush.xpose.msra.mxu2 %v1530_v40  ;;  %v1569_v39 = vld [vmem:[#allocation5 + $0x2f28] sm:$0xff]  ;;  %v1571_v40 = vld [vmem:[#allocation5 + $0x2f38] sm:$0xff] }
 0x5a4   :  { %3425 = vmatpush.xpose.msra.mxu1 %v1529_v41  ;;  %3465 = vmatpush.xpose.msra.mxu3 %v1531_v42  ;;  %v1556_v41 = vld [vmem:[#allocation5 + $0x2ec0] sm:$0xff]  ;;  %v1558_v42 = vld [vmem:[#allocation5 + $0x2ed0] sm:$0xff] }
 0x5a7   :  { %3406 = vmatpush.xpose.msra.mxu0 %v1516_v43  ;;  %3446 = vmatpush.xpose.msra.mxu2 %v1518_v59  ;;  %v1544_v43 = vld [vmem:[#allocation5 + $0x2e60] sm:$0xff]  ;;  %v1546_v59 = vld [vmem:[#allocation5 + $0x2e70] sm:$0xff] }
 0x5a8   :  { %3426 = vmatpush.xpose.msra.mxu1 %v1517_v53  ;;  %3466 = vmatpush.xpose.msra.mxu3 %v1519_v44  ;;  %v1532_v53 = vld [vmem:[#allocation5 + $0x2e00] sm:$0xff]  ;;  %v1534_v44 = vld [vmem:[#allocation5 + $0x2e10] sm:$0xff] }
 0x5ab   :  { %3407 = vmatpush.xpose.msra.mxu0 %v1504_v45  ;;  %3447 = vmatpush.xpose.msra.mxu2 %v1506_v46  ;;  %v1533_v45 = vld [vmem:[#allocation5 + $0x2e08] sm:$0xff]  ;;  %v1535_v46 = vld [vmem:[#allocation5 + $0x2e18] sm:$0xff] }
 0x5ac   :  { %3427 = vmatpush.xpose.msra.mxu1 %v1505_v47  ;;  %3467 = vmatpush.xpose.msra.mxu3 %v1507_v48  ;;  %v1520_v47 = vld [vmem:[#allocation5 + $0x2da0] sm:$0xff]  ;;  %v1522_v48 = vld [vmem:[#allocation5 + $0x2db0] sm:$0xff] }
 0x5af   :  { %3408 = vmatpush.xpose.msra.mxu0 %v1492_v49  ;;  %3448 = vmatpush.xpose.msra.mxu2 %v1494_v56  ;;  %v1521_v49 = vld [vmem:[#allocation5 + $0x2da8] sm:$0xff]  ;;  %v1523_v56 = vld [vmem:[#allocation5 + $0x2db8] sm:$0xff] }
 0x5b0   :  { %3428 = vmatpush.xpose.msra.mxu1 %v1493_v51  ;;  %3468 = vmatpush.xpose.msra.mxu3 %v1495_v50  ;;  %v1508_v51 = vld [vmem:[#allocation5 + $0x2d40] sm:$0xff]  ;;  %v1510_v50 = vld [vmem:[#allocation5 + $0x2d50] sm:$0xff] }
 0x5b3   :  { %3409 = vmatpush.xpose.msra.mxu0 %v1480_v52  ;;  %3449 = vmatpush.xpose.msra.mxu2 %v1482_v54  ;;  %v1509_v52 = vld [vmem:[#allocation5 + $0x2d48] sm:$0xff]  ;;  %v1511_v54 = vld [vmem:[#allocation5 + $0x2d58] sm:$0xff] }
 0x5b4   :  { %3429 = vmatpush.xpose.msra.mxu1 %v1481_v12  ;;  %3469 = vmatpush.xpose.msra.mxu3 %v1483_v61  ;;  %v1496_v12 = vld [vmem:[#allocation5 + $0x2ce0] sm:$0xff]  ;;  %v1498_v61 = vld [vmem:[#allocation5 + $0x2cf0] sm:$0xff] }
 0x5b7   :  { %3410 = vmatpush.xpose.msra.mxu0 %v1468_v36  ;;  %3450 = vmatpush.xpose.msra.mxu2 %v1470_v57  ;;  %v1497_v36 = vld [vmem:[#allocation5 + $0x2ce8] sm:$0xff]  ;;  %v1499_v57 = vld [vmem:[#allocation5 + $0x2cf8] sm:$0xff] }
 0x5b8   :  { %3430 = vmatpush.xpose.msra.mxu1 %v1469_v58  ;;  %3470 = vmatpush.xpose.msra.mxu3 %v1471_v63  ;;  %v1484_v58 = vld [vmem:[#allocation5 + $0x2c80] sm:$0xff]  ;;  %v1486_v63 = vld [vmem:[#allocation5 + $0x2c90] sm:$0xff] }
 0x5bb   :  { %3411 = vmatpush.xpose.msra.mxu0 %v1456_v0  ;;  %3451 = vmatpush.xpose.msra.mxu2 %v1458_v2  ;;  %v1485_v0 = vld [vmem:[#allocation5 + $0x2c88] sm:$0xff]  ;;  %v1487_v2 = vld [vmem:[#allocation5 + $0x2c98] sm:$0xff] }
 0x5bc   :  { %3431 = vmatpush.xpose.msra.mxu1 %v1457_v60  ;;  %3471 = vmatpush.xpose.msra.mxu3 %v1459_v1  ;;  %v1472_v60 = vld [vmem:[#allocation5 + $0x2c20] sm:$0xff]  ;;  %v1474_v1 = vld [vmem:[#allocation5 + $0x2c30] sm:$0xff] }
 0x5bf   :  { %3412 = vmatpush.xpose.msra.mxu0 %v1444_v3  ;;  %3452 = vmatpush.xpose.msra.mxu2 %v1446_v6  ;;  %v1473_v3 = vld [vmem:[#allocation5 + $0x2c28] sm:$0xff]  ;;  %v1475_v6 = vld [vmem:[#allocation5 + $0x2c38] sm:$0xff] }
 0x5c0   :  { %3432 = vmatpush.xpose.msra.mxu1 %v1445_v8  ;;  %3472 = vmatpush.xpose.msra.mxu3 %v1447_v11  ;;  %v1460_v8 = vld [vmem:[#allocation5 + $0x2bc0] sm:$0xff]  ;;  %v1462_v11 = vld [vmem:[#allocation5 + $0x2bd0] sm:$0xff] }
 0x5c3   :  { %3413 = vmatpush.xpose.msra.mxu0 %v1432_v15  ;;  %3453 = vmatpush.xpose.msra.mxu2 %v1434_v16  ;;  %v1461_v15 = vld [vmem:[#allocation5 + $0x2bc8] sm:$0xff]  ;;  %v1463_v16 = vld [vmem:[#allocation5 + $0x2bd8] sm:$0xff] }
 0x5c4   :  { %3433 = vmatpush.xpose.msra.mxu1 %v1433_v17  ;;  %3473 = vmatpush.xpose.msra.mxu3 %v1435_v18  ;;  %v1448_v17 = vld [vmem:[#allocation5 + $0x2b60] sm:$0xff]  ;;  %v1450_v18 = vld [vmem:[#allocation5 + $0x2b70] sm:$0xff] }
 0x5c7   :  { %3414 = vmatpush.xpose.msra.mxu0 %v1420_v7  ;;  %3454 = vmatpush.xpose.msra.mxu2 %v1422_v19  ;;  %v1449_v7 = vld [vmem:[#allocation5 + $0x2b68] sm:$0xff]  ;;  %v1451_v19 = vld [vmem:[#allocation5 + $0x2b78] sm:$0xff] }
 0x5c8   :  { %3434 = vmatpush.xpose.msra.mxu1 %v1421_v22  ;;  %3474 = vmatpush.xpose.msra.mxu3 %v1423_v4  ;;  %v1436_v22 = vld [vmem:[#allocation5 + $0x2b00] sm:$0xff]  ;;  %v1438_v4 = vld [vmem:[#allocation5 + $0x2b10] sm:$0xff] }
 0x5cb   :  { %3415 = vmatpush.xpose.msra.mxu0 %v1408_v23  ;;  %3455 = vmatpush.xpose.msra.mxu2 %v1410_v26  ;;  %v1437_v23 = vld [vmem:[#allocation5 + $0x2b08] sm:$0xff]  ;;  %v1439_v26 = vld [vmem:[#allocation5 + $0x2b18] sm:$0xff] }
 0x5cc   :  { %3435 = vmatpush.xpose.msra.mxu1 %v1409_v29  ;;  %3475 = vmatpush.xpose.msra.mxu3 %v1411_v30  ;;  %v1425_v29 = vld [vmem:[#allocation5 + $0x2aa8] sm:$0xff]  ;;  %v1427_v30 = vld [vmem:[#allocation5 + $0x2ab8] sm:$0xff] }
 0x5ce   :  { %3456 = vmatmul.f32.vlgmr.msra.gmra.mxu2 %v3774_v9  ;;  %3416 = vmatmul.f32.vlgmr.msra.gmra.mxu0 %v3777_v10  ;;  %v1557_v9 = vld [vmem:[#allocation5 + $0x2ec8] sm:$0xff]  ;;  %v1559_v10 = vld [vmem:[#allocation5 + $0x2ed8] sm:$0xff] }
 0x5cf   :  { %3480 = vmatpush.xpose.msrb.mxu0 %v1592_v27  ;;  %3520 = vmatpush.xpose.msrb.mxu2 %v1594_v28  ;;  %v1424_v27 = vld [vmem:[#allocation5 + $0x2aa0] sm:$0xff]  ;;  %v1426_v28 = vld [vmem:[#allocation5 + $0x2ab0] sm:$0xff] }
 0x5d0   :  { %3500 = vmatpush.xpose.msrb.mxu1 %v1593_v31  ;;  %3540 = vmatpush.xpose.msrb.mxu3 %v1595_v32  ;;  %v1412_v31 = vld [vmem:[#allocation5 + $0x2a40] sm:$0xff]  ;;  %v1414_v32 = vld [vmem:[#allocation5 + $0x2a50] sm:$0xff] }
 0x5d1   :  { %3476 = vmatmul.f32.vlgmr.msra.gmra.mxu3 %v3780_v13  ;;  %3436 = vmatmul.f32.vlgmr.msra.gmra.mxu1 %v3783_v14  ;;  %v1545_v13 = vld [vmem:[#allocation5 + $0x2e68] sm:$0xff]  ;;  %v1547_v14 = vld [vmem:[#allocation5 + $0x2e78] sm:$0xff] }
 0x5d3   :  { %3481 = vmatpush.xpose.msrb.mxu0 %v1580_v33  ;;  %3521 = vmatpush.xpose.msrb.mxu2 %v1582_v34  ;;  %v1413_v33 = vld [vmem:[#allocation5 + $0x2a48] sm:$0xff]  ;;  %v1415_v34 = vld [vmem:[#allocation5 + $0x2a58] sm:$0xff] }
 0x5d4   :  { %3501 = vmatpush.xpose.msrb.mxu1 %v1581_v35  ;;  %3541 = vmatpush.xpose.msrb.mxu3 %v1583_v62  ;;  %v3951_v35 = vpop.f32.mrf.mxu0  ;;  %v3953_v62 = vpop.f32.mrf.mxu1 }
 0x5d7   :  { %3482 = vmatpush.xpose.msrb.mxu0 %v1568_v37  ;;  %3522 = vmatpush.xpose.msrb.mxu2 %v1570_v38  ;;  %v3955_v37 = vpop.f32.mrf.mxu2 }
 0x5d8   :  { %3502 = vmatpush.xpose.msrb.mxu1 %v1569_v39  ;;  %3542 = vmatpush.xpose.msrb.mxu3 %v1571_v40  ;;  %v3957_v39 = vpop.f32.mrf.mxu3 }
 0x5db   :  { %3483 = vmatpush.xpose.msrb.mxu0 %v1556_v41  ;;  %3523 = vmatpush.xpose.msrb.mxu2 %v1558_v42 }
 0x5dc   :  { %3503 = vmatpush.xpose.msrb.mxu1 %v1557_v9  ;;  %3543 = vmatpush.xpose.msrb.mxu3 %v1559_v10  ;;  %v2857_v38 = vpop.f32.mrf.mxu0  ;;  %v2877_v40 = vpop.f32.mrf.mxu1 }
 0x5df   :  { %3484 = vmatpush.xpose.msrb.mxu0 %v1544_v43  ;;  %3524 = vmatpush.xpose.msrb.mxu2 %v1546_v59  ;;  %v2897_v41 = vpop.f32.mrf.mxu2 }
 0x5e0   :  { %3504 = vmatpush.xpose.msrb.mxu1 %v1545_v13  ;;  %3544 = vmatpush.xpose.msrb.mxu3 %v1547_v14  ;;  %v2917_v9 = vpop.f32.mrf.mxu3 }
 0x5e3   :  { %3485 = vmatpush.xpose.msrb.mxu0 %v1532_v53  ;;  %3525 = vmatpush.xpose.msrb.mxu2 %v1534_v44 }
 0x5e4   :  { %3505 = vmatpush.xpose.msrb.mxu1 %v1533_v45  ;;  %3545 = vmatpush.xpose.msrb.mxu3 %v1535_v46  ;;  %v2937_v42 = vpop.f32.mrf.mxu0 }
 0x5e7   :  { %3486 = vmatpush.xpose.msrb.mxu0 %v1520_v47  ;;  %3526 = vmatpush.xpose.msrb.mxu2 %v1522_v48  ;;  %v2977_v10 = vpop.f32.mrf.mxu2 }
 0x5e8   :  { %3506 = vmatpush.xpose.msrb.mxu1 %v1521_v49  ;;  %3546 = vmatpush.xpose.msrb.mxu3 %v1523_v56  ;;  %v2997_v43 = vpop.f32.mrf.mxu3  ;;  %v3617_v49 = vld [vmem:[#allocation7] sm:$0xff] }
 0x5e9   :  { %v1629_v56 = vperm.slane %v3617_v49, 5 }
 0x5eb   :  { %3487 = vmatpush.xpose.msrb.mxu0 %v1508_v51  ;;  %3527 = vmatpush.xpose.msrb.mxu2 %v1510_v50  ;;  %v1630_v51 = vperm.slane %v3617_v49, 6 }
 0x5ec   :  { %3507 = vmatpush.xpose.msrb.mxu1 %v1509_v52  ;;  %3547 = vmatpush.xpose.msrb.mxu3 %v1511_v54  ;;  %v2858_v54 = vadd.f32 %v2857_v38, %v1629_v56 }
 0x5ef   :  { %3488 = vmatpush.xpose.msrb.mxu0 %v1496_v12  ;;  %3528 = vmatpush.xpose.msrb.mxu2 %v1498_v61  ;;  %v3057_v59 = vpop.f32.mrf.mxu2  ;;  %v1631_v61 = vperm.slane %v3617_v49, 7 }
 0x5f0   :  { %3508 = vmatpush.xpose.msrb.mxu1 %v1497_v36  ;;  %3548 = vmatpush.xpose.msrb.mxu3 %v1499_v57  ;;  %v3077_v13 = vpop.f32.mrf.mxu3 }
 0x5f3   :  { %3489 = vmatpush.xpose.msrb.mxu0 %v1484_v58  ;;  %3529 = vmatpush.xpose.msrb.mxu2 %v1486_v63  ;;  %v2878_v58 = vadd.f32 %v2877_v40, %v2858_v54 }
 0x5f4   :  { %3509 = vmatpush.xpose.msrb.mxu1 %v1485_v0  ;;  %3549 = vmatpush.xpose.msrb.mxu3 %v1487_v2 }
 0x5f7   :  { %3490 = vmatpush.xpose.msrb.mxu0 %v1472_v60  ;;  %3530 = vmatpush.xpose.msrb.mxu2 %v1474_v1  ;;  %v3137_v53 = vpop.f32.mrf.mxu2  ;;  %v2898_v1 = vadd.f32 %v2897_v41, %v2878_v58  ;;  %v2778_v41 = vadd.f32 %v3951_v35, %v3917_v55 }
 0x5f8   :  { %3510 = vmatpush.xpose.msrb.mxu1 %v1473_v3  ;;  %3550 = vmatpush.xpose.msrb.mxu3 %v1475_v6  ;;  %v3157_v45 = vpop.f32.mrf.mxu3 }
 0x5fb   :  { %3491 = vmatpush.xpose.msrb.mxu0 %v1460_v8  ;;  %3531 = vmatpush.xpose.msrb.mxu2 %v1462_v11  ;;  %v2918_v11 = vadd.f32 %v2917_v9, %v2898_v1 }
 0x5fc   :  { %3511 = vmatpush.xpose.msrb.mxu1 %v1461_v15  ;;  %3551 = vmatpush.xpose.msrb.mxu3 %v1463_v16 }
 0x5ff   :  { %3492 = vmatpush.xpose.msrb.mxu0 %v1448_v17  ;;  %3532 = vmatpush.xpose.msrb.mxu2 %v1450_v18  ;;  %v3217_v47 = vpop.f32.mrf.mxu2  ;;  %v2938_v18 = vadd.f32 %v2937_v42, %v2918_v11 }
 0x600   :  { %3512 = vmatpush.xpose.msrb.mxu1 %v1449_v7  ;;  %3552 = vmatpush.xpose.msrb.mxu3 %v1451_v19  ;;  %v3237_v50 = vpop.f32.mrf.mxu3 }
 0x603   :  { %3493 = vmatpush.xpose.msrb.mxu0 %v1436_v22  ;;  %3533 = vmatpush.xpose.msrb.mxu2 %v1438_v4 }
 0x604   :  { %3513 = vmatpush.xpose.msrb.mxu1 %v1437_v23  ;;  %3553 = vmatpush.xpose.msrb.mxu3 %v1439_v26 }
 0x607   :  { %3494 = vmatpush.xpose.msrb.mxu0 %v1424_v27  ;;  %3534 = vmatpush.xpose.msrb.mxu2 %v1426_v28  ;;  %v3297_v36 = vpop.f32.mrf.mxu2 }
 0x608   :  { %3514 = vmatpush.xpose.msrb.mxu1 %v1425_v29  ;;  %3554 = vmatpush.xpose.msrb.mxu3 %v1427_v30  ;;  %v3317_v2 = vpop.f32.mrf.mxu3 }
 0x60b   :  { %3495 = vmatpush.xpose.msrb.mxu0 %v1412_v31  ;;  %3535 = vmatpush.xpose.msrb.mxu2 %v1414_v32 }
 0x60c   :  { %3515 = vmatpush.xpose.msrb.mxu1 %v1413_v33  ;;  %3555 = vmatpush.xpose.msrb.mxu3 %v1415_v34 }
 0x60e   :  { %3496 = vmatmul.f32.vlgmr.msrb.gmra.mxu0 %v3789_v20  ;;  %3536 = vmatmul.f32.vlgmr.msrb.gmra.mxu2 %v3791_v21  ;;  %v2957_v20 = vpop.f32.mrf.mxu1  ;;  %v3017_v21 = vpop.f32.mrf.mxu0 }
 0x60f   :  { %3516 = vmatmul.f32.vlgmr.msrb.gmra.mxu1 %v3793_v24  ;;  %3556 = vmatmul.f32.vlgmr.msrb.gmra.mxu3 %v3795_v25  ;;  %v2958_v4 = vadd.f32 %v2957_v20, %v2938_v18  ;;  %v2798_v20 = vadd.f32 %v3953_v62, %v2778_v41 }
 0x611   :  { %v3377_v8 = vpop.f32.mrf.mxu2  ;;  %v2978_v28 = vadd.f32 %v2977_v10, %v2958_v4 }
 0x613   :  { %v2998_v32 = vadd.f32 %v2997_v43, %v2978_v28 }
 0x614   :  { %v3397_v17 = vpop.f32.mrf.mxu3 }
 0x615   :  { %v3018_v33 = vadd.f32 %v3017_v21, %v2998_v32 }
 0x616   :  { %v3037_v24 = vpop.f32.mrf.mxu1  ;;  %v3097_v25 = vpop.f32.mrf.mxu0 }
 0x617   :  { %v3098_v12 = vadd.f32 %v3097_v25, %v1630_v51  ;;  %v3038_v9 = vadd.f32 %v3037_v24, %v3018_v33 }
 0x61e   :  { %v3117_v14 = vpop.f32.mrf.mxu1  ;;  %v3177_v44 = vpop.f32.mrf.mxu0 }
 0x61f   :  { %v3118_v63 = vadd.f32 %v3117_v14, %v3098_v12 }
 0x621   :  { %v3138_v3 = vadd.f32 %v3137_v53, %v3118_v63  ;;  %v3058_v53 = vadd.f32 %v3057_v59, %v3038_v9 }
 0x623   :  { %v3158_v15 = vadd.f32 %v3157_v45, %v3138_v3  ;;  %v3078_v21 = vadd.f32 %v3077_v13, %v3058_v53 }
 0x625   :  { %v3178_v7 = vadd.f32 %v3177_v44, %v3158_v15  ;;  %v3572_v24 = vrot.slane %v3078_v21, 3 }
 0x626   :  { %v3197_v46 = vpop.f32.mrf.mxu1  ;;  %v3257_v48 = vpop.f32.mrf.mxu0 }
 0x627   :  { %v3198_v23 = vadd.f32 %v3197_v46, %v3178_v7  ;;  %v2818_v46 = vadd.f32 %v3955_v37, %v2798_v20 }
 0x629   :  { %v3218_v29 = vadd.f32 %v3217_v47, %v3198_v23  ;;  %v2838_v56 = vadd.f32 %v3957_v39, %v2818_v46 }
 0x62b   :  { %v3238_v34 = vadd.f32 %v3237_v50, %v3218_v29  ;;  %v3571_v62 = vrot.slane %v2838_v56, 4 }
 0x62d   :  { %v3258_v42 = vadd.f32 %v3257_v48, %v3238_v34  ;;  %v3582_v37 = vsel %vm3581_vm3, %v3571_v62, %v3572_v24 }
 0x62e   :  { %v3277_v52 = vpop.f32.mrf.mxu1  ;;  %v3337_v57 = vpop.f32.mrf.mxu0 }
 0x62f   :  { %v3338_v0 = vadd.f32 %v3337_v57, %v1631_v61  ;;  %v3278_v44 = vadd.f32 %v3277_v52, %v3258_v42 }
 0x631   :  { %v3298_v43 = vadd.f32 %v3297_v36, %v3278_v44 }
 0x633   :  { %v3318_v51 = vadd.f32 %v3317_v2, %v3298_v43 }
 0x635   :  { %v3573_v59 = vrot.slane %v3318_v51, 2 }
 0x636   :  { %v3357_v60 = vpop.f32.mrf.mxu1 }
 0x637   :  { %v3358_v6 = vadd.f32 %v3357_v60, %v3338_v0 }
 0x639   :  { %v3378_v16 = vadd.f32 %v3377_v8, %v3358_v6 }
 0x63b   :  { %v3398_v19 = vadd.f32 %v3397_v17, %v3378_v16 }
 0x64b   :  { %v3417_v22 = vpop.f32.mrf.mxu0 }
 0x64c   :  { %v3418_v26 = vadd.f32 %v3417_v22, %v3398_v19 }
 0x64e   :  { %v3437_v27 = vpop.f32.mrf.mxu1 }
 0x64f   :  { %v3438_v30 = vadd.f32 %v3437_v27, %v3418_v26 }
 0x651   :  { %v3457_v31 = vpop.f32.mrf.mxu2 }
 0x652   :  { %v3458_v38 = vadd.f32 %v3457_v31, %v3438_v30 }
 0x654   :  { %v3477_v40 = vpop.f32.mrf.mxu3 }
 0x655   :  { %v3478_v25 = vadd.f32 %v3477_v40, %v3458_v38 }
 0x68b   :  { %v3497_v14 = vpop.f32.mrf.mxu0 }
 0x68c   :  { %v3498_v10 = vadd.f32 %v3497_v14, %v3478_v25  ;;  %v3517_v45 = vpop.f32.mrf.mxu1 }
 0x68e   :  { %v3518_v47 = vadd.f32 %v3517_v45, %v3498_v10 }
 0x691   :  { %v3537_v49 = vpop.f32.mrf.mxu2 }
 0x692   :  { %v3538_v55 = vadd.f32 %v3537_v49, %v3518_v47  ;;  %v3557_v35 = vpop.f32.mrf.mxu3 }
 0x694   :  { %v3558_v48 = vadd.f32 %v3557_v35, %v3538_v55 }
 0x696   :  { %v3574_v50 = vrot.slane %v3558_v48, 1 }
 0x698   :  { %v3584_v39 = vsel %vm3583_vm4, %v3573_v59, %v3574_v50 }
 0x699   :  { %v3586_v13 = vsel %vm3585_vm5, %v3582_v37, %v3584_v39 }
 0x69a   :  { %v3588_v52 = vsel %vm3587_vm6, %v3904_v5, %v3586_v13 }
 0x69b   :  { %3590 = vst [vmem:[#allocation8] sm:$0xff] %v3588_v52 }
 0x69c   :  { %3601 = dma.vmem_to_hbm [thread:$0]  %s3597_s2, 128, %s3599_s30, [#allocation4]  }
 0x69d   :  { %3718 = dma.done.wait [#allocation4], 128  }
 0x69e   :  { %3719 = vsyncadd [#allocation4], 4294967168 }
 0x69f   :  { %3606 = vsyncpa [#allocation3], 1 }
 0x6a0   :  { %3607 = vsyncpa [#allocation6], 1 }
 0x6a1   :  { %3608 = vsyncpa [#allocation4], 1 }

</bundles_post_ra>
